<compile_context>
chip_gen: v6e
topology: v6e:2x2x1
jax: 0.10.0
libtpu: 0.0.40
codegen_flags: <defaults>
</compile_context>

<pallas_src>
import math

import jax
import jax.numpy as jnp
from jax import lax
from jax.experimental import pallas as pl
from jax.experimental.pallas import tpu as pltpu


def make_ensemble_lstm_kernel(num_layers, T, Bp, H, M, Mp, C, A_OFF, OUT_W):
    """One fused program computing the whole ensemble forward pass."""
    MH = Mp * H          # lanes holding one gate for all (padded) members
    MG = 4 * MH          # all four gates

    def kernel(*refs):
        x_ref = refs[0]                                           # (T*Bp, Dp) bf16
        layer_refs = [(refs[1 + 3 * l], refs[2 + 3 * l], refs[3 + 3 * l])
                      for l in range(num_layers)]
        base = 1 + 3 * num_layers
        w_attn_ref, b_attn_ref, w_fc_ref, b_fc_ref = refs[base:base + 4]
        out_ref = refs[base + 4]                                  # (Bp, OUT_W) f32

        # ---------------- stacked LSTM, members packed along lanes ----------
        xs = x_ref[...]                                           # bf16
        hs = None
        for l, (wih_ref, whh_ref, b_ref) in enumerate(layer_refs):
            wih = wih_ref[...]                                    # (in, MG) bf16
            whh = whh_ref[...]                                    # (MH, MG) bf16 (block-diag)
            b = b_ref[...]                                        # (1, MG)  f32

            # Hoisted input projection over all timesteps (bias folded in).
            gx = jnp.dot(xs, wih, preferred_element_type=jnp.float32) + b  # (T*Bp, MG)

            h = jnp.zeros((Bp, MH), jnp.float32)
            c = jnp.zeros((Bp, MH), jnp.float32)
            hs = []
            for t in range(T):                                    # fully unrolled recurrence
                gates = jnp.dot(h.astype(jnp.bfloat16), whh,
                                preferred_element_type=jnp.float32)
                gates = gates + gx[t * Bp:(t + 1) * Bp, :]        # (Bp, MG)
                # Each gate block is exactly MH (=128 here) lanes: whole vregs.
                i_g = jax.nn.sigmoid(gates[:, 0 * MH:1 * MH])
                f_g = jax.nn.sigmoid(gates[:, 1 * MH:2 * MH])
                g_g = jnp.tanh(gates[:, 2 * MH:3 * MH])
                o_g = jax.nn.sigmoid(gates[:, 3 * MH:4 * MH])
                c = f_g * c + i_g * g_g
                h = o_g * jnp.tanh(c)
                hs.append(h)                                      # (Bp, MH) f32
            if l + 1 < num_layers:
                xs = jnp.concatenate(hs, axis=0).astype(jnp.bfloat16)  # (T*Bp, MH)

        # ------------- attention + classifier head (real members only) ------
        inv_m = jnp.float32(1.0 / M)
        attn_cols = [jnp.zeros((Bp, 1), jnp.float32) for _ in range(T)]
        logits = jnp.zeros((Bp, OUT_W), jnp.float32)
        for m in range(M):                                        # static loop
            w_m = w_attn_ref[m:m + 1, :]                          # (1, H) f32
            b_m = b_attn_ref[m:m + 1, :]                          # (1, 1) f32
            h_m = [hs[t][:, m * H:(m + 1) * H] for t in range(T)]  # T x (Bp, H)
            s = [jnp.sum(h_m[t] * w_m, axis=-1, keepdims=True) + b_m
                 for t in range(T)]                               # T x (Bp, 1)
            smax = s[0]
            for t in range(1, T):
                smax = jnp.maximum(smax, s[t])
            e = [jnp.exp(s[t] - smax) for t in range(T)]
            denom = e[0]
            for t in range(1, T):
                denom = denom + e[t]
            ctx = jnp.zeros((Bp, H), jnp.float32)
            for t in range(T):
                a_t = e[t] / denom                                # softmax over time
                attn_cols[t] = attn_cols[t] + a_t
                ctx = ctx + a_t * h_m[t]
            logits = logits + jnp.dot(ctx.astype(jnp.bfloat16), w_fc_ref[m],
                                      preferred_element_type=jnp.float32)
        logits = (logits + b_fc_ref[...]) * inv_m                 # (Bp, OUT_W)

        # Lane-dense packed output: [logits | ... | attention (batch-major)].
        out_ref[...] = logits
        for t in range(T):
            out_ref[:, A_OFF + t:A_OFF + t + 1] = attn_cols[t] * inv_m

    return kernel


def init_params(key, num_models, input_dim, hidden_dim, num_layers, num_classes):
    D = input_dim + 2
    H = hidden_dim
    H4 = 4 * H
    k = 1.0 / math.sqrt(H)

    def u(kk, shape):
        return jax.random.uniform(kk, shape, jnp.float32, -k, k)

    keys = iter(jax.random.split(key, num_layers * 4 + 4))
    w_ih, w_hh, b = [], [], []
    for l in range(num_layers):
        in_dim = D if l == 0 else H
        w_ih.append(u(next(keys), (num_models, in_dim, H4)))
        w_hh.append(u(next(keys), (num_models, H, H4)))
        # PyTorch has independent b_ih and b_hh draws; sum them (forward only
        # ever sees the sum).
        b.append(u(next(keys), (num_models, 1, H4)) + u(next(keys), (num_models, 1, H4)))
    w_attn = u(next(keys), (num_models, 1, H))
    b_attn = u(next(keys), (num_models, 1, 1))
    w_fc = u(next(keys), (num_models, H, num_classes))
    b_fc = u(next(keys), (num_models, 1, num_classes))
    return {"w_ih": w_ih, "w_hh": w_hh, "b": b,
            "w_attn": w_attn, "b_attn": b_attn, "w_fc": w_fc, "b_fc": b_fc}


def _build_merged_weights(params, M, Mp, H, D, Dp, num_layers, C, OUT_W):
    """Pack per-member weights into lane-concatenated / block-diagonal form."""
    MH, MG = Mp * H, 4 * Mp * H
    merged = []
    for l in range(num_layers):
        in_dim = Dp if l == 0 else MH
        wih = jnp.zeros((in_dim, MG), jnp.float32)
        whh = jnp.zeros((MH, MG), jnp.float32)
        bb = jnp.zeros((1, MG), jnp.float32)
        for m in range(M):
            for g in range(4):                     # PyTorch gate order i, f, g, o
                col = g * MH + m * H
                src_ih = params["w_ih"][l][m][:, g * H:(g + 1) * H]
                if l == 0:
                    wih = wih.at[:D, col:col + H].set(src_ih)
                else:
                    wih = wih.at[m * H:(m + 1) * H, col:col + H].set(src_ih)
                whh = whh.at[m * H:(m + 1) * H, col:col + H].set(
                    params["w_hh"][l][m][:, g * H:(g + 1) * H])
                bb = bb.at[:, col:col + H].set(
                    params["b"][l][m][:, g * H:(g + 1) * H])
        merged.append((wih.astype(jnp.bfloat16), whh.astype(jnp.bfloat16), bb))

    w_attn2 = params["w_attn"].reshape(M, H)                       # f32
    b_attn2 = params["b_attn"].reshape(M, 1)                       # f32
    w_fc_p = jnp.zeros((M, H, OUT_W), jnp.float32).at[:, :, :C].set(
        params["w_fc"]).astype(jnp.bfloat16)
    b_fc_sum = jnp.zeros((1, OUT_W), jnp.float32).at[:, :C].set(
        jnp.sum(params["b_fc"], axis=0))
    return merged, w_attn2, b_attn2, w_fc_p, b_fc_sum


def ensemble_lstm_forward(x, volatility, volume, params):
    # Glue (XLA): feature concat, time-major transpose, pad batch/feature dims.
    feats = jnp.concatenate([x, volatility[..., None], volume[..., None]], axis=-1)
    B, T, D = feats.shape
    num_layers = len(params["w_ih"])
    M, H = params["w_hh"][0].shape[0], params["w_hh"][0].shape[1]
    C = params["w_fc"].shape[2]

    # Pad member count so every gate block is a multiple of 128 lanes.
    base = 128 // math.gcd(H, 128)
    Mp = ((M + base - 1) // base) * base
    Bp = ((B + 7) // 8) * 8
    Dp = ((D + 7) // 8) * 8
    OUT_W = 128
    A_OFF = OUT_W - T
    assert C <= A_OFF and T <= OUT_W, "packed output layout needs C + T <= 128"

    x_tm = jnp.transpose(feats, (1, 0, 2)).astype(jnp.float32)     # (T, B, D)
    x_tm = jnp.pad(x_tm, ((0, 0), (0, Bp - B), (0, Dp - D)))
    x_flat = x_tm.reshape(T * Bp, Dp).astype(jnp.bfloat16)

    merged, w_attn2, b_attn2, w_fc_p, b_fc_sum = _build_merged_weights(
        params, M, Mp, H, D, Dp, num_layers, C, OUT_W)

    inputs = [x_flat]
    for (wih, whh, bb) in merged:
        inputs += [wih, whh, bb]
    inputs += [w_attn2, b_attn2, w_fc_p, b_fc_sum]

    kernel = make_ensemble_lstm_kernel(num_layers, T, Bp, H, M, Mp, C, A_OFF, OUT_W)

    # Single program, everything resident in VMEM (a few hundred KiB total).
    out = pl.pallas_call(
        kernel,
        out_shape=jax.ShapeDtypeStruct((Bp, OUT_W), jnp.float32),
        in_specs=[pl.BlockSpec(memory_space=pltpu.MemorySpace.VMEM)
                  for _ in inputs],
        out_specs=pl.BlockSpec(memory_space=pltpu.MemorySpace.VMEM),
    )(*inputs)

    ensemble_output = out[:B, :C]                                  # (B, C)
    ensemble_attention = out[:B, A_OFF:A_OFF + T][..., None]       # (B, T, 1)
    return ensemble_output, ensemble_attention


def reference_forward(x, volatility, volume, params):
    """Pure-JAX reference mirroring the kernel's bf16-matmul / f32-accumulate math."""
    feats = jnp.concatenate([x, volatility[..., None], volume[..., None]], axis=-1)
    x_tm = jnp.transpose(feats, (1, 0, 2)).astype(jnp.float32)     # (T, B, D)
    T, B, _ = x_tm.shape
    M = params["w_fc"].shape[0]
    H = params["w_hh"][0].shape[1]
    outs, attns = [], []
    for m in range(M):
        seq = x_tm
        for l in range(len(params["w_ih"])):
            wih = params["w_ih"][l][m].astype(jnp.bfloat16)
            whh = params["w_hh"][l][m].astype(jnp.bfloat16)
            bb = params["b"][l][m]
            in_dim = seq.shape[-1]
            gx = jnp.dot(seq.reshape(T * B, in_dim).astype(jnp.bfloat16), wih,
                         preferred_element_type=jnp.float32)
            gx = gx.reshape(T, B, 4 * H) + bb[None, :, :]

            def step(carry, gxt, whh=whh):
                h, c = carry
                g = jnp.dot(h.astype(jnp.bfloat16), whh,
                            preferred_element_type=jnp.float32) + gxt
                i = jax.nn.sigmoid(g[:, :H])
                f = jax.nn.sigmoid(g[:, H:2 * H])
                gg = jnp.tanh(g[:, 2 * H:3 * H])
                o = jax.nn.sigmoid(g[:, 3 * H:])
                c = f * c + i * gg
                h = o * jnp.tanh(c)
                return (h, c), h

            h0 = jnp.zeros((B, H), jnp.float32)
            _, seq = lax.scan(step, (h0, h0), gx)
        scores = jnp.einsum('tbh,h->tb', seq, params["w_attn"][m][0]) \
            + params["b_attn"][m][0, 0]
        attn = jax.nn.softmax(scores, axis=0)                      # (T, B)
        context = jnp.einsum('tb,tbh->bh', attn, seq)
        logits = jnp.dot(context.astype(jnp.bfloat16),
                         params["w_fc"][m].astype(jnp.bfloat16),
                         preferred_element_type=jnp.float32) + params["b_fc"][m]
        outs.append(logits)
        attns.append(attn.T[..., None])
    return jnp.mean(jnp.stack(outs), 0), jnp.mean(jnp.stack(attns), 0)


if __name__ == "__main__":
    num_models, input_dim, hidden_dim, num_layers, num_classes = 3, 4, 32, 2, 3
    B, T = 2, 8

    key = jax.random.PRNGKey(0)
    k_p, k_x, k_vlt, k_vol = jax.random.split(key, 4)
    params = init_params(k_p, num_models, input_dim, hidden_dim,
                         num_layers, num_classes)
    x = jax.random.normal(k_x, (B, T, input_dim), jnp.float32)
    volatility = jax.random.normal(k_vlt, (B, T), jnp.float32)
    volume = jax.random.normal(k_vol, (B, T), jnp.float32)

    out, attn = ensemble_lstm_forward(x, volatility, volume, params)
    out = jax.block_until_ready(out)
    attn = jax.block_until_ready(attn)

    ref_out, ref_attn = reference_forward(x, volatility, volume, params)
    assert out.shape == (B, num_classes) and attn.shape == (B, T, 1)
    err_out = float(jnp.max(jnp.abs(out - ref_out)))
    err_attn = float(jnp.max(jnp.abs(attn - ref_attn)))
    assert err_out < 3e-3, f"logits mismatch: {err_out}"
    assert err_attn < 3e-3, f"attention mismatch: {err_attn}"
    print("KERNEL_OK")
</pallas_src>

<mosaic_0001>
module attributes {stable_mosaic.version = 11 : i64} {
  func.func @kernel(%arg0: memref<64x8xbf16, #tpu.memory_space<vmem>>, %arg1: memref<8x512xbf16, #tpu.memory_space<vmem>>, %arg2: memref<128x512xbf16, #tpu.memory_space<vmem>>, %arg3: memref<1x512xf32, #tpu.memory_space<vmem>>, %arg4: memref<128x512xbf16, #tpu.memory_space<vmem>>, %arg5: memref<128x512xbf16, #tpu.memory_space<vmem>>, %arg6: memref<1x512xf32, #tpu.memory_space<vmem>>, %arg7: memref<3x32xf32, #tpu.memory_space<vmem>>, %arg8: memref<3x1xf32, #tpu.memory_space<vmem>>, %arg9: memref<3x32x128xbf16, #tpu.memory_space<vmem>>, %arg10: memref<1x128xf32, #tpu.memory_space<vmem>>, %arg11: memref<8x128xf32, #tpu.memory_space<vmem>>) attributes {dimension_semantics = [], scalar_prefetch = 0 : i64, scratch_operands = 0 : i64, tpu.core_type = #tpu.core_type<tc>} {
    %c0 = arith.constant 0 : index
    %c0_0 = arith.constant 0 : index
    %0 = vector.load %arg0[%c0, %c0_0] : memref<64x8xbf16, #tpu.memory_space<vmem>>, vector<64x8xbf16>
    %c0_1 = arith.constant 0 : index
    %c0_2 = arith.constant 0 : index
    %1 = vector.load %arg1[%c0_1, %c0_2] : memref<8x512xbf16, #tpu.memory_space<vmem>>, vector<8x512xbf16>
    %c0_3 = arith.constant 0 : index
    %c0_4 = arith.constant 0 : index
    %2 = vector.load %arg2[%c0_3, %c0_4] : memref<128x512xbf16, #tpu.memory_space<vmem>>, vector<128x512xbf16>
    %c0_5 = arith.constant 0 : index
    %c0_6 = arith.constant 0 : index
    %3 = vector.load %arg3[%c0_5, %c0_6] : memref<1x512xf32, #tpu.memory_space<vmem>>, vector<1x512xf32>
    %cst = arith.constant dense<0.000000e+00> : vector<64x512xf32>
    %4 = tpu.matmul %0, %1, %cst {dimension_numbers = #tpu.dot_dimension_numbers<[1], [0], [0], [1], [0, 0, 1, 1], [], []>} : vector<64x8xbf16>, vector<8x512xbf16>, vector<64x512xf32> -> vector<64x512xf32>
    %5 = vector.broadcast %3 : vector<1x512xf32> to vector<64x512xf32>
    %6 = arith.addf %4, %5 : vector<64x512xf32>
    %cst_7 = arith.constant 0.000000e+00 : f32
    %7 = vector.broadcast %cst_7 : f32 to vector<8x128xf32>
    %cst_8 = arith.constant 0.000000e+00 : f32
    %8 = vector.broadcast %cst_8 : f32 to vector<8x128xf32>
    %9 = arith.truncf %7 : vector<8x128xf32> to vector<8x128xbf16>
    %cst_9 = arith.constant dense<0.000000e+00> : vector<8x512xf32>
    %10 = tpu.matmul %9, %2, %cst_9 {dimension_numbers = #tpu.dot_dimension_numbers<[1], [0], [0], [1], [0, 0, 1, 1], [], []>} : vector<8x128xbf16>, vector<128x512xbf16>, vector<8x512xf32> -> vector<8x512xf32>
    %11 = vector.extract_strided_slice %6 {offsets = [0, 0], sizes = [8, 512], strides = [1, 1]} : vector<64x512xf32> to vector<8x512xf32>
    %12 = arith.addf %10, %11 : vector<8x512xf32>
    %13 = vector.extract_strided_slice %12 {offsets = [0, 0], sizes = [8, 128], strides = [1, 1]} : vector<8x512xf32> to vector<8x128xf32>
    %14 = arith.negf %13 : vector<8x128xf32>
    %15 = math.exp %14 : vector<8x128xf32>
    %cst_10 = arith.constant 1.000000e+00 : f32
    %16 = vector.broadcast %cst_10 : f32 to vector<8x128xf32>
    %17 = arith.addf %16, %15 : vector<8x128xf32>
    %18 = arith.divf %16, %17 : vector<8x128xf32>
    %19 = vector.extract_strided_slice %12 {offsets = [0, 128], sizes = [8, 128], strides = [1, 1]} : vector<8x512xf32> to vector<8x128xf32>
    %20 = arith.negf %19 : vector<8x128xf32>
    %21 = math.exp %20 : vector<8x128xf32>
    %cst_11 = arith.constant 1.000000e+00 : f32
    %22 = vector.broadcast %cst_11 : f32 to vector<8x128xf32>
    %23 = arith.addf %22, %21 : vector<8x128xf32>
    %24 = arith.divf %22, %23 : vector<8x128xf32>
    %25 = vector.extract_strided_slice %12 {offsets = [0, 256], sizes = [8, 128], strides = [1, 1]} : vector<8x512xf32> to vector<8x128xf32>
    %26 = math.tanh %25 : vector<8x128xf32>
    %27 = vector.extract_strided_slice %12 {offsets = [0, 384], sizes = [8, 128], strides = [1, 1]} : vector<8x512xf32> to vector<8x128xf32>
    %28 = arith.negf %27 : vector<8x128xf32>
    %29 = math.exp %28 : vector<8x128xf32>
    %cst_12 = arith.constant 1.000000e+00 : f32
    %30 = vector.broadcast %cst_12 : f32 to vector<8x128xf32>
    %31 = arith.addf %30, %29 : vector<8x128xf32>
    %32 = arith.divf %30, %31 : vector<8x128xf32>
    %33 = arith.mulf %24, %8 : vector<8x128xf32>
    %34 = arith.mulf %18, %26 : vector<8x128xf32>
    %35 = arith.addf %33, %34 : vector<8x128xf32>
    %36 = math.tanh %35 : vector<8x128xf32>
    %37 = arith.mulf %32, %36 : vector<8x128xf32>
    %38 = arith.truncf %37 : vector<8x128xf32> to vector<8x128xbf16>
    %cst_13 = arith.constant dense<0.000000e+00> : vector<8x512xf32>
    %39 = tpu.matmul %38, %2, %cst_13 {dimension_numbers = #tpu.dot_dimension_numbers<[1], [0], [0], [1], [0, 0, 1, 1], [], []>} : vector<8x128xbf16>, vector<128x512xbf16>, vector<8x512xf32> -> vector<8x512xf32>
    %40 = vector.extract_strided_slice %6 {offsets = [8, 0], sizes = [8, 512], strides = [1, 1]} : vector<64x512xf32> to vector<8x512xf32>
    %41 = arith.addf %39, %40 : vector<8x512xf32>
    %42 = vector.extract_strided_slice %41 {offsets = [0, 0], sizes = [8, 128], strides = [1, 1]} : vector<8x512xf32> to vector<8x128xf32>
    %43 = arith.negf %42 : vector<8x128xf32>
    %44 = math.exp %43 : vector<8x128xf32>
    %cst_14 = arith.constant 1.000000e+00 : f32
    %45 = vector.broadcast %cst_14 : f32 to vector<8x128xf32>
    %46 = arith.addf %45, %44 : vector<8x128xf32>
    %47 = arith.divf %45, %46 : vector<8x128xf32>
    %48 = vector.extract_strided_slice %41 {offsets = [0, 128], sizes = [8, 128], strides = [1, 1]} : vector<8x512xf32> to vector<8x128xf32>
    %49 = arith.negf %48 : vector<8x128xf32>
    %50 = math.exp %49 : vector<8x128xf32>
    %cst_15 = arith.constant 1.000000e+00 : f32
    %51 = vector.broadcast %cst_15 : f32 to vector<8x128xf32>
    %52 = arith.addf %51, %50 : vector<8x128xf32>
    %53 = arith.divf %51, %52 : vector<8x128xf32>
    %54 = vector.extract_strided_slice %41 {offsets = [0, 256], sizes = [8, 128], strides = [1, 1]} : vector<8x512xf32> to vector<8x128xf32>
    %55 = math.tanh %54 : vector<8x128xf32>
    %56 = vector.extract_strided_slice %41 {offsets = [0, 384], sizes = [8, 128], strides = [1, 1]} : vector<8x512xf32> to vector<8x128xf32>
    %57 = arith.negf %56 : vector<8x128xf32>
    %58 = math.exp %57 : vector<8x128xf32>
    %cst_16 = arith.constant 1.000000e+00 : f32
    %59 = vector.broadcast %cst_16 : f32 to vector<8x128xf32>
    %60 = arith.addf %59, %58 : vector<8x128xf32>
    %61 = arith.divf %59, %60 : vector<8x128xf32>
    %62 = arith.mulf %53, %35 : vector<8x128xf32>
    %63 = arith.mulf %47, %55 : vector<8x128xf32>
    %64 = arith.addf %62, %63 : vector<8x128xf32>
    %65 = math.tanh %64 : vector<8x128xf32>
    %66 = arith.mulf %61, %65 : vector<8x128xf32>
    %67 = arith.truncf %66 : vector<8x128xf32> to vector<8x128xbf16>
    %cst_17 = arith.constant dense<0.000000e+00> : vector<8x512xf32>
    %68 = tpu.matmul %67, %2, %cst_17 {dimension_numbers = #tpu.dot_dimension_numbers<[1], [0], [0], [1], [0, 0, 1, 1], [], []>} : vector<8x128xbf16>, vector<128x512xbf16>, vector<8x512xf32> -> vector<8x512xf32>
    %69 = vector.extract_strided_slice %6 {offsets = [16, 0], sizes = [8, 512], strides = [1, 1]} : vector<64x512xf32> to vector<8x512xf32>
    %70 = arith.addf %68, %69 : vector<8x512xf32>
    %71 = vector.extract_strided_slice %70 {offsets = [0, 0], sizes = [8, 128], strides = [1, 1]} : vector<8x512xf32> to vector<8x128xf32>
    %72 = arith.negf %71 : vector<8x128xf32>
    %73 = math.exp %72 : vector<8x128xf32>
    %cst_18 = arith.constant 1.000000e+00 : f32
    %74 = vector.broadcast %cst_18 : f32 to vector<8x128xf32>
    %75 = arith.addf %74, %73 : vector<8x128xf32>
    %76 = arith.divf %74, %75 : vector<8x128xf32>
    %77 = vector.extract_strided_slice %70 {offsets = [0, 128], sizes = [8, 128], strides = [1, 1]} : vector<8x512xf32> to vector<8x128xf32>
    %78 = arith.negf %77 : vector<8x128xf32>
    %79 = math.exp %78 : vector<8x128xf32>
    %cst_19 = arith.constant 1.000000e+00 : f32
    %80 = vector.broadcast %cst_19 : f32 to vector<8x128xf32>
    %81 = arith.addf %80, %79 : vector<8x128xf32>
    %82 = arith.divf %80, %81 : vector<8x128xf32>
    %83 = vector.extract_strided_slice %70 {offsets = [0, 256], sizes = [8, 128], strides = [1, 1]} : vector<8x512xf32> to vector<8x128xf32>
    %84 = math.tanh %83 : vector<8x128xf32>
    %85 = vector.extract_strided_slice %70 {offsets = [0, 384], sizes = [8, 128], strides = [1, 1]} : vector<8x512xf32> to vector<8x128xf32>
    %86 = arith.negf %85 : vector<8x128xf32>
    %87 = math.exp %86 : vector<8x128xf32>
    %cst_20 = arith.constant 1.000000e+00 : f32
    %88 = vector.broadcast %cst_20 : f32 to vector<8x128xf32>
    %89 = arith.addf %88, %87 : vector<8x128xf32>
    %90 = arith.divf %88, %89 : vector<8x128xf32>
    %91 = arith.mulf %82, %64 : vector<8x128xf32>
    %92 = arith.mulf %76, %84 : vector<8x128xf32>
    %93 = arith.addf %91, %92 : vector<8x128xf32>
    %94 = math.tanh %93 : vector<8x128xf32>
    %95 = arith.mulf %90, %94 : vector<8x128xf32>
    %96 = arith.truncf %95 : vector<8x128xf32> to vector<8x128xbf16>
    %cst_21 = arith.constant dense<0.000000e+00> : vector<8x512xf32>
    %97 = tpu.matmul %96, %2, %cst_21 {dimension_numbers = #tpu.dot_dimension_numbers<[1], [0], [0], [1], [0, 0, 1, 1], [], []>} : vector<8x128xbf16>, vector<128x512xbf16>, vector<8x512xf32> -> vector<8x512xf32>
    %98 = vector.extract_strided_slice %6 {offsets = [24, 0], sizes = [8, 512], strides = [1, 1]} : vector<64x512xf32> to vector<8x512xf32>
    %99 = arith.addf %97, %98 : vector<8x512xf32>
    %100 = vector.extract_strided_slice %99 {offsets = [0, 0], sizes = [8, 128], strides = [1, 1]} : vector<8x512xf32> to vector<8x128xf32>
    %101 = arith.negf %100 : vector<8x128xf32>
    %102 = math.exp %101 : vector<8x128xf32>
    %cst_22 = arith.constant 1.000000e+00 : f32
    %103 = vector.broadcast %cst_22 : f32 to vector<8x128xf32>
    %104 = arith.addf %103, %102 : vector<8x128xf32>
    %105 = arith.divf %103, %104 : vector<8x128xf32>
    %106 = vector.extract_strided_slice %99 {offsets = [0, 128], sizes = [8, 128], strides = [1, 1]} : vector<8x512xf32> to vector<8x128xf32>
    %107 = arith.negf %106 : vector<8x128xf32>
    %108 = math.exp %107 : vector<8x128xf32>
    %cst_23 = arith.constant 1.000000e+00 : f32
    %109 = vector.broadcast %cst_23 : f32 to vector<8x128xf32>
    %110 = arith.addf %109, %108 : vector<8x128xf32>
    %111 = arith.divf %109, %110 : vector<8x128xf32>
    %112 = vector.extract_strided_slice %99 {offsets = [0, 256], sizes = [8, 128], strides = [1, 1]} : vector<8x512xf32> to vector<8x128xf32>
    %113 = math.tanh %112 : vector<8x128xf32>
    %114 = vector.extract_strided_slice %99 {offsets = [0, 384], sizes = [8, 128], strides = [1, 1]} : vector<8x512xf32> to vector<8x128xf32>
    %115 = arith.negf %114 : vector<8x128xf32>
    %116 = math.exp %115 : vector<8x128xf32>
    %cst_24 = arith.constant 1.000000e+00 : f32
    %117 = vector.broadcast %cst_24 : f32 to vector<8x128xf32>
    %118 = arith.addf %117, %116 : vector<8x128xf32>
    %119 = arith.divf %117, %118 : vector<8x128xf32>
    %120 = arith.mulf %111, %93 : vector<8x128xf32>
    %121 = arith.mulf %105, %113 : vector<8x128xf32>
    %122 = arith.addf %120, %121 : vector<8x128xf32>
    %123 = math.tanh %122 : vector<8x128xf32>
    %124 = arith.mulf %119, %123 : vector<8x128xf32>
    %125 = arith.truncf %124 : vector<8x128xf32> to vector<8x128xbf16>
    %cst_25 = arith.constant dense<0.000000e+00> : vector<8x512xf32>
    %126 = tpu.matmul %125, %2, %cst_25 {dimension_numbers = #tpu.dot_dimension_numbers<[1], [0], [0], [1], [0, 0, 1, 1], [], []>} : vector<8x128xbf16>, vector<128x512xbf16>, vector<8x512xf32> -> vector<8x512xf32>
    %127 = vector.extract_strided_slice %6 {offsets = [32, 0], sizes = [8, 512], strides = [1, 1]} : vector<64x512xf32> to vector<8x512xf32>
    %128 = arith.addf %126, %127 : vector<8x512xf32>
    %129 = vector.extract_strided_slice %128 {offsets = [0, 0], sizes = [8, 128], strides = [1, 1]} : vector<8x512xf32> to vector<8x128xf32>
    %130 = arith.negf %129 : vector<8x128xf32>
    %131 = math.exp %130 : vector<8x128xf32>
    %cst_26 = arith.constant 1.000000e+00 : f32
    %132 = vector.broadcast %cst_26 : f32 to vector<8x128xf32>
    %133 = arith.addf %132, %131 : vector<8x128xf32>
    %134 = arith.divf %132, %133 : vector<8x128xf32>
    %135 = vector.extract_strided_slice %128 {offsets = [0, 128], sizes = [8, 128], strides = [1, 1]} : vector<8x512xf32> to vector<8x128xf32>
    %136 = arith.negf %135 : vector<8x128xf32>
    %137 = math.exp %136 : vector<8x128xf32>
    %cst_27 = arith.constant 1.000000e+00 : f32
    %138 = vector.broadcast %cst_27 : f32 to vector<8x128xf32>
    %139 = arith.addf %138, %137 : vector<8x128xf32>
    %140 = arith.divf %138, %139 : vector<8x128xf32>
    %141 = vector.extract_strided_slice %128 {offsets = [0, 256], sizes = [8, 128], strides = [1, 1]} : vector<8x512xf32> to vector<8x128xf32>
    %142 = math.tanh %141 : vector<8x128xf32>
    %143 = vector.extract_strided_slice %128 {offsets = [0, 384], sizes = [8, 128], strides = [1, 1]} : vector<8x512xf32> to vector<8x128xf32>
    %144 = arith.negf %143 : vector<8x128xf32>
    %145 = math.exp %144 : vector<8x128xf32>
    %cst_28 = arith.constant 1.000000e+00 : f32
    %146 = vector.broadcast %cst_28 : f32 to vector<8x128xf32>
    %147 = arith.addf %146, %145 : vector<8x128xf32>
    %148 = arith.divf %146, %147 : vector<8x128xf32>
    %149 = arith.mulf %140, %122 : vector<8x128xf32>
    %150 = arith.mulf %134, %142 : vector<8x128xf32>
    %151 = arith.addf %149, %150 : vector<8x128xf32>
    %152 = math.tanh %151 : vector<8x128xf32>
    %153 = arith.mulf %148, %152 : vector<8x128xf32>
    %154 = arith.truncf %153 : vector<8x128xf32> to vector<8x128xbf16>
    %cst_29 = arith.constant dense<0.000000e+00> : vector<8x512xf32>
    %155 = tpu.matmul %154, %2, %cst_29 {dimension_numbers = #tpu.dot_dimension_numbers<[1], [0], [0], [1], [0, 0, 1, 1], [], []>} : vector<8x128xbf16>, vector<128x512xbf16>, vector<8x512xf32> -> vector<8x512xf32>
    %156 = vector.extract_strided_slice %6 {offsets = [40, 0], sizes = [8, 512], strides = [1, 1]} : vector<64x512xf32> to vector<8x512xf32>
    %157 = arith.addf %155, %156 : vector<8x512xf32>
    %158 = vector.extract_strided_slice %157 {offsets = [0, 0], sizes = [8, 128], strides = [1, 1]} : vector<8x512xf32> to vector<8x128xf32>
    %159 = arith.negf %158 : vector<8x128xf32>
    %160 = math.exp %159 : vector<8x128xf32>
    %cst_30 = arith.constant 1.000000e+00 : f32
    %161 = vector.broadcast %cst_30 : f32 to vector<8x128xf32>
    %162 = arith.addf %161, %160 : vector<8x128xf32>
    %163 = arith.divf %161, %162 : vector<8x128xf32>
    %164 = vector.extract_strided_slice %157 {offsets = [0, 128], sizes = [8, 128], strides = [1, 1]} : vector<8x512xf32> to vector<8x128xf32>
    %165 = arith.negf %164 : vector<8x128xf32>
    %166 = math.exp %165 : vector<8x128xf32>
    %cst_31 = arith.constant 1.000000e+00 : f32
    %167 = vector.broadcast %cst_31 : f32 to vector<8x128xf32>
    %168 = arith.addf %167, %166 : vector<8x128xf32>
    %169 = arith.divf %167, %168 : vector<8x128xf32>
    %170 = vector.extract_strided_slice %157 {offsets = [0, 256], sizes = [8, 128], strides = [1, 1]} : vector<8x512xf32> to vector<8x128xf32>
    %171 = math.tanh %170 : vector<8x128xf32>
    %172 = vector.extract_strided_slice %157 {offsets = [0, 384], sizes = [8, 128], strides = [1, 1]} : vector<8x512xf32> to vector<8x128xf32>
    %173 = arith.negf %172 : vector<8x128xf32>
    %174 = math.exp %173 : vector<8x128xf32>
    %cst_32 = arith.constant 1.000000e+00 : f32
    %175 = vector.broadcast %cst_32 : f32 to vector<8x128xf32>
    %176 = arith.addf %175, %174 : vector<8x128xf32>
    %177 = arith.divf %175, %176 : vector<8x128xf32>
    %178 = arith.mulf %169, %151 : vector<8x128xf32>
    %179 = arith.mulf %163, %171 : vector<8x128xf32>
    %180 = arith.addf %178, %179 : vector<8x128xf32>
    %181 = math.tanh %180 : vector<8x128xf32>
    %182 = arith.mulf %177, %181 : vector<8x128xf32>
    %183 = arith.truncf %182 : vector<8x128xf32> to vector<8x128xbf16>
    %cst_33 = arith.constant dense<0.000000e+00> : vector<8x512xf32>
    %184 = tpu.matmul %183, %2, %cst_33 {dimension_numbers = #tpu.dot_dimension_numbers<[1], [0], [0], [1], [0, 0, 1, 1], [], []>} : vector<8x128xbf16>, vector<128x512xbf16>, vector<8x512xf32> -> vector<8x512xf32>
    %185 = vector.extract_strided_slice %6 {offsets = [48, 0], sizes = [8, 512], strides = [1, 1]} : vector<64x512xf32> to vector<8x512xf32>
    %186 = arith.addf %184, %185 : vector<8x512xf32>
    %187 = vector.extract_strided_slice %186 {offsets = [0, 0], sizes = [8, 128], strides = [1, 1]} : vector<8x512xf32> to vector<8x128xf32>
    %188 = arith.negf %187 : vector<8x128xf32>
    %189 = math.exp %188 : vector<8x128xf32>
    %cst_34 = arith.constant 1.000000e+00 : f32
    %190 = vector.broadcast %cst_34 : f32 to vector<8x128xf32>
    %191 = arith.addf %190, %189 : vector<8x128xf32>
    %192 = arith.divf %190, %191 : vector<8x128xf32>
    %193 = vector.extract_strided_slice %186 {offsets = [0, 128], sizes = [8, 128], strides = [1, 1]} : vector<8x512xf32> to vector<8x128xf32>
    %194 = arith.negf %193 : vector<8x128xf32>
    %195 = math.exp %194 : vector<8x128xf32>
    %cst_35 = arith.constant 1.000000e+00 : f32
    %196 = vector.broadcast %cst_35 : f32 to vector<8x128xf32>
    %197 = arith.addf %196, %195 : vector<8x128xf32>
    %198 = arith.divf %196, %197 : vector<8x128xf32>
    %199 = vector.extract_strided_slice %186 {offsets = [0, 256], sizes = [8, 128], strides = [1, 1]} : vector<8x512xf32> to vector<8x128xf32>
    %200 = math.tanh %199 : vector<8x128xf32>
    %201 = vector.extract_strided_slice %186 {offsets = [0, 384], sizes = [8, 128], strides = [1, 1]} : vector<8x512xf32> to vector<8x128xf32>
    %202 = arith.negf %201 : vector<8x128xf32>
    %203 = math.exp %202 : vector<8x128xf32>
    %cst_36 = arith.constant 1.000000e+00 : f32
    %204 = vector.broadcast %cst_36 : f32 to vector<8x128xf32>
    %205 = arith.addf %204, %203 : vector<8x128xf32>
    %206 = arith.divf %204, %205 : vector<8x128xf32>
    %207 = arith.mulf %198, %180 : vector<8x128xf32>
    %208 = arith.mulf %192, %200 : vector<8x128xf32>
    %209 = arith.addf %207, %208 : vector<8x128xf32>
    %210 = math.tanh %209 : vector<8x128xf32>
    %211 = arith.mulf %206, %210 : vector<8x128xf32>
    %212 = arith.truncf %211 : vector<8x128xf32> to vector<8x128xbf16>
    %cst_37 = arith.constant dense<0.000000e+00> : vector<8x512xf32>
    %213 = tpu.matmul %212, %2, %cst_37 {dimension_numbers = #tpu.dot_dimension_numbers<[1], [0], [0], [1], [0, 0, 1, 1], [], []>} : vector<8x128xbf16>, vector<128x512xbf16>, vector<8x512xf32> -> vector<8x512xf32>
    %214 = vector.extract_strided_slice %6 {offsets = [56, 0], sizes = [8, 512], strides = [1, 1]} : vector<64x512xf32> to vector<8x512xf32>
    %215 = arith.addf %213, %214 : vector<8x512xf32>
    %216 = vector.extract_strided_slice %215 {offsets = [0, 0], sizes = [8, 128], strides = [1, 1]} : vector<8x512xf32> to vector<8x128xf32>
    %217 = arith.negf %216 : vector<8x128xf32>
    %218 = math.exp %217 : vector<8x128xf32>
    %cst_38 = arith.constant 1.000000e+00 : f32
    %219 = vector.broadcast %cst_38 : f32 to vector<8x128xf32>
    %220 = arith.addf %219, %218 : vector<8x128xf32>
    %221 = arith.divf %219, %220 : vector<8x128xf32>
    %222 = vector.extract_strided_slice %215 {offsets = [0, 128], sizes = [8, 128], strides = [1, 1]} : vector<8x512xf32> to vector<8x128xf32>
    %223 = arith.negf %222 : vector<8x128xf32>
    %224 = math.exp %223 : vector<8x128xf32>
    %cst_39 = arith.constant 1.000000e+00 : f32
    %225 = vector.broadcast %cst_39 : f32 to vector<8x128xf32>
    %226 = arith.addf %225, %224 : vector<8x128xf32>
    %227 = arith.divf %225, %226 : vector<8x128xf32>
    %228 = vector.extract_strided_slice %215 {offsets = [0, 256], sizes = [8, 128], strides = [1, 1]} : vector<8x512xf32> to vector<8x128xf32>
    %229 = math.tanh %228 : vector<8x128xf32>
    %230 = vector.extract_strided_slice %215 {offsets = [0, 384], sizes = [8, 128], strides = [1, 1]} : vector<8x512xf32> to vector<8x128xf32>
    %231 = arith.negf %230 : vector<8x128xf32>
    %232 = math.exp %231 : vector<8x128xf32>
    %cst_40 = arith.constant 1.000000e+00 : f32
    %233 = vector.broadcast %cst_40 : f32 to vector<8x128xf32>
    %234 = arith.addf %233, %232 : vector<8x128xf32>
    %235 = arith.divf %233, %234 : vector<8x128xf32>
    %236 = arith.mulf %227, %209 : vector<8x128xf32>
    %237 = arith.mulf %221, %229 : vector<8x128xf32>
    %238 = arith.addf %236, %237 : vector<8x128xf32>
    %239 = math.tanh %238 : vector<8x128xf32>
    %240 = arith.mulf %235, %239 : vector<8x128xf32>
    %241 = tpu.concatenate %37, %66, %95, %124, %153, %182, %211, %240 in 0 : vector<8x128xf32>, vector<8x128xf32>, vector<8x128xf32>, vector<8x128xf32>, vector<8x128xf32>, vector<8x128xf32>, vector<8x128xf32>, vector<8x128xf32> -> vector<64x128xf32>
    %242 = arith.truncf %241 : vector<64x128xf32> to vector<64x128xbf16>
    %c0_41 = arith.constant 0 : index
    %c0_42 = arith.constant 0 : index
    %243 = vector.load %arg4[%c0_41, %c0_42] : memref<128x512xbf16, #tpu.memory_space<vmem>>, vector<128x512xbf16>
    %c0_43 = arith.constant 0 : index
    %c0_44 = arith.constant 0 : index
    %244 = vector.load %arg5[%c0_43, %c0_44] : memref<128x512xbf16, #tpu.memory_space<vmem>>, vector<128x512xbf16>
    %c0_45 = arith.constant 0 : index
    %c0_46 = arith.constant 0 : index
    %245 = vector.load %arg6[%c0_45, %c0_46] : memref<1x512xf32, #tpu.memory_space<vmem>>, vector<1x512xf32>
    %cst_47 = arith.constant dense<0.000000e+00> : vector<64x512xf32>
    %246 = tpu.matmul %242, %243, %cst_47 {dimension_numbers = #tpu.dot_dimension_numbers<[1], [0], [0], [1], [0, 0, 1, 1], [], []>} : vector<64x128xbf16>, vector<128x512xbf16>, vector<64x512xf32> -> vector<64x512xf32>
    %247 = vector.broadcast %245 : vector<1x512xf32> to vector<64x512xf32>
    %248 = arith.addf %246, %247 : vector<64x512xf32>
    %cst_48 = arith.constant 0.000000e+00 : f32
    %249 = vector.broadcast %cst_48 : f32 to vector<8x128xf32>
    %cst_49 = arith.constant 0.000000e+00 : f32
    %250 = vector.broadcast %cst_49 : f32 to vector<8x128xf32>
    %251 = arith.truncf %249 : vector<8x128xf32> to vector<8x128xbf16>
    %cst_50 = arith.constant dense<0.000000e+00> : vector<8x512xf32>
    %252 = tpu.matmul %251, %244, %cst_50 {dimension_numbers = #tpu.dot_dimension_numbers<[1], [0], [0], [1], [0, 0, 1, 1], [], []>} : vector<8x128xbf16>, vector<128x512xbf16>, vector<8x512xf32> -> vector<8x512xf32>
    %253 = vector.extract_strided_slice %248 {offsets = [0, 0], sizes = [8, 512], strides = [1, 1]} : vector<64x512xf32> to vector<8x512xf32>
    %254 = arith.addf %252, %253 : vector<8x512xf32>
    %255 = vector.extract_strided_slice %254 {offsets = [0, 0], sizes = [8, 128], strides = [1, 1]} : vector<8x512xf32> to vector<8x128xf32>
    %256 = arith.negf %255 : vector<8x128xf32>
    %257 = math.exp %256 : vector<8x128xf32>
    %cst_51 = arith.constant 1.000000e+00 : f32
    %258 = vector.broadcast %cst_51 : f32 to vector<8x128xf32>
    %259 = arith.addf %258, %257 : vector<8x128xf32>
    %260 = arith.divf %258, %259 : vector<8x128xf32>
    %261 = vector.extract_strided_slice %254 {offsets = [0, 128], sizes = [8, 128], strides = [1, 1]} : vector<8x512xf32> to vector<8x128xf32>
    %262 = arith.negf %261 : vector<8x128xf32>
    %263 = math.exp %262 : vector<8x128xf32>
    %cst_52 = arith.constant 1.000000e+00 : f32
    %264 = vector.broadcast %cst_52 : f32 to vector<8x128xf32>
    %265 = arith.addf %264, %263 : vector<8x128xf32>
    %266 = arith.divf %264, %265 : vector<8x128xf32>
    %267 = vector.extract_strided_slice %254 {offsets = [0, 256], sizes = [8, 128], strides = [1, 1]} : vector<8x512xf32> to vector<8x128xf32>
    %268 = math.tanh %267 : vector<8x128xf32>
    %269 = vector.extract_strided_slice %254 {offsets = [0, 384], sizes = [8, 128], strides = [1, 1]} : vector<8x512xf32> to vector<8x128xf32>
    %270 = arith.negf %269 : vector<8x128xf32>
    %271 = math.exp %270 : vector<8x128xf32>
    %cst_53 = arith.constant 1.000000e+00 : f32
    %272 = vector.broadcast %cst_53 : f32 to vector<8x128xf32>
    %273 = arith.addf %272, %271 : vector<8x128xf32>
    %274 = arith.divf %272, %273 : vector<8x128xf32>
    %275 = arith.mulf %266, %250 : vector<8x128xf32>
    %276 = arith.mulf %260, %268 : vector<8x128xf32>
    %277 = arith.addf %275, %276 : vector<8x128xf32>
    %278 = math.tanh %277 : vector<8x128xf32>
    %279 = arith.mulf %274, %278 : vector<8x128xf32>
    %280 = arith.truncf %279 : vector<8x128xf32> to vector<8x128xbf16>
    %cst_54 = arith.constant dense<0.000000e+00> : vector<8x512xf32>
    %281 = tpu.matmul %280, %244, %cst_54 {dimension_numbers = #tpu.dot_dimension_numbers<[1], [0], [0], [1], [0, 0, 1, 1], [], []>} : vector<8x128xbf16>, vector<128x512xbf16>, vector<8x512xf32> -> vector<8x512xf32>
    %282 = vector.extract_strided_slice %248 {offsets = [8, 0], sizes = [8, 512], strides = [1, 1]} : vector<64x512xf32> to vector<8x512xf32>
    %283 = arith.addf %281, %282 : vector<8x512xf32>
    %284 = vector.extract_strided_slice %283 {offsets = [0, 0], sizes = [8, 128], strides = [1, 1]} : vector<8x512xf32> to vector<8x128xf32>
    %285 = arith.negf %284 : vector<8x128xf32>
    %286 = math.exp %285 : vector<8x128xf32>
    %cst_55 = arith.constant 1.000000e+00 : f32
    %287 = vector.broadcast %cst_55 : f32 to vector<8x128xf32>
    %288 = arith.addf %287, %286 : vector<8x128xf32>
    %289 = arith.divf %287, %288 : vector<8x128xf32>
    %290 = vector.extract_strided_slice %283 {offsets = [0, 128], sizes = [8, 128], strides = [1, 1]} : vector<8x512xf32> to vector<8x128xf32>
    %291 = arith.negf %290 : vector<8x128xf32>
    %292 = math.exp %291 : vector<8x128xf32>
    %cst_56 = arith.constant 1.000000e+00 : f32
    %293 = vector.broadcast %cst_56 : f32 to vector<8x128xf32>
    %294 = arith.addf %293, %292 : vector<8x128xf32>
    %295 = arith.divf %293, %294 : vector<8x128xf32>
    %296 = vector.extract_strided_slice %283 {offsets = [0, 256], sizes = [8, 128], strides = [1, 1]} : vector<8x512xf32> to vector<8x128xf32>
    %297 = math.tanh %296 : vector<8x128xf32>
    %298 = vector.extract_strided_slice %283 {offsets = [0, 384], sizes = [8, 128], strides = [1, 1]} : vector<8x512xf32> to vector<8x128xf32>
    %299 = arith.negf %298 : vector<8x128xf32>
    %300 = math.exp %299 : vector<8x128xf32>
    %cst_57 = arith.constant 1.000000e+00 : f32
    %301 = vector.broadcast %cst_57 : f32 to vector<8x128xf32>
    %302 = arith.addf %301, %300 : vector<8x128xf32>
    %303 = arith.divf %301, %302 : vector<8x128xf32>
    %304 = arith.mulf %295, %277 : vector<8x128xf32>
    %305 = arith.mulf %289, %297 : vector<8x128xf32>
    %306 = arith.addf %304, %305 : vector<8x128xf32>
    %307 = math.tanh %306 : vector<8x128xf32>
    %308 = arith.mulf %303, %307 : vector<8x128xf32>
    %309 = arith.truncf %308 : vector<8x128xf32> to vector<8x128xbf16>
    %cst_58 = arith.constant dense<0.000000e+00> : vector<8x512xf32>
    %310 = tpu.matmul %309, %244, %cst_58 {dimension_numbers = #tpu.dot_dimension_numbers<[1], [0], [0], [1], [0, 0, 1, 1], [], []>} : vector<8x128xbf16>, vector<128x512xbf16>, vector<8x512xf32> -> vector<8x512xf32>
    %311 = vector.extract_strided_slice %248 {offsets = [16, 0], sizes = [8, 512], strides = [1, 1]} : vector<64x512xf32> to vector<8x512xf32>
    %312 = arith.addf %310, %311 : vector<8x512xf32>
    %313 = vector.extract_strided_slice %312 {offsets = [0, 0], sizes = [8, 128], strides = [1, 1]} : vector<8x512xf32> to vector<8x128xf32>
    %314 = arith.negf %313 : vector<8x128xf32>
    %315 = math.exp %314 : vector<8x128xf32>
    %cst_59 = arith.constant 1.000000e+00 : f32
    %316 = vector.broadcast %cst_59 : f32 to vector<8x128xf32>
    %317 = arith.addf %316, %315 : vector<8x128xf32>
    %318 = arith.divf %316, %317 : vector<8x128xf32>
    %319 = vector.extract_strided_slice %312 {offsets = [0, 128], sizes = [8, 128], strides = [1, 1]} : vector<8x512xf32> to vector<8x128xf32>
    %320 = arith.negf %319 : vector<8x128xf32>
    %321 = math.exp %320 : vector<8x128xf32>
    %cst_60 = arith.constant 1.000000e+00 : f32
    %322 = vector.broadcast %cst_60 : f32 to vector<8x128xf32>
    %323 = arith.addf %322, %321 : vector<8x128xf32>
    %324 = arith.divf %322, %323 : vector<8x128xf32>
    %325 = vector.extract_strided_slice %312 {offsets = [0, 256], sizes = [8, 128], strides = [1, 1]} : vector<8x512xf32> to vector<8x128xf32>
    %326 = math.tanh %325 : vector<8x128xf32>
    %327 = vector.extract_strided_slice %312 {offsets = [0, 384], sizes = [8, 128], strides = [1, 1]} : vector<8x512xf32> to vector<8x128xf32>
    %328 = arith.negf %327 : vector<8x128xf32>
    %329 = math.exp %328 : vector<8x128xf32>
    %cst_61 = arith.constant 1.000000e+00 : f32
    %330 = vector.broadcast %cst_61 : f32 to vector<8x128xf32>
    %331 = arith.addf %330, %329 : vector<8x128xf32>
    %332 = arith.divf %330, %331 : vector<8x128xf32>
    %333 = arith.mulf %324, %306 : vector<8x128xf32>
    %334 = arith.mulf %318, %326 : vector<8x128xf32>
    %335 = arith.addf %333, %334 : vector<8x128xf32>
    %336 = math.tanh %335 : vector<8x128xf32>
    %337 = arith.mulf %332, %336 : vector<8x128xf32>
    %338 = arith.truncf %337 : vector<8x128xf32> to vector<8x128xbf16>
    %cst_62 = arith.constant dense<0.000000e+00> : vector<8x512xf32>
    %339 = tpu.matmul %338, %244, %cst_62 {dimension_numbers = #tpu.dot_dimension_numbers<[1], [0], [0], [1], [0, 0, 1, 1], [], []>} : vector<8x128xbf16>, vector<128x512xbf16>, vector<8x512xf32> -> vector<8x512xf32>
    %340 = vector.extract_strided_slice %248 {offsets = [24, 0], sizes = [8, 512], strides = [1, 1]} : vector<64x512xf32> to vector<8x512xf32>
    %341 = arith.addf %339, %340 : vector<8x512xf32>
    %342 = vector.extract_strided_slice %341 {offsets = [0, 0], sizes = [8, 128], strides = [1, 1]} : vector<8x512xf32> to vector<8x128xf32>
    %343 = arith.negf %342 : vector<8x128xf32>
    %344 = math.exp %343 : vector<8x128xf32>
    %cst_63 = arith.constant 1.000000e+00 : f32
    %345 = vector.broadcast %cst_63 : f32 to vector<8x128xf32>
    %346 = arith.addf %345, %344 : vector<8x128xf32>
    %347 = arith.divf %345, %346 : vector<8x128xf32>
    %348 = vector.extract_strided_slice %341 {offsets = [0, 128], sizes = [8, 128], strides = [1, 1]} : vector<8x512xf32> to vector<8x128xf32>
    %349 = arith.negf %348 : vector<8x128xf32>
    %350 = math.exp %349 : vector<8x128xf32>
    %cst_64 = arith.constant 1.000000e+00 : f32
    %351 = vector.broadcast %cst_64 : f32 to vector<8x128xf32>
    %352 = arith.addf %351, %350 : vector<8x128xf32>
    %353 = arith.divf %351, %352 : vector<8x128xf32>
    %354 = vector.extract_strided_slice %341 {offsets = [0, 256], sizes = [8, 128], strides = [1, 1]} : vector<8x512xf32> to vector<8x128xf32>
    %355 = math.tanh %354 : vector<8x128xf32>
    %356 = vector.extract_strided_slice %341 {offsets = [0, 384], sizes = [8, 128], strides = [1, 1]} : vector<8x512xf32> to vector<8x128xf32>
    %357 = arith.negf %356 : vector<8x128xf32>
    %358 = math.exp %357 : vector<8x128xf32>
    %cst_65 = arith.constant 1.000000e+00 : f32
    %359 = vector.broadcast %cst_65 : f32 to vector<8x128xf32>
    %360 = arith.addf %359, %358 : vector<8x128xf32>
    %361 = arith.divf %359, %360 : vector<8x128xf32>
    %362 = arith.mulf %353, %335 : vector<8x128xf32>
    %363 = arith.mulf %347, %355 : vector<8x128xf32>
    %364 = arith.addf %362, %363 : vector<8x128xf32>
    %365 = math.tanh %364 : vector<8x128xf32>
    %366 = arith.mulf %361, %365 : vector<8x128xf32>
    %367 = arith.truncf %366 : vector<8x128xf32> to vector<8x128xbf16>
    %cst_66 = arith.constant dense<0.000000e+00> : vector<8x512xf32>
    %368 = tpu.matmul %367, %244, %cst_66 {dimension_numbers = #tpu.dot_dimension_numbers<[1], [0], [0], [1], [0, 0, 1, 1], [], []>} : vector<8x128xbf16>, vector<128x512xbf16>, vector<8x512xf32> -> vector<8x512xf32>
    %369 = vector.extract_strided_slice %248 {offsets = [32, 0], sizes = [8, 512], strides = [1, 1]} : vector<64x512xf32> to vector<8x512xf32>
    %370 = arith.addf %368, %369 : vector<8x512xf32>
    %371 = vector.extract_strided_slice %370 {offsets = [0, 0], sizes = [8, 128], strides = [1, 1]} : vector<8x512xf32> to vector<8x128xf32>
    %372 = arith.negf %371 : vector<8x128xf32>
    %373 = math.exp %372 : vector<8x128xf32>
    %cst_67 = arith.constant 1.000000e+00 : f32
    %374 = vector.broadcast %cst_67 : f32 to vector<8x128xf32>
    %375 = arith.addf %374, %373 : vector<8x128xf32>
    %376 = arith.divf %374, %375 : vector<8x128xf32>
    %377 = vector.extract_strided_slice %370 {offsets = [0, 128], sizes = [8, 128], strides = [1, 1]} : vector<8x512xf32> to vector<8x128xf32>
    %378 = arith.negf %377 : vector<8x128xf32>
    %379 = math.exp %378 : vector<8x128xf32>
    %cst_68 = arith.constant 1.000000e+00 : f32
    %380 = vector.broadcast %cst_68 : f32 to vector<8x128xf32>
    %381 = arith.addf %380, %379 : vector<8x128xf32>
    %382 = arith.divf %380, %381 : vector<8x128xf32>
    %383 = vector.extract_strided_slice %370 {offsets = [0, 256], sizes = [8, 128], strides = [1, 1]} : vector<8x512xf32> to vector<8x128xf32>
    %384 = math.tanh %383 : vector<8x128xf32>
    %385 = vector.extract_strided_slice %370 {offsets = [0, 384], sizes = [8, 128], strides = [1, 1]} : vector<8x512xf32> to vector<8x128xf32>
    %386 = arith.negf %385 : vector<8x128xf32>
    %387 = math.exp %386 : vector<8x128xf32>
    %cst_69 = arith.constant 1.000000e+00 : f32
    %388 = vector.broadcast %cst_69 : f32 to vector<8x128xf32>
    %389 = arith.addf %388, %387 : vector<8x128xf32>
    %390 = arith.divf %388, %389 : vector<8x128xf32>
    %391 = arith.mulf %382, %364 : vector<8x128xf32>
    %392 = arith.mulf %376, %384 : vector<8x128xf32>
    %393 = arith.addf %391, %392 : vector<8x128xf32>
    %394 = math.tanh %393 : vector<8x128xf32>
    %395 = arith.mulf %390, %394 : vector<8x128xf32>
    %396 = arith.truncf %395 : vector<8x128xf32> to vector<8x128xbf16>
    %cst_70 = arith.constant dense<0.000000e+00> : vector<8x512xf32>
    %397 = tpu.matmul %396, %244, %cst_70 {dimension_numbers = #tpu.dot_dimension_numbers<[1], [0], [0], [1], [0, 0, 1, 1], [], []>} : vector<8x128xbf16>, vector<128x512xbf16>, vector<8x512xf32> -> vector<8x512xf32>
    %398 = vector.extract_strided_slice %248 {offsets = [40, 0], sizes = [8, 512], strides = [1, 1]} : vector<64x512xf32> to vector<8x512xf32>
    %399 = arith.addf %397, %398 : vector<8x512xf32>
    %400 = vector.extract_strided_slice %399 {offsets = [0, 0], sizes = [8, 128], strides = [1, 1]} : vector<8x512xf32> to vector<8x128xf32>
    %401 = arith.negf %400 : vector<8x128xf32>
    %402 = math.exp %401 : vector<8x128xf32>
    %cst_71 = arith.constant 1.000000e+00 : f32
    %403 = vector.broadcast %cst_71 : f32 to vector<8x128xf32>
    %404 = arith.addf %403, %402 : vector<8x128xf32>
    %405 = arith.divf %403, %404 : vector<8x128xf32>
    %406 = vector.extract_strided_slice %399 {offsets = [0, 128], sizes = [8, 128], strides = [1, 1]} : vector<8x512xf32> to vector<8x128xf32>
    %407 = arith.negf %406 : vector<8x128xf32>
    %408 = math.exp %407 : vector<8x128xf32>
    %cst_72 = arith.constant 1.000000e+00 : f32
    %409 = vector.broadcast %cst_72 : f32 to vector<8x128xf32>
    %410 = arith.addf %409, %408 : vector<8x128xf32>
    %411 = arith.divf %409, %410 : vector<8x128xf32>
    %412 = vector.extract_strided_slice %399 {offsets = [0, 256], sizes = [8, 128], strides = [1, 1]} : vector<8x512xf32> to vector<8x128xf32>
    %413 = math.tanh %412 : vector<8x128xf32>
    %414 = vector.extract_strided_slice %399 {offsets = [0, 384], sizes = [8, 128], strides = [1, 1]} : vector<8x512xf32> to vector<8x128xf32>
    %415 = arith.negf %414 : vector<8x128xf32>
    %416 = math.exp %415 : vector<8x128xf32>
    %cst_73 = arith.constant 1.000000e+00 : f32
    %417 = vector.broadcast %cst_73 : f32 to vector<8x128xf32>
    %418 = arith.addf %417, %416 : vector<8x128xf32>
    %419 = arith.divf %417, %418 : vector<8x128xf32>
    %420 = arith.mulf %411, %393 : vector<8x128xf32>
    %421 = arith.mulf %405, %413 : vector<8x128xf32>
    %422 = arith.addf %420, %421 : vector<8x128xf32>
    %423 = math.tanh %422 : vector<8x128xf32>
    %424 = arith.mulf %419, %423 : vector<8x128xf32>
    %425 = arith.truncf %424 : vector<8x128xf32> to vector<8x128xbf16>
    %cst_74 = arith.constant dense<0.000000e+00> : vector<8x512xf32>
    %426 = tpu.matmul %425, %244, %cst_74 {dimension_numbers = #tpu.dot_dimension_numbers<[1], [0], [0], [1], [0, 0, 1, 1], [], []>} : vector<8x128xbf16>, vector<128x512xbf16>, vector<8x512xf32> -> vector<8x512xf32>
    %427 = vector.extract_strided_slice %248 {offsets = [48, 0], sizes = [8, 512], strides = [1, 1]} : vector<64x512xf32> to vector<8x512xf32>
    %428 = arith.addf %426, %427 : vector<8x512xf32>
    %429 = vector.extract_strided_slice %428 {offsets = [0, 0], sizes = [8, 128], strides = [1, 1]} : vector<8x512xf32> to vector<8x128xf32>
    %430 = arith.negf %429 : vector<8x128xf32>
    %431 = math.exp %430 : vector<8x128xf32>
    %cst_75 = arith.constant 1.000000e+00 : f32
    %432 = vector.broadcast %cst_75 : f32 to vector<8x128xf32>
    %433 = arith.addf %432, %431 : vector<8x128xf32>
    %434 = arith.divf %432, %433 : vector<8x128xf32>
    %435 = vector.extract_strided_slice %428 {offsets = [0, 128], sizes = [8, 128], strides = [1, 1]} : vector<8x512xf32> to vector<8x128xf32>
    %436 = arith.negf %435 : vector<8x128xf32>
    %437 = math.exp %436 : vector<8x128xf32>
    %cst_76 = arith.constant 1.000000e+00 : f32
    %438 = vector.broadcast %cst_76 : f32 to vector<8x128xf32>
    %439 = arith.addf %438, %437 : vector<8x128xf32>
    %440 = arith.divf %438, %439 : vector<8x128xf32>
    %441 = vector.extract_strided_slice %428 {offsets = [0, 256], sizes = [8, 128], strides = [1, 1]} : vector<8x512xf32> to vector<8x128xf32>
    %442 = math.tanh %441 : vector<8x128xf32>
    %443 = vector.extract_strided_slice %428 {offsets = [0, 384], sizes = [8, 128], strides = [1, 1]} : vector<8x512xf32> to vector<8x128xf32>
    %444 = arith.negf %443 : vector<8x128xf32>
    %445 = math.exp %444 : vector<8x128xf32>
    %cst_77 = arith.constant 1.000000e+00 : f32
    %446 = vector.broadcast %cst_77 : f32 to vector<8x128xf32>
    %447 = arith.addf %446, %445 : vector<8x128xf32>
    %448 = arith.divf %446, %447 : vector<8x128xf32>
    %449 = arith.mulf %440, %422 : vector<8x128xf32>
    %450 = arith.mulf %434, %442 : vector<8x128xf32>
    %451 = arith.addf %449, %450 : vector<8x128xf32>
    %452 = math.tanh %451 : vector<8x128xf32>
    %453 = arith.mulf %448, %452 : vector<8x128xf32>
    %454 = arith.truncf %453 : vector<8x128xf32> to vector<8x128xbf16>
    %cst_78 = arith.constant dense<0.000000e+00> : vector<8x512xf32>
    %455 = tpu.matmul %454, %244, %cst_78 {dimension_numbers = #tpu.dot_dimension_numbers<[1], [0], [0], [1], [0, 0, 1, 1], [], []>} : vector<8x128xbf16>, vector<128x512xbf16>, vector<8x512xf32> -> vector<8x512xf32>
    %456 = vector.extract_strided_slice %248 {offsets = [56, 0], sizes = [8, 512], strides = [1, 1]} : vector<64x512xf32> to vector<8x512xf32>
    %457 = arith.addf %455, %456 : vector<8x512xf32>
    %458 = vector.extract_strided_slice %457 {offsets = [0, 0], sizes = [8, 128], strides = [1, 1]} : vector<8x512xf32> to vector<8x128xf32>
    %459 = arith.negf %458 : vector<8x128xf32>
    %460 = math.exp %459 : vector<8x128xf32>
    %cst_79 = arith.constant 1.000000e+00 : f32
    %461 = vector.broadcast %cst_79 : f32 to vector<8x128xf32>
    %462 = arith.addf %461, %460 : vector<8x128xf32>
    %463 = arith.divf %461, %462 : vector<8x128xf32>
    %464 = vector.extract_strided_slice %457 {offsets = [0, 128], sizes = [8, 128], strides = [1, 1]} : vector<8x512xf32> to vector<8x128xf32>
    %465 = arith.negf %464 : vector<8x128xf32>
    %466 = math.exp %465 : vector<8x128xf32>
    %cst_80 = arith.constant 1.000000e+00 : f32
    %467 = vector.broadcast %cst_80 : f32 to vector<8x128xf32>
    %468 = arith.addf %467, %466 : vector<8x128xf32>
    %469 = arith.divf %467, %468 : vector<8x128xf32>
    %470 = vector.extract_strided_slice %457 {offsets = [0, 256], sizes = [8, 128], strides = [1, 1]} : vector<8x512xf32> to vector<8x128xf32>
    %471 = math.tanh %470 : vector<8x128xf32>
    %472 = vector.extract_strided_slice %457 {offsets = [0, 384], sizes = [8, 128], strides = [1, 1]} : vector<8x512xf32> to vector<8x128xf32>
    %473 = arith.negf %472 : vector<8x128xf32>
    %474 = math.exp %473 : vector<8x128xf32>
    %cst_81 = arith.constant 1.000000e+00 : f32
    %475 = vector.broadcast %cst_81 : f32 to vector<8x128xf32>
    %476 = arith.addf %475, %474 : vector<8x128xf32>
    %477 = arith.divf %475, %476 : vector<8x128xf32>
    %478 = arith.mulf %469, %451 : vector<8x128xf32>
    %479 = arith.mulf %463, %471 : vector<8x128xf32>
    %480 = arith.addf %478, %479 : vector<8x128xf32>
    %481 = math.tanh %480 : vector<8x128xf32>
    %482 = arith.mulf %477, %481 : vector<8x128xf32>
    %cst_82 = arith.constant 0.000000e+00 : f32
    %483 = vector.broadcast %cst_82 : f32 to vector<8x1xf32>
    %cst_83 = arith.constant 0.000000e+00 : f32
    %484 = vector.broadcast %cst_83 : f32 to vector<8x1xf32>
    %cst_84 = arith.constant 0.000000e+00 : f32
    %485 = vector.broadcast %cst_84 : f32 to vector<8x1xf32>
    %cst_85 = arith.constant 0.000000e+00 : f32
    %486 = vector.broadcast %cst_85 : f32 to vector<8x1xf32>
    %cst_86 = arith.constant 0.000000e+00 : f32
    %487 = vector.broadcast %cst_86 : f32 to vector<8x1xf32>
    %cst_87 = arith.constant 0.000000e+00 : f32
    %488 = vector.broadcast %cst_87 : f32 to vector<8x1xf32>
    %cst_88 = arith.constant 0.000000e+00 : f32
    %489 = vector.broadcast %cst_88 : f32 to vector<8x1xf32>
    %cst_89 = arith.constant 0.000000e+00 : f32
    %490 = vector.broadcast %cst_89 : f32 to vector<8x1xf32>
    %cst_90 = arith.constant 0.000000e+00 : f32
    %491 = vector.broadcast %cst_90 : f32 to vector<8x128xf32>
    %c0_91 = arith.constant 0 : index
    %c0_92 = arith.constant 0 : index
    %492 = vector.load %arg7[%c0_91, %c0_92] : memref<3x32xf32, #tpu.memory_space<vmem>>, vector<1x32xf32>
    %c0_93 = arith.constant 0 : index
    %c0_94 = arith.constant 0 : index
    %493 = vector.load %arg8[%c0_93, %c0_94] : memref<3x1xf32, #tpu.memory_space<vmem>>, vector<1x1xf32>
    %494 = vector.extract_strided_slice %279 {offsets = [0, 0], sizes = [8, 32], strides = [1, 1]} : vector<8x128xf32> to vector<8x32xf32>
    %495 = vector.extract_strided_slice %308 {offsets = [0, 0], sizes = [8, 32], strides = [1, 1]} : vector<8x128xf32> to vector<8x32xf32>
    %496 = vector.extract_strided_slice %337 {offsets = [0, 0], sizes = [8, 32], strides = [1, 1]} : vector<8x128xf32> to vector<8x32xf32>
    %497 = vector.extract_strided_slice %366 {offsets = [0, 0], sizes = [8, 32], strides = [1, 1]} : vector<8x128xf32> to vector<8x32xf32>
    %498 = vector.extract_strided_slice %395 {offsets = [0, 0], sizes = [8, 32], strides = [1, 1]} : vector<8x128xf32> to vector<8x32xf32>
    %499 = vector.extract_strided_slice %424 {offsets = [0, 0], sizes = [8, 32], strides = [1, 1]} : vector<8x128xf32> to vector<8x32xf32>
    %500 = vector.extract_strided_slice %453 {offsets = [0, 0], sizes = [8, 32], strides = [1, 1]} : vector<8x128xf32> to vector<8x32xf32>
    %501 = vector.extract_strided_slice %482 {offsets = [0, 0], sizes = [8, 32], strides = [1, 1]} : vector<8x128xf32> to vector<8x32xf32>
    %502 = vector.broadcast %492 : vector<1x32xf32> to vector<8x32xf32>
    %503 = arith.mulf %494, %502 : vector<8x32xf32>
    %cst_95 = arith.constant dense<0.000000e+00> : vector<8xf32>
    %504 = vector.multi_reduction <add>, %503, %cst_95 [1] : vector<8x32xf32> to vector<8xf32>
    %505 = vector.shape_cast %504 : vector<8xf32> to vector<8x1xf32>
    %506 = vector.broadcast %493 : vector<1x1xf32> to vector<8x1xf32>
    %507 = arith.addf %505, %506 : vector<8x1xf32>
    %508 = vector.broadcast %492 : vector<1x32xf32> to vector<8x32xf32>
    %509 = arith.mulf %495, %508 : vector<8x32xf32>
    %cst_96 = arith.constant dense<0.000000e+00> : vector<8xf32>
    %510 = vector.multi_reduction <add>, %509, %cst_96 [1] : vector<8x32xf32> to vector<8xf32>
    %511 = vector.shape_cast %510 : vector<8xf32> to vector<8x1xf32>
    %512 = vector.broadcast %493 : vector<1x1xf32> to vector<8x1xf32>
    %513 = arith.addf %511, %512 : vector<8x1xf32>
    %514 = vector.broadcast %492 : vector<1x32xf32> to vector<8x32xf32>
    %515 = arith.mulf %496, %514 : vector<8x32xf32>
    %cst_97 = arith.constant dense<0.000000e+00> : vector<8xf32>
    %516 = vector.multi_reduction <add>, %515, %cst_97 [1] : vector<8x32xf32> to vector<8xf32>
    %517 = vector.shape_cast %516 : vector<8xf32> to vector<8x1xf32>
    %518 = vector.broadcast %493 : vector<1x1xf32> to vector<8x1xf32>
    %519 = arith.addf %517, %518 : vector<8x1xf32>
    %520 = vector.broadcast %492 : vector<1x32xf32> to vector<8x32xf32>
    %521 = arith.mulf %497, %520 : vector<8x32xf32>
    %cst_98 = arith.constant dense<0.000000e+00> : vector<8xf32>
    %522 = vector.multi_reduction <add>, %521, %cst_98 [1] : vector<8x32xf32> to vector<8xf32>
    %523 = vector.shape_cast %522 : vector<8xf32> to vector<8x1xf32>
    %524 = vector.broadcast %493 : vector<1x1xf32> to vector<8x1xf32>
    %525 = arith.addf %523, %524 : vector<8x1xf32>
    %526 = vector.broadcast %492 : vector<1x32xf32> to vector<8x32xf32>
    %527 = arith.mulf %498, %526 : vector<8x32xf32>
    %cst_99 = arith.constant dense<0.000000e+00> : vector<8xf32>
    %528 = vector.multi_reduction <add>, %527, %cst_99 [1] : vector<8x32xf32> to vector<8xf32>
    %529 = vector.shape_cast %528 : vector<8xf32> to vector<8x1xf32>
    %530 = vector.broadcast %493 : vector<1x1xf32> to vector<8x1xf32>
    %531 = arith.addf %529, %530 : vector<8x1xf32>
    %532 = vector.broadcast %492 : vector<1x32xf32> to vector<8x32xf32>
    %533 = arith.mulf %499, %532 : vector<8x32xf32>
    %cst_100 = arith.constant dense<0.000000e+00> : vector<8xf32>
    %534 = vector.multi_reduction <add>, %533, %cst_100 [1] : vector<8x32xf32> to vector<8xf32>
    %535 = vector.shape_cast %534 : vector<8xf32> to vector<8x1xf32>
    %536 = vector.broadcast %493 : vector<1x1xf32> to vector<8x1xf32>
    %537 = arith.addf %535, %536 : vector<8x1xf32>
    %538 = vector.broadcast %492 : vector<1x32xf32> to vector<8x32xf32>
    %539 = arith.mulf %500, %538 : vector<8x32xf32>
    %cst_101 = arith.constant dense<0.000000e+00> : vector<8xf32>
    %540 = vector.multi_reduction <add>, %539, %cst_101 [1] : vector<8x32xf32> to vector<8xf32>
    %541 = vector.shape_cast %540 : vector<8xf32> to vector<8x1xf32>
    %542 = vector.broadcast %493 : vector<1x1xf32> to vector<8x1xf32>
    %543 = arith.addf %541, %542 : vector<8x1xf32>
    %544 = vector.broadcast %492 : vector<1x32xf32> to vector<8x32xf32>
    %545 = arith.mulf %501, %544 : vector<8x32xf32>
    %cst_102 = arith.constant dense<0.000000e+00> : vector<8xf32>
    %546 = vector.multi_reduction <add>, %545, %cst_102 [1] : vector<8x32xf32> to vector<8xf32>
    %547 = vector.shape_cast %546 : vector<8xf32> to vector<8x1xf32>
    %548 = vector.broadcast %493 : vector<1x1xf32> to vector<8x1xf32>
    %549 = arith.addf %547, %548 : vector<8x1xf32>
    %550 = arith.maximumf %507, %513 : vector<8x1xf32>
    %551 = arith.maximumf %550, %519 : vector<8x1xf32>
    %552 = arith.maximumf %551, %525 : vector<8x1xf32>
    %553 = arith.maximumf %552, %531 : vector<8x1xf32>
    %554 = arith.maximumf %553, %537 : vector<8x1xf32>
    %555 = arith.maximumf %554, %543 : vector<8x1xf32>
    %556 = arith.maximumf %555, %549 : vector<8x1xf32>
    %557 = arith.subf %507, %556 : vector<8x1xf32>
    %558 = math.exp %557 : vector<8x1xf32>
    %559 = arith.subf %513, %556 : vector<8x1xf32>
    %560 = math.exp %559 : vector<8x1xf32>
    %561 = arith.subf %519, %556 : vector<8x1xf32>
    %562 = math.exp %561 : vector<8x1xf32>
    %563 = arith.subf %525, %556 : vector<8x1xf32>
    %564 = math.exp %563 : vector<8x1xf32>
    %565 = arith.subf %531, %556 : vector<8x1xf32>
    %566 = math.exp %565 : vector<8x1xf32>
    %567 = arith.subf %537, %556 : vector<8x1xf32>
    %568 = math.exp %567 : vector<8x1xf32>
    %569 = arith.subf %543, %556 : vector<8x1xf32>
    %570 = math.exp %569 : vector<8x1xf32>
    %571 = arith.subf %549, %556 : vector<8x1xf32>
    %572 = math.exp %571 : vector<8x1xf32>
    %573 = arith.addf %558, %560 : vector<8x1xf32>
    %574 = arith.addf %573, %562 : vector<8x1xf32>
    %575 = arith.addf %574, %564 : vector<8x1xf32>
    %576 = arith.addf %575, %566 : vector<8x1xf32>
    %577 = arith.addf %576, %568 : vector<8x1xf32>
    %578 = arith.addf %577, %570 : vector<8x1xf32>
    %579 = arith.addf %578, %572 : vector<8x1xf32>
    %cst_103 = arith.constant 0.000000e+00 : f32
    %580 = vector.broadcast %cst_103 : f32 to vector<8x32xf32>
    %581 = arith.divf %558, %579 : vector<8x1xf32>
    %582 = arith.addf %483, %581 : vector<8x1xf32>
    %583 = vector.broadcast %581 : vector<8x1xf32> to vector<8x32xf32>
    %584 = arith.mulf %583, %494 : vector<8x32xf32>
    %585 = arith.addf %580, %584 : vector<8x32xf32>
    %586 = arith.divf %560, %579 : vector<8x1xf32>
    %587 = arith.addf %484, %586 : vector<8x1xf32>
    %588 = vector.broadcast %586 : vector<8x1xf32> to vector<8x32xf32>
    %589 = arith.mulf %588, %495 : vector<8x32xf32>
    %590 = arith.addf %585, %589 : vector<8x32xf32>
    %591 = arith.divf %562, %579 : vector<8x1xf32>
    %592 = arith.addf %485, %591 : vector<8x1xf32>
    %593 = vector.broadcast %591 : vector<8x1xf32> to vector<8x32xf32>
    %594 = arith.mulf %593, %496 : vector<8x32xf32>
    %595 = arith.addf %590, %594 : vector<8x32xf32>
    %596 = arith.divf %564, %579 : vector<8x1xf32>
    %597 = arith.addf %486, %596 : vector<8x1xf32>
    %598 = vector.broadcast %596 : vector<8x1xf32> to vector<8x32xf32>
    %599 = arith.mulf %598, %497 : vector<8x32xf32>
    %600 = arith.addf %595, %599 : vector<8x32xf32>
    %601 = arith.divf %566, %579 : vector<8x1xf32>
    %602 = arith.addf %487, %601 : vector<8x1xf32>
    %603 = vector.broadcast %601 : vector<8x1xf32> to vector<8x32xf32>
    %604 = arith.mulf %603, %498 : vector<8x32xf32>
    %605 = arith.addf %600, %604 : vector<8x32xf32>
    %606 = arith.divf %568, %579 : vector<8x1xf32>
    %607 = arith.addf %488, %606 : vector<8x1xf32>
    %608 = vector.broadcast %606 : vector<8x1xf32> to vector<8x32xf32>
    %609 = arith.mulf %608, %499 : vector<8x32xf32>
    %610 = arith.addf %605, %609 : vector<8x32xf32>
    %611 = arith.divf %570, %579 : vector<8x1xf32>
    %612 = arith.addf %489, %611 : vector<8x1xf32>
    %613 = vector.broadcast %611 : vector<8x1xf32> to vector<8x32xf32>
    %614 = arith.mulf %613, %500 : vector<8x32xf32>
    %615 = arith.addf %610, %614 : vector<8x32xf32>
    %616 = arith.divf %572, %579 : vector<8x1xf32>
    %617 = arith.addf %490, %616 : vector<8x1xf32>
    %618 = vector.broadcast %616 : vector<8x1xf32> to vector<8x32xf32>
    %619 = arith.mulf %618, %501 : vector<8x32xf32>
    %620 = arith.addf %615, %619 : vector<8x32xf32>
    %621 = arith.truncf %620 : vector<8x32xf32> to vector<8x32xbf16>
    %c0_104 = arith.constant 0 : index
    %c0_105 = arith.constant 0 : index
    %c0_106 = arith.constant 0 : index
    %622 = vector.load %arg9[%c0_104, %c0_105, %c0_106] : memref<3x32x128xbf16, #tpu.memory_space<vmem>>, vector<1x32x128xbf16>
    %623 = vector.shape_cast %622 : vector<1x32x128xbf16> to vector<32x128xbf16>
    %cst_107 = arith.constant dense<0.000000e+00> : vector<8x128xf32>
    %624 = tpu.matmul %621, %623, %cst_107 {dimension_numbers = #tpu.dot_dimension_numbers<[1], [0], [0], [1], [0, 0, 1, 1], [], []>} : vector<8x32xbf16>, vector<32x128xbf16>, vector<8x128xf32> -> vector<8x128xf32>
    %625 = arith.addf %491, %624 : vector<8x128xf32>
    %c1 = arith.constant 1 : index
    %c0_108 = arith.constant 0 : index
    %626 = vector.load %arg7[%c1, %c0_108] : memref<3x32xf32, #tpu.memory_space<vmem>>, vector<1x32xf32>
    %c1_109 = arith.constant 1 : index
    %c0_110 = arith.constant 0 : index
    %627 = vector.load %arg8[%c1_109, %c0_110] : memref<3x1xf32, #tpu.memory_space<vmem>>, vector<1x1xf32>
    %628 = vector.extract_strided_slice %279 {offsets = [0, 32], sizes = [8, 32], strides = [1, 1]} : vector<8x128xf32> to vector<8x32xf32>
    %629 = vector.extract_strided_slice %308 {offsets = [0, 32], sizes = [8, 32], strides = [1, 1]} : vector<8x128xf32> to vector<8x32xf32>
    %630 = vector.extract_strided_slice %337 {offsets = [0, 32], sizes = [8, 32], strides = [1, 1]} : vector<8x128xf32> to vector<8x32xf32>
    %631 = vector.extract_strided_slice %366 {offsets = [0, 32], sizes = [8, 32], strides = [1, 1]} : vector<8x128xf32> to vector<8x32xf32>
    %632 = vector.extract_strided_slice %395 {offsets = [0, 32], sizes = [8, 32], strides = [1, 1]} : vector<8x128xf32> to vector<8x32xf32>
    %633 = vector.extract_strided_slice %424 {offsets = [0, 32], sizes = [8, 32], strides = [1, 1]} : vector<8x128xf32> to vector<8x32xf32>
    %634 = vector.extract_strided_slice %453 {offsets = [0, 32], sizes = [8, 32], strides = [1, 1]} : vector<8x128xf32> to vector<8x32xf32>
    %635 = vector.extract_strided_slice %482 {offsets = [0, 32], sizes = [8, 32], strides = [1, 1]} : vector<8x128xf32> to vector<8x32xf32>
    %636 = vector.broadcast %626 : vector<1x32xf32> to vector<8x32xf32>
    %637 = arith.mulf %628, %636 : vector<8x32xf32>
    %cst_111 = arith.constant dense<0.000000e+00> : vector<8xf32>
    %638 = vector.multi_reduction <add>, %637, %cst_111 [1] : vector<8x32xf32> to vector<8xf32>
    %639 = vector.shape_cast %638 : vector<8xf32> to vector<8x1xf32>
    %640 = vector.broadcast %627 : vector<1x1xf32> to vector<8x1xf32>
    %641 = arith.addf %639, %640 : vector<8x1xf32>
    %642 = vector.broadcast %626 : vector<1x32xf32> to vector<8x32xf32>
    %643 = arith.mulf %629, %642 : vector<8x32xf32>
    %cst_112 = arith.constant dense<0.000000e+00> : vector<8xf32>
    %644 = vector.multi_reduction <add>, %643, %cst_112 [1] : vector<8x32xf32> to vector<8xf32>
    %645 = vector.shape_cast %644 : vector<8xf32> to vector<8x1xf32>
    %646 = vector.broadcast %627 : vector<1x1xf32> to vector<8x1xf32>
    %647 = arith.addf %645, %646 : vector<8x1xf32>
    %648 = vector.broadcast %626 : vector<1x32xf32> to vector<8x32xf32>
    %649 = arith.mulf %630, %648 : vector<8x32xf32>
    %cst_113 = arith.constant dense<0.000000e+00> : vector<8xf32>
    %650 = vector.multi_reduction <add>, %649, %cst_113 [1] : vector<8x32xf32> to vector<8xf32>
    %651 = vector.shape_cast %650 : vector<8xf32> to vector<8x1xf32>
    %652 = vector.broadcast %627 : vector<1x1xf32> to vector<8x1xf32>
    %653 = arith.addf %651, %652 : vector<8x1xf32>
    %654 = vector.broadcast %626 : vector<1x32xf32> to vector<8x32xf32>
    %655 = arith.mulf %631, %654 : vector<8x32xf32>
    %cst_114 = arith.constant dense<0.000000e+00> : vector<8xf32>
    %656 = vector.multi_reduction <add>, %655, %cst_114 [1] : vector<8x32xf32> to vector<8xf32>
    %657 = vector.shape_cast %656 : vector<8xf32> to vector<8x1xf32>
    %658 = vector.broadcast %627 : vector<1x1xf32> to vector<8x1xf32>
    %659 = arith.addf %657, %658 : vector<8x1xf32>
    %660 = vector.broadcast %626 : vector<1x32xf32> to vector<8x32xf32>
    %661 = arith.mulf %632, %660 : vector<8x32xf32>
    %cst_115 = arith.constant dense<0.000000e+00> : vector<8xf32>
    %662 = vector.multi_reduction <add>, %661, %cst_115 [1] : vector<8x32xf32> to vector<8xf32>
    %663 = vector.shape_cast %662 : vector<8xf32> to vector<8x1xf32>
    %664 = vector.broadcast %627 : vector<1x1xf32> to vector<8x1xf32>
    %665 = arith.addf %663, %664 : vector<8x1xf32>
    %666 = vector.broadcast %626 : vector<1x32xf32> to vector<8x32xf32>
    %667 = arith.mulf %633, %666 : vector<8x32xf32>
    %cst_116 = arith.constant dense<0.000000e+00> : vector<8xf32>
    %668 = vector.multi_reduction <add>, %667, %cst_116 [1] : vector<8x32xf32> to vector<8xf32>
    %669 = vector.shape_cast %668 : vector<8xf32> to vector<8x1xf32>
    %670 = vector.broadcast %627 : vector<1x1xf32> to vector<8x1xf32>
    %671 = arith.addf %669, %670 : vector<8x1xf32>
    %672 = vector.broadcast %626 : vector<1x32xf32> to vector<8x32xf32>
    %673 = arith.mulf %634, %672 : vector<8x32xf32>
    %cst_117 = arith.constant dense<0.000000e+00> : vector<8xf32>
    %674 = vector.multi_reduction <add>, %673, %cst_117 [1] : vector<8x32xf32> to vector<8xf32>
    %675 = vector.shape_cast %674 : vector<8xf32> to vector<8x1xf32>
    %676 = vector.broadcast %627 : vector<1x1xf32> to vector<8x1xf32>
    %677 = arith.addf %675, %676 : vector<8x1xf32>
    %678 = vector.broadcast %626 : vector<1x32xf32> to vector<8x32xf32>
    %679 = arith.mulf %635, %678 : vector<8x32xf32>
    %cst_118 = arith.constant dense<0.000000e+00> : vector<8xf32>
    %680 = vector.multi_reduction <add>, %679, %cst_118 [1] : vector<8x32xf32> to vector<8xf32>
    %681 = vector.shape_cast %680 : vector<8xf32> to vector<8x1xf32>
    %682 = vector.broadcast %627 : vector<1x1xf32> to vector<8x1xf32>
    %683 = arith.addf %681, %682 : vector<8x1xf32>
    %684 = arith.maximumf %641, %647 : vector<8x1xf32>
    %685 = arith.maximumf %684, %653 : vector<8x1xf32>
    %686 = arith.maximumf %685, %659 : vector<8x1xf32>
    %687 = arith.maximumf %686, %665 : vector<8x1xf32>
    %688 = arith.maximumf %687, %671 : vector<8x1xf32>
    %689 = arith.maximumf %688, %677 : vector<8x1xf32>
    %690 = arith.maximumf %689, %683 : vector<8x1xf32>
    %691 = arith.subf %641, %690 : vector<8x1xf32>
    %692 = math.exp %691 : vector<8x1xf32>
    %693 = arith.subf %647, %690 : vector<8x1xf32>
    %694 = math.exp %693 : vector<8x1xf32>
    %695 = arith.subf %653, %690 : vector<8x1xf32>
    %696 = math.exp %695 : vector<8x1xf32>
    %697 = arith.subf %659, %690 : vector<8x1xf32>
    %698 = math.exp %697 : vector<8x1xf32>
    %699 = arith.subf %665, %690 : vector<8x1xf32>
    %700 = math.exp %699 : vector<8x1xf32>
    %701 = arith.subf %671, %690 : vector<8x1xf32>
    %702 = math.exp %701 : vector<8x1xf32>
    %703 = arith.subf %677, %690 : vector<8x1xf32>
    %704 = math.exp %703 : vector<8x1xf32>
    %705 = arith.subf %683, %690 : vector<8x1xf32>
    %706 = math.exp %705 : vector<8x1xf32>
    %707 = arith.addf %692, %694 : vector<8x1xf32>
    %708 = arith.addf %707, %696 : vector<8x1xf32>
    %709 = arith.addf %708, %698 : vector<8x1xf32>
    %710 = arith.addf %709, %700 : vector<8x1xf32>
    %711 = arith.addf %710, %702 : vector<8x1xf32>
    %712 = arith.addf %711, %704 : vector<8x1xf32>
    %713 = arith.addf %712, %706 : vector<8x1xf32>
    %cst_119 = arith.constant 0.000000e+00 : f32
    %714 = vector.broadcast %cst_119 : f32 to vector<8x32xf32>
    %715 = arith.divf %692, %713 : vector<8x1xf32>
    %716 = arith.addf %582, %715 : vector<8x1xf32>
    %717 = vector.broadcast %715 : vector<8x1xf32> to vector<8x32xf32>
    %718 = arith.mulf %717, %628 : vector<8x32xf32>
    %719 = arith.addf %714, %718 : vector<8x32xf32>
    %720 = arith.divf %694, %713 : vector<8x1xf32>
    %721 = arith.addf %587, %720 : vector<8x1xf32>
    %722 = vector.broadcast %720 : vector<8x1xf32> to vector<8x32xf32>
    %723 = arith.mulf %722, %629 : vector<8x32xf32>
    %724 = arith.addf %719, %723 : vector<8x32xf32>
    %725 = arith.divf %696, %713 : vector<8x1xf32>
    %726 = arith.addf %592, %725 : vector<8x1xf32>
    %727 = vector.broadcast %725 : vector<8x1xf32> to vector<8x32xf32>
    %728 = arith.mulf %727, %630 : vector<8x32xf32>
    %729 = arith.addf %724, %728 : vector<8x32xf32>
    %730 = arith.divf %698, %713 : vector<8x1xf32>
    %731 = arith.addf %597, %730 : vector<8x1xf32>
    %732 = vector.broadcast %730 : vector<8x1xf32> to vector<8x32xf32>
    %733 = arith.mulf %732, %631 : vector<8x32xf32>
    %734 = arith.addf %729, %733 : vector<8x32xf32>
    %735 = arith.divf %700, %713 : vector<8x1xf32>
    %736 = arith.addf %602, %735 : vector<8x1xf32>
    %737 = vector.broadcast %735 : vector<8x1xf32> to vector<8x32xf32>
    %738 = arith.mulf %737, %632 : vector<8x32xf32>
    %739 = arith.addf %734, %738 : vector<8x32xf32>
    %740 = arith.divf %702, %713 : vector<8x1xf32>
    %741 = arith.addf %607, %740 : vector<8x1xf32>
    %742 = vector.broadcast %740 : vector<8x1xf32> to vector<8x32xf32>
    %743 = arith.mulf %742, %633 : vector<8x32xf32>
    %744 = arith.addf %739, %743 : vector<8x32xf32>
    %745 = arith.divf %704, %713 : vector<8x1xf32>
    %746 = arith.addf %612, %745 : vector<8x1xf32>
    %747 = vector.broadcast %745 : vector<8x1xf32> to vector<8x32xf32>
    %748 = arith.mulf %747, %634 : vector<8x32xf32>
    %749 = arith.addf %744, %748 : vector<8x32xf32>
    %750 = arith.divf %706, %713 : vector<8x1xf32>
    %751 = arith.addf %617, %750 : vector<8x1xf32>
    %752 = vector.broadcast %750 : vector<8x1xf32> to vector<8x32xf32>
    %753 = arith.mulf %752, %635 : vector<8x32xf32>
    %754 = arith.addf %749, %753 : vector<8x32xf32>
    %755 = arith.truncf %754 : vector<8x32xf32> to vector<8x32xbf16>
    %c1_120 = arith.constant 1 : index
    %c0_121 = arith.constant 0 : index
    %c0_122 = arith.constant 0 : index
    %756 = vector.load %arg9[%c1_120, %c0_121, %c0_122] : memref<3x32x128xbf16, #tpu.memory_space<vmem>>, vector<1x32x128xbf16>
    %757 = vector.shape_cast %756 : vector<1x32x128xbf16> to vector<32x128xbf16>
    %cst_123 = arith.constant dense<0.000000e+00> : vector<8x128xf32>
    %758 = tpu.matmul %755, %757, %cst_123 {dimension_numbers = #tpu.dot_dimension_numbers<[1], [0], [0], [1], [0, 0, 1, 1], [], []>} : vector<8x32xbf16>, vector<32x128xbf16>, vector<8x128xf32> -> vector<8x128xf32>
    %759 = arith.addf %625, %758 : vector<8x128xf32>
    %c2 = arith.constant 2 : index
    %c0_124 = arith.constant 0 : index
    %760 = vector.load %arg7[%c2, %c0_124] : memref<3x32xf32, #tpu.memory_space<vmem>>, vector<1x32xf32>
    %c2_125 = arith.constant 2 : index
    %c0_126 = arith.constant 0 : index
    %761 = vector.load %arg8[%c2_125, %c0_126] : memref<3x1xf32, #tpu.memory_space<vmem>>, vector<1x1xf32>
    %762 = vector.extract_strided_slice %279 {offsets = [0, 64], sizes = [8, 32], strides = [1, 1]} : vector<8x128xf32> to vector<8x32xf32>
    %763 = vector.extract_strided_slice %308 {offsets = [0, 64], sizes = [8, 32], strides = [1, 1]} : vector<8x128xf32> to vector<8x32xf32>
    %764 = vector.extract_strided_slice %337 {offsets = [0, 64], sizes = [8, 32], strides = [1, 1]} : vector<8x128xf32> to vector<8x32xf32>
    %765 = vector.extract_strided_slice %366 {offsets = [0, 64], sizes = [8, 32], strides = [1, 1]} : vector<8x128xf32> to vector<8x32xf32>
    %766 = vector.extract_strided_slice %395 {offsets = [0, 64], sizes = [8, 32], strides = [1, 1]} : vector<8x128xf32> to vector<8x32xf32>
    %767 = vector.extract_strided_slice %424 {offsets = [0, 64], sizes = [8, 32], strides = [1, 1]} : vector<8x128xf32> to vector<8x32xf32>
    %768 = vector.extract_strided_slice %453 {offsets = [0, 64], sizes = [8, 32], strides = [1, 1]} : vector<8x128xf32> to vector<8x32xf32>
    %769 = vector.extract_strided_slice %482 {offsets = [0, 64], sizes = [8, 32], strides = [1, 1]} : vector<8x128xf32> to vector<8x32xf32>
    %770 = vector.broadcast %760 : vector<1x32xf32> to vector<8x32xf32>
    %771 = arith.mulf %762, %770 : vector<8x32xf32>
    %cst_127 = arith.constant dense<0.000000e+00> : vector<8xf32>
    %772 = vector.multi_reduction <add>, %771, %cst_127 [1] : vector<8x32xf32> to vector<8xf32>
    %773 = vector.shape_cast %772 : vector<8xf32> to vector<8x1xf32>
    %774 = vector.broadcast %761 : vector<1x1xf32> to vector<8x1xf32>
    %775 = arith.addf %773, %774 : vector<8x1xf32>
    %776 = vector.broadcast %760 : vector<1x32xf32> to vector<8x32xf32>
    %777 = arith.mulf %763, %776 : vector<8x32xf32>
    %cst_128 = arith.constant dense<0.000000e+00> : vector<8xf32>
    %778 = vector.multi_reduction <add>, %777, %cst_128 [1] : vector<8x32xf32> to vector<8xf32>
    %779 = vector.shape_cast %778 : vector<8xf32> to vector<8x1xf32>
    %780 = vector.broadcast %761 : vector<1x1xf32> to vector<8x1xf32>
    %781 = arith.addf %779, %780 : vector<8x1xf32>
    %782 = vector.broadcast %760 : vector<1x32xf32> to vector<8x32xf32>
    %783 = arith.mulf %764, %782 : vector<8x32xf32>
    %cst_129 = arith.constant dense<0.000000e+00> : vector<8xf32>
    %784 = vector.multi_reduction <add>, %783, %cst_129 [1] : vector<8x32xf32> to vector<8xf32>
    %785 = vector.shape_cast %784 : vector<8xf32> to vector<8x1xf32>
    %786 = vector.broadcast %761 : vector<1x1xf32> to vector<8x1xf32>
    %787 = arith.addf %785, %786 : vector<8x1xf32>
    %788 = vector.broadcast %760 : vector<1x32xf32> to vector<8x32xf32>
    %789 = arith.mulf %765, %788 : vector<8x32xf32>
    %cst_130 = arith.constant dense<0.000000e+00> : vector<8xf32>
    %790 = vector.multi_reduction <add>, %789, %cst_130 [1] : vector<8x32xf32> to vector<8xf32>
    %791 = vector.shape_cast %790 : vector<8xf32> to vector<8x1xf32>
    %792 = vector.broadcast %761 : vector<1x1xf32> to vector<8x1xf32>
    %793 = arith.addf %791, %792 : vector<8x1xf32>
    %794 = vector.broadcast %760 : vector<1x32xf32> to vector<8x32xf32>
    %795 = arith.mulf %766, %794 : vector<8x32xf32>
    %cst_131 = arith.constant dense<0.000000e+00> : vector<8xf32>
    %796 = vector.multi_reduction <add>, %795, %cst_131 [1] : vector<8x32xf32> to vector<8xf32>
    %797 = vector.shape_cast %796 : vector<8xf32> to vector<8x1xf32>
    %798 = vector.broadcast %761 : vector<1x1xf32> to vector<8x1xf32>
    %799 = arith.addf %797, %798 : vector<8x1xf32>
    %800 = vector.broadcast %760 : vector<1x32xf32> to vector<8x32xf32>
    %801 = arith.mulf %767, %800 : vector<8x32xf32>
    %cst_132 = arith.constant dense<0.000000e+00> : vector<8xf32>
    %802 = vector.multi_reduction <add>, %801, %cst_132 [1] : vector<8x32xf32> to vector<8xf32>
    %803 = vector.shape_cast %802 : vector<8xf32> to vector<8x1xf32>
    %804 = vector.broadcast %761 : vector<1x1xf32> to vector<8x1xf32>
    %805 = arith.addf %803, %804 : vector<8x1xf32>
    %806 = vector.broadcast %760 : vector<1x32xf32> to vector<8x32xf32>
    %807 = arith.mulf %768, %806 : vector<8x32xf32>
    %cst_133 = arith.constant dense<0.000000e+00> : vector<8xf32>
    %808 = vector.multi_reduction <add>, %807, %cst_133 [1] : vector<8x32xf32> to vector<8xf32>
    %809 = vector.shape_cast %808 : vector<8xf32> to vector<8x1xf32>
    %810 = vector.broadcast %761 : vector<1x1xf32> to vector<8x1xf32>
    %811 = arith.addf %809, %810 : vector<8x1xf32>
    %812 = vector.broadcast %760 : vector<1x32xf32> to vector<8x32xf32>
    %813 = arith.mulf %769, %812 : vector<8x32xf32>
    %cst_134 = arith.constant dense<0.000000e+00> : vector<8xf32>
    %814 = vector.multi_reduction <add>, %813, %cst_134 [1] : vector<8x32xf32> to vector<8xf32>
    %815 = vector.shape_cast %814 : vector<8xf32> to vector<8x1xf32>
    %816 = vector.broadcast %761 : vector<1x1xf32> to vector<8x1xf32>
    %817 = arith.addf %815, %816 : vector<8x1xf32>
    %818 = arith.maximumf %775, %781 : vector<8x1xf32>
    %819 = arith.maximumf %818, %787 : vector<8x1xf32>
    %820 = arith.maximumf %819, %793 : vector<8x1xf32>
    %821 = arith.maximumf %820, %799 : vector<8x1xf32>
    %822 = arith.maximumf %821, %805 : vector<8x1xf32>
    %823 = arith.maximumf %822, %811 : vector<8x1xf32>
    %824 = arith.maximumf %823, %817 : vector<8x1xf32>
    %825 = arith.subf %775, %824 : vector<8x1xf32>
    %826 = math.exp %825 : vector<8x1xf32>
    %827 = arith.subf %781, %824 : vector<8x1xf32>
    %828 = math.exp %827 : vector<8x1xf32>
    %829 = arith.subf %787, %824 : vector<8x1xf32>
    %830 = math.exp %829 : vector<8x1xf32>
    %831 = arith.subf %793, %824 : vector<8x1xf32>
    %832 = math.exp %831 : vector<8x1xf32>
    %833 = arith.subf %799, %824 : vector<8x1xf32>
    %834 = math.exp %833 : vector<8x1xf32>
    %835 = arith.subf %805, %824 : vector<8x1xf32>
    %836 = math.exp %835 : vector<8x1xf32>
    %837 = arith.subf %811, %824 : vector<8x1xf32>
    %838 = math.exp %837 : vector<8x1xf32>
    %839 = arith.subf %817, %824 : vector<8x1xf32>
    %840 = math.exp %839 : vector<8x1xf32>
    %841 = arith.addf %826, %828 : vector<8x1xf32>
    %842 = arith.addf %841, %830 : vector<8x1xf32>
    %843 = arith.addf %842, %832 : vector<8x1xf32>
    %844 = arith.addf %843, %834 : vector<8x1xf32>
    %845 = arith.addf %844, %836 : vector<8x1xf32>
    %846 = arith.addf %845, %838 : vector<8x1xf32>
    %847 = arith.addf %846, %840 : vector<8x1xf32>
    %cst_135 = arith.constant 0.000000e+00 : f32
    %848 = vector.broadcast %cst_135 : f32 to vector<8x32xf32>
    %849 = arith.divf %826, %847 : vector<8x1xf32>
    %850 = arith.addf %716, %849 : vector<8x1xf32>
    %851 = vector.broadcast %849 : vector<8x1xf32> to vector<8x32xf32>
    %852 = arith.mulf %851, %762 : vector<8x32xf32>
    %853 = arith.addf %848, %852 : vector<8x32xf32>
    %854 = arith.divf %828, %847 : vector<8x1xf32>
    %855 = arith.addf %721, %854 : vector<8x1xf32>
    %856 = vector.broadcast %854 : vector<8x1xf32> to vector<8x32xf32>
    %857 = arith.mulf %856, %763 : vector<8x32xf32>
    %858 = arith.addf %853, %857 : vector<8x32xf32>
    %859 = arith.divf %830, %847 : vector<8x1xf32>
    %860 = arith.addf %726, %859 : vector<8x1xf32>
    %861 = vector.broadcast %859 : vector<8x1xf32> to vector<8x32xf32>
    %862 = arith.mulf %861, %764 : vector<8x32xf32>
    %863 = arith.addf %858, %862 : vector<8x32xf32>
    %864 = arith.divf %832, %847 : vector<8x1xf32>
    %865 = arith.addf %731, %864 : vector<8x1xf32>
    %866 = vector.broadcast %864 : vector<8x1xf32> to vector<8x32xf32>
    %867 = arith.mulf %866, %765 : vector<8x32xf32>
    %868 = arith.addf %863, %867 : vector<8x32xf32>
    %869 = arith.divf %834, %847 : vector<8x1xf32>
    %870 = arith.addf %736, %869 : vector<8x1xf32>
    %871 = vector.broadcast %869 : vector<8x1xf32> to vector<8x32xf32>
    %872 = arith.mulf %871, %766 : vector<8x32xf32>
    %873 = arith.addf %868, %872 : vector<8x32xf32>
    %874 = arith.divf %836, %847 : vector<8x1xf32>
    %875 = arith.addf %741, %874 : vector<8x1xf32>
    %876 = vector.broadcast %874 : vector<8x1xf32> to vector<8x32xf32>
    %877 = arith.mulf %876, %767 : vector<8x32xf32>
    %878 = arith.addf %873, %877 : vector<8x32xf32>
    %879 = arith.divf %838, %847 : vector<8x1xf32>
    %880 = arith.addf %746, %879 : vector<8x1xf32>
    %881 = vector.broadcast %879 : vector<8x1xf32> to vector<8x32xf32>
    %882 = arith.mulf %881, %768 : vector<8x32xf32>
    %883 = arith.addf %878, %882 : vector<8x32xf32>
    %884 = arith.divf %840, %847 : vector<8x1xf32>
    %885 = arith.addf %751, %884 : vector<8x1xf32>
    %886 = vector.broadcast %884 : vector<8x1xf32> to vector<8x32xf32>
    %887 = arith.mulf %886, %769 : vector<8x32xf32>
    %888 = arith.addf %883, %887 : vector<8x32xf32>
    %889 = arith.truncf %888 : vector<8x32xf32> to vector<8x32xbf16>
    %c2_136 = arith.constant 2 : index
    %c0_137 = arith.constant 0 : index
    %c0_138 = arith.constant 0 : index
    %890 = vector.load %arg9[%c2_136, %c0_137, %c0_138] : memref<3x32x128xbf16, #tpu.memory_space<vmem>>, vector<1x32x128xbf16>
    %891 = vector.shape_cast %890 : vector<1x32x128xbf16> to vector<32x128xbf16>
    %cst_139 = arith.constant dense<0.000000e+00> : vector<8x128xf32>
    %892 = tpu.matmul %889, %891, %cst_139 {dimension_numbers = #tpu.dot_dimension_numbers<[1], [0], [0], [1], [0, 0, 1, 1], [], []>} : vector<8x32xbf16>, vector<32x128xbf16>, vector<8x128xf32> -> vector<8x128xf32>
    %893 = arith.addf %759, %892 : vector<8x128xf32>
    %c0_140 = arith.constant 0 : index
    %c0_141 = arith.constant 0 : index
    %894 = vector.load %arg10[%c0_140, %c0_141] : memref<1x128xf32, #tpu.memory_space<vmem>>, vector<1x128xf32>
    %895 = vector.broadcast %894 : vector<1x128xf32> to vector<8x128xf32>
    %896 = arith.addf %893, %895 : vector<8x128xf32>
    %cst_142 = arith.constant 0.333333343 : f32
    %897 = vector.broadcast %cst_142 : f32 to vector<8x128xf32>
    %898 = arith.mulf %896, %897 : vector<8x128xf32>
    %c0_143 = arith.constant 0 : index
    %c0_144 = arith.constant 0 : index
    %899 = vector.load %arg11[%c0_143, %c0_144] : memref<8x128xf32, #tpu.memory_space<vmem>>, vector<8x128xf32>
    tpu.vector_store %arg11[%c0_143, %c0_144], %898 {strides = array<i32>} : memref<8x128xf32, #tpu.memory_space<vmem>>, vector<8x128xf32>,
    %cst_145 = arith.constant 0.333333343 : f32
    %900 = vector.broadcast %cst_145 : f32 to vector<8x1xf32>
    %901 = arith.mulf %850, %900 : vector<8x1xf32>
    %c0_146 = arith.constant 0 : index
    %c120 = arith.constant 120 : index
    %902 = vector.load %arg11[%c0_146, %c120] : memref<8x128xf32, #tpu.memory_space<vmem>>, vector<8x1xf32>
    tpu.vector_store %arg11[%c0_146, %c120], %901 {strides = array<i32>} : memref<8x128xf32, #tpu.memory_space<vmem>>, vector<8x1xf32>,
    %cst_147 = arith.constant 0.333333343 : f32
    %903 = vector.broadcast %cst_147 : f32 to vector<8x1xf32>
    %904 = arith.mulf %855, %903 : vector<8x1xf32>
    %c0_148 = arith.constant 0 : index
    %c121 = arith.constant 121 : index
    %905 = vector.load %arg11[%c0_148, %c121] : memref<8x128xf32, #tpu.memory_space<vmem>>, vector<8x1xf32>
    tpu.vector_store %arg11[%c0_148, %c121], %904 {strides = array<i32>} : memref<8x128xf32, #tpu.memory_space<vmem>>, vector<8x1xf32>,
    %cst_149 = arith.constant 0.333333343 : f32
    %906 = vector.broadcast %cst_149 : f32 to vector<8x1xf32>
    %907 = arith.mulf %860, %906 : vector<8x1xf32>
    %c0_150 = arith.constant 0 : index
    %c122 = arith.constant 122 : index
    %908 = vector.load %arg11[%c0_150, %c122] : memref<8x128xf32, #tpu.memory_space<vmem>>, vector<8x1xf32>
    tpu.vector_store %arg11[%c0_150, %c122], %907 {strides = array<i32>} : memref<8x128xf32, #tpu.memory_space<vmem>>, vector<8x1xf32>,
    %cst_151 = arith.constant 0.333333343 : f32
    %909 = vector.broadcast %cst_151 : f32 to vector<8x1xf32>
    %910 = arith.mulf %865, %909 : vector<8x1xf32>
    %c0_152 = arith.constant 0 : index
    %c123 = arith.constant 123 : index
    %911 = vector.load %arg11[%c0_152, %c123] : memref<8x128xf32, #tpu.memory_space<vmem>>, vector<8x1xf32>
    tpu.vector_store %arg11[%c0_152, %c123], %910 {strides = array<i32>} : memref<8x128xf32, #tpu.memory_space<vmem>>, vector<8x1xf32>,
    %cst_153 = arith.constant 0.333333343 : f32
    %912 = vector.broadcast %cst_153 : f32 to vector<8x1xf32>
    %913 = arith.mulf %870, %912 : vector<8x1xf32>
    %c0_154 = arith.constant 0 : index
    %c124 = arith.constant 124 : index
    %914 = vector.load %arg11[%c0_154, %c124] : memref<8x128xf32, #tpu.memory_space<vmem>>, vector<8x1xf32>
    tpu.vector_store %arg11[%c0_154, %c124], %913 {strides = array<i32>} : memref<8x128xf32, #tpu.memory_space<vmem>>, vector<8x1xf32>,
    %cst_155 = arith.constant 0.333333343 : f32
    %915 = vector.broadcast %cst_155 : f32 to vector<8x1xf32>
    %916 = arith.mulf %875, %915 : vector<8x1xf32>
    %c0_156 = arith.constant 0 : index
    %c125 = arith.constant 125 : index
    %917 = vector.load %arg11[%c0_156, %c125] : memref<8x128xf32, #tpu.memory_space<vmem>>, vector<8x1xf32>
    tpu.vector_store %arg11[%c0_156, %c125], %916 {strides = array<i32>} : memref<8x128xf32, #tpu.memory_space<vmem>>, vector<8x1xf32>,
    %cst_157 = arith.constant 0.333333343 : f32
    %918 = vector.broadcast %cst_157 : f32 to vector<8x1xf32>
    %919 = arith.mulf %880, %918 : vector<8x1xf32>
    %c0_158 = arith.constant 0 : index
    %c126 = arith.constant 126 : index
    %920 = vector.load %arg11[%c0_158, %c126] : memref<8x128xf32, #tpu.memory_space<vmem>>, vector<8x1xf32>
    tpu.vector_store %arg11[%c0_158, %c126], %919 {strides = array<i32>} : memref<8x128xf32, #tpu.memory_space<vmem>>, vector<8x1xf32>,
    %cst_159 = arith.constant 0.333333343 : f32
    %921 = vector.broadcast %cst_159 : f32 to vector<8x1xf32>
    %922 = arith.mulf %885, %921 : vector<8x1xf32>
    %c0_160 = arith.constant 0 : index
    %c127 = arith.constant 127 : index
    %923 = vector.load %arg11[%c0_160, %c127] : memref<8x128xf32, #tpu.memory_space<vmem>>, vector<8x1xf32>
    tpu.vector_store %arg11[%c0_160, %c127], %922 {strides = array<i32>} : memref<8x128xf32, #tpu.memory_space<vmem>>, vector<8x1xf32>,
    return
  }
}

</mosaic_0001>

<bundles_post_ra>
// kernel: tpu_custom_call.1
= control target key start
LH: loop header
LB: loop body
LE: loop exit
PB: predicated region body
PF: predicated region fallthrough
CT: control target
= control target key end

     0   :  { %16 = vsyncpa [#allocation3], 0  ;;  %s6158_s0 = inlined_call_operand.vmem [shape: bf16[64,8], index: 0, kind: input, shape index: {}]   ;;  %s6159_s1 = inlined_call_operand.hbm [shape: bf16[8,512], index: 1, kind: input, shape index: {}]   ;;  %s6160_s2 = inlined_call_operand.hbm [shape: bf16[128,512], index: 2, kind: input, shape index: {}]   ;;  %s6161_s3 = inlined_call_operand.vmem [shape: f32[1,512], index: 3, kind: input, shape index: {}]   ;;  %s6162_s4 = inlined_call_operand.hbm [shape: bf16[128,512], index: 4, kind: input, shape index: {}]   ;;  %s6163_s5 = inlined_call_operand.hbm [shape: bf16[128,512], index: 5, kind: input, shape index: {}]   ;;  %s6164_s6 = inlined_call_operand.vmem [shape: f32[1,512], index: 6, kind: input, shape index: {}]   ;;  %s6165_s7 = inlined_call_operand.hbm [shape: f32[3,32], index: 7, kind: input, shape index: {}]   ;;  %s6166_s8 = inlined_call_operand.vmem [shape: f32[3,1], index: 8, kind: input, shape index: {}]   ;;  %s6167_s9 = inlined_call_operand.vmem [shape: bf16[3,32,128], index: 9, kind: input, shape index: {}]   ;;  %s6168_s10 = inlined_call_operand.vmem [shape: f32[1,128], index: 10, kind: input, shape index: {}]   ;;  %s6169_s11 = inlined_call_operand.hbm [shape: f32[8,128], index: 11, kind: output, shape index: {}]  }
   0x1   :  { %17 = vsyncpa [#allocation6], 0 }
   0x2   :  { %18 = vsyncpa [#allocation9], 0 }
   0x3   :  { %19 = vsyncpa [#allocation4], 0  ;;  %s4528_s17 = smov [#allocation5]  }
   0x4   :  { %s37_s18 = sshll.u32 %s4528_s17, 4  ;;  %s38_s18 = int_to_ptr.vmem [resolvable:$true] %s37_s18 }
   0x5   :  { %s4408_s19 = scalar_lea.vmem %s38_s18, 4096  ;;  %p4413_p1 = scmp.lt.s32.totalorder %s38_s18, %s38_s18 }
   0x6   :  { %p4409_p0 = scmp.ne.s32.totalorder %s38_s18, %s4408_s19  ;;  %p4414_p2 = scmp.lt.s32.totalorder %s4408_s19, %s4408_s19 }
   0x8   :  { %p4415_p3 = por %p4414_p2, %p4413_p1 }
   0xa   :  { %p4416_p4 = pnand %p4415_p3, %p4409_p0 }
   0xc   :  { %4419 = shalt.err (!%p4416_p4)
}
   0xd   :  { %s4529_s20 = smov 256   ;;  %s4530_s21 = smov 16  }
   0xe   :  { %43 = dma.hbm_to_vmem [thread:$0]  %s6160_s2, 4096, %s38_s18, [#allocation6], %s4529_s20, %s4529_s20, %s4530_s21  }
   0xf   :  { %s4531_s24 = smov [#allocation8]   ;;  %s4532_s26 = smov [#allocation2]  }
  0x10   :  { %s63_s25 = sshll.u32 %s4531_s24, 4  ;;  %s28_s27 = sshll.u32 %s4532_s26, 4  ;;  %s64_s25 = int_to_ptr.vmem [resolvable:$true] %s63_s25  ;;  %s29_s27 = int_to_ptr.vmem [resolvable:$true] %s28_s27 }
  0x11   :  { %s4428_s28 = scalar_lea.vmem %s64_s25, 4096  ;;  %p4433_p6 = scmp.lt.s32.totalorder %s64_s25, %s64_s25 }
  0x12   :  { %p4429_p5 = scmp.ne.s32.totalorder %s64_s25, %s4428_s28  ;;  %p4434_p7 = scmp.lt.s32.totalorder %s4428_s28, %s4428_s28 }
  0x14   :  { %p4435_p8 = por %p4434_p7, %p4433_p6 }
  0x16   :  { %p4436_p9 = pnand %p4435_p8, %p4429_p5 }
  0x18   :  { %4439 = shalt.err (!%p4436_p9)
}
  0x19   :  { %69 = dma.hbm_to_vmem [thread:$0]  %s6163_s5, 4096, %s64_s25, [#allocation9], %s4529_s20, %s4529_s20, %s4530_s21  }
  0x1a   :  { %s4448_s2 = scalar_lea.vmem %s29_s27, 256  ;;  %p4453_p11 = scmp.lt.s32.totalorder %s29_s27, %s29_s27 }
  0x1b   :  { %p4449_p10 = scmp.ne.s32.totalorder %s29_s27, %s4448_s2  ;;  %p4454_p12 = scmp.lt.s32.totalorder %s4448_s2, %s4448_s2 }
  0x1d   :  { %p4455_p13 = por %p4454_p12, %p4453_p11 }
  0x1f   :  { %p4456_p0 = pnand %p4455_p13, %p4449_p10 }
  0x21   :  { %4459 = shalt.err (!%p4456_p0)
}
  0x22   :  { %31 = dma.hbm_to_vmem [thread:$0]  %s6159_s1, 256, %s29_s27, [#allocation3]  }
  0x23   :  { %s4533_s14 = smov [#allocation7]   ;;  %s4534_s16 = smov [#allocation10]  }
  0x24   :  { %s51_s15 = sshll.u32 %s4533_s14, 4  ;;  %s78_s17 = sshll.u32 %s4534_s16, 4  ;;  %s52_s15 = int_to_ptr.vmem [resolvable:$true] %s51_s15  ;;  %s79_s17 = int_to_ptr.vmem [resolvable:$true] %s78_s17 }
  0x25   :  { %s4468_s18 = scalar_lea.vmem %s52_s15, 4096  ;;  %p4473_p2 = scmp.lt.s32.totalorder %s52_s15, %s52_s15 }
  0x26   :  { %p4469_p1 = scmp.ne.s32.totalorder %s52_s15, %s4468_s18  ;;  %p4474_p3 = scmp.lt.s32.totalorder %s4468_s18, %s4468_s18 }
  0x28   :  { %p4475_p4 = por %p4474_p3, %p4473_p2 }
  0x2a   :  { %p4476_p5 = pnand %p4475_p4, %p4469_p1 }
  0x2c   :  { %4479 = shalt.err (!%p4476_p5)
}
  0x2d   :  { %57 = dma.hbm_to_vmem [thread:$0]  %s6162_s4, 4096, %s52_s15, [#allocation6], %s4529_s20, %s4529_s20, %s4530_s21  }
  0x2e   :  { %s4488_s1 = scalar_lea.vmem %s79_s17, 64  ;;  %p4493_p7 = scmp.lt.s32.totalorder %s79_s17, %s79_s17 }
  0x2f   :  { %p4489_p6 = scmp.ne.s32.totalorder %s79_s17, %s4488_s1  ;;  %p4494_p8 = scmp.lt.s32.totalorder %s4488_s1, %s4488_s1 }
  0x31   :  { %p4495_p9 = por %p4494_p8, %p4493_p7 }
  0x33   :  { %p4496_p10 = pnand %p4495_p9, %p4489_p6 }
  0x35   :  { %4499 = shalt.err (!%p4496_p10)
}
  0x36   :  { %81 = dma.hbm_to_vmem [thread:$0]  %s6165_s7, 64, %s79_s17, [#allocation9]  }
  0x37   :  { %4520 = dma.done.wait [#allocation3], 256  }
  0x38   :  { %4521 = vsyncadd [#allocation3], 4294967040 }
  0x39   :  { %4522 = dma.done.wait [#allocation6], 8192  }
  0x3a   :  { %4523 = vsyncadd [#allocation6], 4294959104 }
  0x3b   :  { %4524 = dma.done.wait [#allocation9], 4160  }
  0x3c   :  { %4525 = vsyncadd [#allocation9], 4294963136  ;;  %v6174_v0 = vmov 0   ;;  %v112_v1 = vld [vmem:[#allocation2] sm:$0xff]  ;;  %vm211_vm0 = vcmask 1043456   ;;  %v113_v2 = vld [vmem:[#allocation2 + $0x8] sm:$0xff]  ;;  %v148_v45 = vlaneseq }
  0x3d   :  { %256 = vmatprep.mubr.bf16.mxu0 %v6174_v0  ;;  %329 = vmatprep.mubr.bf16.mxu1 %v6174_v0  ;;  %v3629_v3 = vcombine.high %v112_v1, %v112_v1  ;;  %v3631_v4 = vcombine.high %v113_v2, %v113_v2  ;;  %v3628_v5 = vcombine.low %v112_v1, %v112_v1  ;;  %v3871_v7 = vld [vmem:[%s6158_s0] sm:$0xff]   ;;  %v4643_v11 = vld [vmem:[#allocation5 + $0xec] ss:$16 sps:$4 sm:$0xff]   ;;  %vm198_vm1 = vcmask 64512   ;;  %v4647_v13 = vld [vmem:[#allocation5 + $0xe8] ss:$16 sps:$4 sm:$0xff]  }
  0x3e   :  { %3866 = vset.pattern.permute.xlu1 %v6174_v0  ;;  %3865 = vset.pattern.permute.xlu0 %v6174_v0  ;;  %v3630_v6 = vcombine.low %v113_v2, %v113_v2  ;;  %v4641_v8 = vld [vmem:[#allocation5 + $0xe4] ss:$16 sps:$4 sm:$0xff]   ;;  %v4645_v12 = vld [vmem:[#allocation5 + $0xe0] ss:$16 sps:$4 sm:$0xff]   ;;  %v4653_v15 = vld [vmem:[#allocation5 + $0xcc] ss:$16 sps:$4 sm:$0xff]  }
  0x3f   :  { %3632 = vmatprep.subr.msk.bf16.mxu0 %vm211_vm0, %v3629_v3  ;;  %3637 = vmatprep.subr.msk.bf16.mxu1 %vm211_vm0, %v3631_v4  ;;  %v213_v9 = vsel %vm211_vm0, %v3628_v5, 0  ;;  %v4651_v14 = vld [vmem:[#allocation5 + $0xc4] ss:$16 sps:$4 sm:$0xff]   ;;  %v4655_v16 = vld [vmem:[#allocation5 + $0xc0] ss:$16 sps:$4 sm:$0xff]   ;;  %v3884_v20 = vld [vmem:[%s6158_s0 + $0x8] sm:$0xff]  }
  0x40   :  { %v219_v10 = vsel %vm211_vm0, %v3630_v6, 0  ;;  %239 = vmatpush1.bf16.msra.mxu0 %v213_v9  ;;  %v4659_v17 = vld [vmem:[#allocation5 + $0xc8] ss:$16 sps:$4 sm:$0xff]   ;;  %v4663_v18 = vld [vmem:[#allocation5 + $0xa4] ss:$16 sps:$4 sm:$0xff]   ;;  %v4800_v46 = vshrl.u32 %v148_v45, 7 }
  0x41   :  { %312 = vmatpush1.bf16.msra.mxu1 %v219_v10  ;;  %530 = vmatprep.subr.bf16.mxu0 %v4641_v8  ;;  %v4667_v19 = vld [vmem:[#allocation5 + $0xac] ss:$16 sps:$4 sm:$0xff]   ;;  %v4674_v21 = vld [vmem:[#allocation5 + $0xa0] ss:$16 sps:$4 sm:$0xff]   ;;  %v4678_v22 = vld [vmem:[#allocation5 + $0xa8] ss:$16 sps:$4 sm:$0xff]  }
  0x42   :  { %571 = vmatprep.subr.bf16.mxu1 %v4643_v11  ;;  %v4680_v23 = vld [vmem:[#allocation5 + $0x84] ss:$16 sps:$4 sm:$0xff]   ;;  %v4684_v24 = vld [vmem:[#allocation5 + $0x8c] ss:$16 sps:$4 sm:$0xff]   ;;  %v4690_v25 = vld [vmem:[#allocation5 + $0x80] ss:$16 sps:$4 sm:$0xff]  }
  0x43   :  { %3633 = vmatmul.mubr.msk.bf16.vlgmr.msra.gmra.mxu0 %vm198_vm1, %v3871_v7  ;;  %v4692_v26 = vld [vmem:[#allocation5 + $0x88] ss:$16 sps:$4 sm:$0xff]   ;;  %v4694_v27 = vld [vmem:[#allocation5 + $0x64] ss:$16 sps:$4 sm:$0xff]   ;;  %v4698_v28 = vld [vmem:[#allocation5 + $0x6c] ss:$16 sps:$4 sm:$0xff]  }
  0x44   :  { %3638 = vmatmul.mubr.msk.bf16.vlgmr.msra.gmra.mxu1 %vm198_vm1, %v3871_v7  ;;  %531 = vmatpush1.bf16.msra.mxu0 %v4645_v12  ;;  %v3897_v29 = vld [vmem:[%s6158_s0 + $0x10] sm:$0xff]   ;;  %v4707_v31 = vld [vmem:[#allocation5 + $0x68] ss:$16 sps:$4 sm:$0xff]   ;;  %v4715_v33 = vld [vmem:[#allocation5 + $0x4c] ss:$16 sps:$4 sm:$0xff]   ;;  %6180 = vst [vmem:[#allocation16_spill] sm:$0xff] %v4800_v46 }
  0x45   :  { %572 = vmatpush1.bf16.msra.mxu1 %v4647_v13  ;;  %532 = vmatprep.subr.bf16.mxu0 %v4651_v14  ;;  %v4705_v30 = vld [vmem:[#allocation5 + $0x60] ss:$16 sps:$4 sm:$0xff]   ;;  %v4711_v32 = vld [vmem:[#allocation5 + $0x44] ss:$16 sps:$4 sm:$0xff]   ;;  %v4723_v35 = vld [vmem:[#allocation5 + $0x48] ss:$16 sps:$4 sm:$0xff]  }
  0x46   :  { %573 = vmatprep.subr.bf16.mxu1 %v4653_v15  ;;  %266 = vmatprep.mubr.bf16.mxu0 %v6174_v0  ;;  %v4719_v34 = vld [vmem:[#allocation5 + $0x40] ss:$16 sps:$4 sm:$0xff]   ;;  %v3910_v36 = vld [vmem:[%s6158_s0 + $0x18] sm:$0xff]   ;;  %v4730_v37 = vld [vmem:[#allocation5 + $0x24] ss:$16 sps:$4 sm:$0xff]   ;;  %v6170_v47 = vsub.s32 2, %v4800_v46 }
  0x47   :  { %339 = vmatprep.mubr.bf16.mxu1 %v6174_v0  ;;  %v4732_v38 = vld [vmem:[#allocation5 + $0x2c] ss:$16 sps:$4 sm:$0xff]   ;;  %v4736_v39 = vld [vmem:[#allocation5 + $0x20] ss:$16 sps:$4 sm:$0xff]   ;;  %v4738_v40 = vld [vmem:[#allocation5 + $0x28] ss:$16 sps:$4 sm:$0xff]  }
  0x48   :  { %533 = vmatpush1.bf16.msra.mxu0 %v4655_v16  ;;  %v4740_v41 = vld [vmem:[#allocation5 + $0x4] ss:$16 sps:$4 sm:$0xff]   ;;  %v4742_v42 = vld [vmem:[#allocation5 + $0xc] ss:$16 sps:$4 sm:$0xff]   ;;  %v4748_v43 = vld [vmem:[#allocation5] ss:$16 sps:$4 sm:$0xff]  }
  0x49   :  { %574 = vmatpush1.bf16.msra.mxu1 %v4659_v17  ;;  %534 = vmatprep.subr.bf16.mxu0 %v4663_v18  ;;  %v4750_v44 = vld [vmem:[#allocation5 + $0x8] ss:$16 sps:$4 sm:$0xff]   ;;  %v6173_v48 = vsub.s32 0, %v4800_v46  ;;  %v6171_v49 = vsub.s32 3, %v4800_v46  ;;  %v146_v50 = vld [vmem:[%s6161_s3] sm:$0xf] }
  0x4a   :  { %575 = vmatprep.subr.bf16.mxu1 %v4667_v19  ;;  %v4814_v53 = vrot.slane %v146_v50, %v6170_v47  ;;  %v6172_v54 = vsub.s32 1, %v4800_v46  ;;  %s4536_s3 = smov 64   ;;  %s4537_s29 = smov 32   ;;  %vm2803_vm2 = vcmask 261120   ;;  %vm4540_vm3 = vmmov 0  }
  0x4b   :  { %3634 = vmatmul.mubr.msk.bf16.gmra.mxu0 %vm198_vm1, %v3884_v20  ;;  %v151_v57 = vrot.slane %v146_v50, %v6173_v48  ;;  %v4825_v58 = vrot.slane %v146_v50, %v6171_v49  ;;  %s4541_s7 = smov 120   ;;  %s4542_s20 = smov 122   ;;  %vm3556_vm4 = vcmask 991168   ;;  %vm3563_vm5 = vcmask 999368  }
  0x4c   :  { %3639 = vmatmul.mubr.msk.bf16.gmra.mxu1 %vm198_vm1, %v3884_v20  ;;  %535 = vmatpush1.bf16.msra.mxu0 %v4674_v21  ;;  %v155_v61 = vrot.slane %v146_v50, %v6172_v54  ;;  %s4543_s21 = smov 124   ;;  %s4544_s24 = smov 126   ;;  %vm3570_vm6 = vcmask 1007568   ;;  %vm3577_vm7 = vcmask 1015768   ;;  %vm3584_vm8 = vcmask 1023968  }
  0x4d   :  { %576 = vmatpush1.bf16.msra.mxu1 %v4678_v22  ;;  %536 = vmatprep.subr.bf16.mxu0 %v4680_v23  ;;  %s4546_s28 = smov 123   ;;  %vm3591_vm9 = vcmask 1032168   ;;  %vm3598_vm10 = vcmask 1040368   ;;  %vm3605_vm11 = vcmask 1048568  }
  0x4e   :  { %577 = vmatprep.subr.bf16.mxu1 %v4684_v24  ;;  %276 = vmatprep.mubr.bf16.mxu0 %v6174_v0 }
  0x4f   :  { %349 = vmatprep.mubr.bf16.mxu1 %v6174_v0 }
  0x50   :  { %537 = vmatpush1.bf16.msra.mxu0 %v4690_v25 }
  0x51   :  { %578 = vmatpush1.bf16.msra.mxu1 %v4692_v26  ;;  %538 = vmatprep.subr.bf16.mxu0 %v4694_v27 }
  0x52   :  { %579 = vmatprep.subr.bf16.mxu1 %v4698_v28 }
  0x53   :  { %3635 = vmatmul.mubr.msk.bf16.gmra.mxu0 %vm198_vm1, %v3897_v29 }
  0x54   :  { %3640 = vmatmul.mubr.msk.bf16.gmra.mxu1 %vm198_vm1, %v3897_v29  ;;  %539 = vmatpush1.bf16.msra.mxu0 %v4705_v30 }
  0x55   :  { %580 = vmatpush1.bf16.msra.mxu1 %v4707_v31  ;;  %540 = vmatprep.subr.bf16.mxu0 %v4711_v32 }
  0x56   :  { %581 = vmatprep.subr.bf16.mxu1 %v4715_v33  ;;  %286 = vmatprep.mubr.bf16.mxu0 %v6174_v0 }
  0x57   :  { %359 = vmatprep.mubr.bf16.mxu1 %v6174_v0 }
  0x58   :  { %541 = vmatpush1.bf16.msra.mxu0 %v4719_v34 }
  0x59   :  { %582 = vmatpush1.bf16.msra.mxu1 %v4723_v35  ;;  %542 = vmatprep.subr.bf16.mxu0 %v4730_v37 }
  0x5a   :  { %583 = vmatprep.subr.bf16.mxu1 %v4732_v38 }
  0x5b   :  { %3636 = vmatmul.mubr.msk.bf16.gmra.mxu0 %vm198_vm1, %v3910_v36 }
  0x5c   :  { %3641 = vmatmul.mubr.msk.bf16.gmra.mxu1 %vm198_vm1, %v3910_v36  ;;  %543 = vmatpush1.bf16.msra.mxu0 %v4736_v39 }
  0x5d   :  { %584 = vmatpush1.bf16.msra.mxu1 %v4738_v40  ;;  %544 = vmatprep.subr.bf16.mxu0 %v4740_v41 }
  0x5e   :  { %585 = vmatprep.subr.bf16.mxu1 %v4742_v42  ;;  %562 = vmatprep.mubr.bf16.mxu0 %v6174_v0 }
  0x5f   :  { %603 = vmatprep.mubr.bf16.mxu1 %v6174_v0 }
  0x60   :  { %545 = vmatpush1.bf16.msra.mxu0 %v4748_v43 }
  0x61   :  { %586 = vmatpush1.bf16.msra.mxu1 %v4750_v44  ;;  %637 = vmatprep.subr.bf16.mxu0 %v4641_v8 }
  0x62   :  { %678 = vmatprep.subr.bf16.mxu1 %v4643_v11 }
  0x63   :  { %563 = vmatmul.mubr.bf16.vlgmr.msra.gmra.mxu0 %v6174_v0 }
  0x64   :  { %604 = vmatmul.mubr.bf16.vlgmr.msra.gmra.mxu1 %v6174_v0  ;;  %638 = vmatpush1.bf16.msra.mxu0 %v4645_v12 }
  0x65   :  { %679 = vmatpush1.bf16.msra.mxu1 %v4647_v13  ;;  %639 = vmatprep.subr.bf16.mxu0 %v4651_v14 }
  0x66   :  { %680 = vmatprep.subr.bf16.mxu1 %v4653_v15  ;;  %669 = vmatprep.mubr.bf16.mxu0 %v6174_v0 }
  0x67   :  { %710 = vmatprep.mubr.bf16.mxu1 %v6174_v0 }
  0x68   :  { %640 = vmatpush1.bf16.msra.mxu0 %v4655_v16 }
  0x69   :  { %681 = vmatpush1.bf16.msra.mxu1 %v4659_v17  ;;  %641 = vmatprep.subr.bf16.mxu0 %v4663_v18 }
  0x6a   :  { %682 = vmatprep.subr.bf16.mxu1 %v4667_v19 }
  0x6c   :  { %642 = vmatpush1.bf16.msra.mxu0 %v4674_v21 }
  0x6d   :  { %683 = vmatpush1.bf16.msra.mxu1 %v4678_v22  ;;  %643 = vmatprep.subr.bf16.mxu0 %v4680_v23 }
  0x6e   :  { %684 = vmatprep.subr.bf16.mxu1 %v4684_v24 }
  0x70   :  { %644 = vmatpush1.bf16.msra.mxu0 %v4690_v25 }
  0x71   :  { %685 = vmatpush1.bf16.msra.mxu1 %v4692_v26  ;;  %645 = vmatprep.subr.bf16.mxu0 %v4694_v27 }
  0x72   :  { %686 = vmatprep.subr.bf16.mxu1 %v4698_v28 }
  0x74   :  { %646 = vmatpush1.bf16.msra.mxu0 %v4705_v30 }
  0x75   :  { %687 = vmatpush1.bf16.msra.mxu1 %v4707_v31  ;;  %647 = vmatprep.subr.bf16.mxu0 %v4711_v32 }
  0x76   :  { %688 = vmatprep.subr.bf16.mxu1 %v4715_v33 }
  0x78   :  { %648 = vmatpush1.bf16.msra.mxu0 %v4719_v34 }
  0x79   :  { %689 = vmatpush1.bf16.msra.mxu1 %v4723_v35  ;;  %649 = vmatprep.subr.bf16.mxu0 %v4730_v37 }
  0x7a   :  { %690 = vmatprep.subr.bf16.mxu1 %v4732_v38 }
  0x7c   :  { %650 = vmatpush1.bf16.msra.mxu0 %v4736_v39 }
  0x7d   :  { %691 = vmatpush1.bf16.msra.mxu1 %v4738_v40  ;;  %651 = vmatprep.subr.bf16.mxu0 %v4740_v41 }
  0x7e   :  { %692 = vmatprep.subr.bf16.mxu1 %v4742_v42 }
  0x80   :  { %652 = vmatpush1.bf16.msra.mxu0 %v4748_v43 }
  0x81   :  { %693 = vmatpush1.bf16.msra.mxu1 %v4750_v44  ;;  %744 = vmatprep.subr.bf16.mxu0 %v4641_v8 }
  0x82   :  { %785 = vmatprep.subr.bf16.mxu1 %v4643_v11 }
 0x103   :  { %v4808_v51 = vpop.f32.mrf.mxu0 }
 0x104   :  { %v4810_v52 = vpop.f32.mrf.mxu1 }
 0x105   :  { %v4817_v55 = vpop.f32.mrf.mxu0 }
 0x106   :  { %v4819_v56 = vpop.f32.mrf.mxu1 }
 0x107   :  { %v262_v59 = vpop.f32.mrf.mxu0 }
 0x108   :  { %v335_v60 = vpop.f32.mrf.mxu1  ;;  %v4829_v62 = vadd.f32 %v262_v59, %v151_v57 }
 0x109   :  { %v4832_v63 = vadd.f32 %v335_v60, %v4814_v53  ;;  %v264_v1 = vpop.f32.mrf.mxu0 }
 0x10a   :  { %v337_v2 = vpop.f32.mrf.mxu1  ;;  %v4834_v3 = vadd.f32 %v264_v1, %v155_v61 }
 0x10b   :  { %v4837_v4 = vadd.f32 %v337_v2, %v4825_v58  ;;  %v268_v5 = vpop.f32.mrf.mxu0 }
 0x10c   :  { %v341_v6 = vpop.f32.mrf.mxu1  ;;  %v4839_v7 = vadd.f32 %v268_v5, %v151_v57 }
 0x10d   :  { %v4842_v9 = vadd.f32 %v341_v6, %v4814_v53  ;;  %v270_v10 = vpop.f32.mrf.mxu0 }
 0x10e   :  { %v343_v20 = vpop.f32.mrf.mxu1  ;;  %v4844_v29 = vadd.f32 %v270_v10, %v155_v61 }
 0x10f   :  { %6181 = vst [vmem:[#allocation17_spill] sm:$0xff] %v4842_v9  ;;  %v4847_v36 = vadd.f32 %v343_v20, %v4825_v58  ;;  %v272_v45 = vpop.f32.mrf.mxu0 }
 0x110   :  { %v345_v50 = vpop.f32.mrf.mxu1  ;;  %v4849_v59 = vadd.f32 %v272_v45, %v151_v57 }
 0x111   :  { %v4852_v60 = vadd.f32 %v345_v50, %v4814_v53  ;;  %v274_v1 = vpop.f32.mrf.mxu0 }
 0x112   :  { %6182 = vst [vmem:[#allocation18_spill] sm:$0xff] %v4849_v59  ;;  %v347_v2 = vpop.f32.mrf.mxu1  ;;  %v4854_v5 = vadd.f32 %v274_v1, %v155_v61 }
 0x113   :  { %6183 = vst [vmem:[#allocation19_spill] sm:$0xff] %v4852_v60  ;;  %v4857_v6 = vadd.f32 %v347_v2, %v4825_v58  ;;  %v278_v47 = vpop.f32.mrf.mxu0 }
 0x114   :  { %6184 = vst [vmem:[#allocation20_spill] sm:$0xff] %v4854_v5  ;;  %v351_v10 = vpop.f32.mrf.mxu1  ;;  %v4859_v49 = vadd.f32 %v278_v47, %v151_v57 }
 0x115   :  { %6185 = vst [vmem:[#allocation21_spill] sm:$0xff] %v4857_v6  ;;  %v4862_v20 = vadd.f32 %v351_v10, %v4814_v53  ;;  %v280_v54 = vpop.f32.mrf.mxu0 }
 0x116   :  { %6186 = vst [vmem:[#allocation22_spill] sm:$0xff] %v4859_v49  ;;  %v353_v45 = vpop.f32.mrf.mxu1  ;;  %v4864_v48 = vadd.f32 %v280_v54, %v155_v61 }
 0x117   :  { %6187 = vst [vmem:[#allocation23_spill] sm:$0xff] %v4862_v20  ;;  %v4867_v50 = vadd.f32 %v353_v45, %v4825_v58  ;;  %v282_v0 = vpop.f32.mrf.mxu0 }
 0x118   :  { %6188 = vst [vmem:[#allocation24_spill] sm:$0xff] %v4864_v48  ;;  %v355_v1 = vpop.f32.mrf.mxu1  ;;  %v4869_v46 = vadd.f32 %v282_v0, %v151_v57 }
 0x119   :  { %6189 = vst [vmem:[#allocation25_spill] sm:$0xff] %v4867_v50  ;;  %v4872_v2 = vadd.f32 %v355_v1, %v4814_v53  ;;  %v284_v60 = vpop.f32.mrf.mxu0 }
 0x11a   :  { %6190 = vst [vmem:[#allocation26_spill] sm:$0xff] %v4869_v46  ;;  %v357_v47 = vpop.f32.mrf.mxu1  ;;  %v4874_v49 = vadd.f32 %v284_v60, %v155_v61 }
 0x11b   :  { %6191 = vst [vmem:[#allocation27_spill] sm:$0xff] %v4872_v2  ;;  %v4877_v10 = vadd.f32 %v357_v47, %v4825_v58  ;;  %v288_v20 = vpop.f32.mrf.mxu0 }
 0x11c   :  { %6192 = vst [vmem:[#allocation28_spill] sm:$0xff] %v4874_v49  ;;  %v361_v54 = vpop.f32.mrf.mxu1  ;;  %v4879_v48 = vadd.f32 %v288_v20, %v151_v57 }
 0x11d   :  { %6193 = vst [vmem:[#allocation29_spill] sm:$0xff] %v4877_v10  ;;  %v4882_v45 = vadd.f32 %v361_v54, %v4814_v53  ;;  %v290_v50 = vpop.f32.mrf.mxu0 }
 0x11e   :  { %6194 = vst [vmem:[#allocation30_spill] sm:$0xff] %v4879_v48  ;;  %v363_v0 = vpop.f32.mrf.mxu1  ;;  %v4884_v46 = vadd.f32 %v290_v50, %v155_v61  ;;  %v259_v48 = vadd.f32 %v4808_v51, %v151_v57 }
 0x11f   :  { %6195 = vst [vmem:[#allocation31_spill] sm:$0xff] %v4882_v45  ;;  %v4887_v1 = vadd.f32 %v363_v0, %v4825_v58  ;;  %v292_v2 = vpop.f32.mrf.mxu0  ;;  %v261_v0 = vadd.f32 %v4817_v55, %v155_v61 }
 0x120   :  { %6196 = vst [vmem:[#allocation32_spill] sm:$0xff] %v4884_v46  ;;  %v365_v60 = vpop.f32.mrf.mxu1  ;;  %v4889_v49 = vadd.f32 %v292_v2, %v151_v57  ;;  %v334_v57 = vadd.f32 %v4819_v56, %v4825_v58 }
 0x121   :  { %6197 = vst [vmem:[#allocation33_spill] sm:$0xff] %v4887_v1  ;;  %v4892_v47 = vadd.f32 %v365_v60, %v4814_v53  ;;  %v294_v10 = vpop.f32.mrf.mxu0 }
 0x122   :  { %6198 = vst [vmem:[#allocation34_spill] sm:$0xff] %v4889_v49  ;;  %v367_v20 = vpop.f32.mrf.mxu1  ;;  %v4895_v54 = vadd.f32 %v294_v10, %v155_v61 }
 0x123   :  { %6199 = vst [vmem:[#allocation35_spill] sm:$0xff] %v4892_v47  ;;  %v4898_v45 = vadd.f32 %v367_v20, %v4825_v58  ;;  %v564_v50 = vpop.f32.mrf.mxu0  ;;  %v332_v20 = vadd.f32 %v4810_v52, %v4814_v53 }
 0x124   :  { %v605_v46 = vpop.f32.mrf.mxu1  ;;  %v565_v1 = vadd.f32 %v564_v50, %v259_v48 }
 0x125   :  { %v566_v6 = vpop.f32.mrf.mxu0  ;;  %v606_v61 = vadd.f32 %v605_v46, %v332_v20 }
 0x126   :  { %v607_v2 = vpop.f32.mrf.mxu1  ;;  %v3674_v49 = vmul.f32 -1.442695, %v565_v1  ;;  %v567_v5 = vadd.f32 %v566_v6, %v261_v0 }
 0x127   :  { %v568_v60 = vpop.f32.mrf.mxu0  ;;  %v608_v10 = vadd.f32 %v607_v2, %v334_v57 }
 0x128   :  { %v609_v47 = vpop.f32.mrf.mxu1  ;;  %4025 = vpow2.f32 %v3674_v49  ;;  %v3675_v59 = vmul.f32 -1.442695, %v567_v5  ;;  %v6200_v60 = vmov 0  }
 0x129   :  { %v569_v9 = vpop.f32.mrf.mxu0  ;;  %v3676_v55 = vmul.f32 -1.442695, %v608_v10 }
 0x12a   :  { %v610_v51 = vpop.f32.mrf.mxu1  ;;  %4027 = vpow2.f32 %v3675_v59 }
 0x12b   :  { %4029 = vpow2.f32 %v3676_v55 }
 0x135   :  { %v4026_v48 = vpop.eup %4025 }
 0x136   :  { %v615_v50 = vadd.f32 1.0, %v4026_v48 }
 0x137   :  { %v4028_v1 = vpop.eup %4027 }
 0x138   :  { %4031 = vrcp.f32 %v615_v50  ;;  %v621_v6 = vadd.f32 1.0, %v4028_v1  ;;  %v4030_v49 = vpop.eup %4029 }
 0x139   :  { %4033 = vtanh.f32 %v606_v61  ;;  %v628_v47 = vadd.f32 1.0, %v4030_v49 }
 0x13a   :  { %4035 = vrcp.f32 %v621_v6 }
 0x13b   :  { %4037 = vrcp.f32 %v628_v47 }
 0x145   :  { %v4032_v9 = vpop.eup %4031 }
 0x146   :  { %v4034_v59 = vpop.eup %4033 }
 0x147   :  { %v4036_v5 = vpop.eup %4035  ;;  %v632_v58 = vmul.f32 %v4034_v59, %v4032_v9 }
 0x148   :  { %v631_v56 = vmul.f32 0.0, %v4036_v5  ;;  %v4038_v46 = vpop.eup %4037 }
 0x14a   :  { %v4905_v0 = vadd.f32 %v632_v58, %v631_v56 }
 0x14c   :  { %4039 = vtanh.f32 %v4905_v0 }
 0x159   :  { %v4040_v52 = vpop.eup %4039 }
 0x15a   :  { %v4908_v53 = vmul.f32 %v4040_v52, %v4038_v46 }
 0x15c   :  { %v636_v2 = vpack.c.bf16 %v4908_v53, %v4908_v53 }
 0x15e   :  { %670 = vmatmul.mubr.bf16.vlgmr.msra.gmra.mxu0 %v636_v2  ;;  %711 = vmatmul.mubr.bf16.vlgmr.msra.gmra.mxu1 %v636_v2 }
 0x15f   :  { %745 = vmatpush1.bf16.msra.mxu0 %v4645_v12  ;;  %786 = vmatpush1.bf16.msra.mxu1 %v4647_v13 }
 0x160   :  { %746 = vmatprep.subr.bf16.mxu0 %v4651_v14  ;;  %787 = vmatprep.subr.bf16.mxu1 %v4653_v15 }
 0x161   :  { %776 = vmatprep.mubr.bf16.mxu0 %v6200_v60  ;;  %817 = vmatprep.mubr.bf16.mxu1 %v6200_v60 }
 0x163   :  { %747 = vmatpush1.bf16.msra.mxu0 %v4655_v16  ;;  %788 = vmatpush1.bf16.msra.mxu1 %v4659_v17 }
 0x164   :  { %748 = vmatprep.subr.bf16.mxu0 %v4663_v18  ;;  %789 = vmatprep.subr.bf16.mxu1 %v4667_v19 }
 0x167   :  { %749 = vmatpush1.bf16.msra.mxu0 %v4674_v21  ;;  %790 = vmatpush1.bf16.msra.mxu1 %v4678_v22 }
 0x168   :  { %750 = vmatprep.subr.bf16.mxu0 %v4680_v23  ;;  %791 = vmatprep.subr.bf16.mxu1 %v4684_v24 }
 0x16b   :  { %751 = vmatpush1.bf16.msra.mxu0 %v4690_v25  ;;  %792 = vmatpush1.bf16.msra.mxu1 %v4692_v26 }
 0x16c   :  { %752 = vmatprep.subr.bf16.mxu0 %v4694_v27  ;;  %793 = vmatprep.subr.bf16.mxu1 %v4698_v28 }
 0x16f   :  { %753 = vmatpush1.bf16.msra.mxu0 %v4705_v30  ;;  %794 = vmatpush1.bf16.msra.mxu1 %v4707_v31 }
 0x170   :  { %754 = vmatprep.subr.bf16.mxu0 %v4711_v32  ;;  %795 = vmatprep.subr.bf16.mxu1 %v4715_v33 }
 0x173   :  { %755 = vmatpush1.bf16.msra.mxu0 %v4719_v34  ;;  %796 = vmatpush1.bf16.msra.mxu1 %v4723_v35 }
 0x174   :  { %756 = vmatprep.subr.bf16.mxu0 %v4730_v37  ;;  %797 = vmatprep.subr.bf16.mxu1 %v4732_v38 }
 0x177   :  { %757 = vmatpush1.bf16.msra.mxu0 %v4736_v39  ;;  %798 = vmatpush1.bf16.msra.mxu1 %v4738_v40 }
 0x178   :  { %758 = vmatprep.subr.bf16.mxu0 %v4740_v41  ;;  %799 = vmatprep.subr.bf16.mxu1 %v4742_v42 }
 0x17b   :  { %759 = vmatpush1.bf16.msra.mxu0 %v4748_v43  ;;  %800 = vmatpush1.bf16.msra.mxu1 %v4750_v44 }
 0x17c   :  { %851 = vmatprep.subr.bf16.mxu0 %v4641_v8  ;;  %892 = vmatprep.subr.bf16.mxu1 %v4643_v11 }
 0x21e   :  { %v671_v51 = vpop.f32.mrf.mxu0  ;;  %v712_v57 = vpop.f32.mrf.mxu1 }
 0x21f   :  { %v672_v10 = vadd.f32 %v671_v51, %v4829_v62  ;;  %v713_v5 = vadd.f32 %v712_v57, %v4832_v63 }
 0x220   :  { %v673_v20 = vpop.f32.mrf.mxu0  ;;  %v714_v55 = vpop.f32.mrf.mxu1 }
 0x221   :  { %v3677_v48 = vmul.f32 -1.442695, %v672_v10  ;;  %v674_v61 = vadd.f32 %v673_v20, %v4834_v3  ;;  %v715_v59 = vadd.f32 %v714_v55, %v4837_v4 }
 0x222   :  { %v675_v50 = vpop.f32.mrf.mxu0  ;;  %v716_v1 = vpop.f32.mrf.mxu1 }
 0x223   :  { %4041 = vpow2.f32 %v3677_v48  ;;  %v3678_v6 = vmul.f32 -1.442695, %v674_v61  ;;  %v3679_v47 = vmul.f32 -1.442695, %v715_v59 }
 0x224   :  { %v676_v49 = vpop.f32.mrf.mxu0  ;;  %v717_v9 = vpop.f32.mrf.mxu1 }
 0x225   :  { %4043 = vpow2.f32 %v3678_v6 }
 0x226   :  { %4045 = vtanh.f32 %v713_v5 }
 0x227   :  { %4047 = vpow2.f32 %v3679_v47 }
 0x230   :  { %v4042_v56 = vpop.eup %4041 }
 0x231   :  { %v722_v58 = vadd.f32 1.0, %v4042_v56 }
 0x232   :  { %v4044_v62 = vpop.eup %4043 }
 0x233   :  { %4049 = vrcp.f32 %v722_v58  ;;  %v728_v46 = vadd.f32 1.0, %v4044_v62  ;;  %v4046_v3 = vpop.eup %4045 }
 0x234   :  { %v4048_v52 = vpop.eup %4047 }
 0x235   :  { %4051 = vrcp.f32 %v728_v46  ;;  %v735_v20 = vadd.f32 1.0, %v4048_v52  ;;  %v6201_v46 = vld [vmem:[#allocation17_spill] sm:$0xff] }
 0x237   :  { %4053 = vrcp.f32 %v735_v20 }
 0x240   :  { %v4050_v2 = vpop.eup %4049 }
 0x241   :  { %v739_v51 = vmul.f32 %v4050_v2, %v4046_v3 }
 0x242   :  { %v4052_v10 = vpop.eup %4051 }
 0x243   :  { %v738_v48 = vmul.f32 %v4052_v10, %v4905_v0 }
 0x244   :  { %v4054_v63 = vpop.eup %4053 }
 0x245   :  { %v4951_v4 = vadd.f32 %v739_v51, %v738_v48 }
 0x247   :  { %4055 = vtanh.f32 %v4951_v4 }
 0x254   :  { %v4056_v57 = vpop.eup %4055 }
 0x255   :  { %v4954_v55 = vmul.f32 %v4056_v57, %v4054_v63 }
 0x257   :  { %v743_v61 = vpack.c.bf16 %v4954_v55, %v4954_v55 }
 0x259   :  { %777 = vmatmul.mubr.bf16.vlgmr.msra.gmra.mxu0 %v743_v61  ;;  %818 = vmatmul.mubr.bf16.vlgmr.msra.gmra.mxu1 %v743_v61 }
 0x25a   :  { %852 = vmatpush1.bf16.msra.mxu0 %v4645_v12  ;;  %893 = vmatpush1.bf16.msra.mxu1 %v4647_v13 }
 0x25b   :  { %853 = vmatprep.subr.bf16.mxu0 %v4651_v14  ;;  %894 = vmatprep.subr.bf16.mxu1 %v4653_v15 }
 0x25c   :  { %883 = vmatprep.mubr.bf16.mxu0 %v6200_v60  ;;  %924 = vmatprep.mubr.bf16.mxu1 %v6200_v60 }
 0x25e   :  { %854 = vmatpush1.bf16.msra.mxu0 %v4655_v16  ;;  %895 = vmatpush1.bf16.msra.mxu1 %v4659_v17 }
 0x25f   :  { %855 = vmatprep.subr.bf16.mxu0 %v4663_v18  ;;  %896 = vmatprep.subr.bf16.mxu1 %v4667_v19 }
 0x262   :  { %856 = vmatpush1.bf16.msra.mxu0 %v4674_v21  ;;  %897 = vmatpush1.bf16.msra.mxu1 %v4678_v22 }
 0x263   :  { %857 = vmatprep.subr.bf16.mxu0 %v4680_v23  ;;  %898 = vmatprep.subr.bf16.mxu1 %v4684_v24 }
 0x266   :  { %858 = vmatpush1.bf16.msra.mxu0 %v4690_v25  ;;  %899 = vmatpush1.bf16.msra.mxu1 %v4692_v26 }
 0x267   :  { %859 = vmatprep.subr.bf16.mxu0 %v4694_v27  ;;  %900 = vmatprep.subr.bf16.mxu1 %v4698_v28 }
 0x26a   :  { %860 = vmatpush1.bf16.msra.mxu0 %v4705_v30  ;;  %901 = vmatpush1.bf16.msra.mxu1 %v4707_v31 }
 0x26b   :  { %861 = vmatprep.subr.bf16.mxu0 %v4711_v32  ;;  %902 = vmatprep.subr.bf16.mxu1 %v4715_v33 }
 0x26e   :  { %862 = vmatpush1.bf16.msra.mxu0 %v4719_v34  ;;  %903 = vmatpush1.bf16.msra.mxu1 %v4723_v35 }
 0x26f   :  { %863 = vmatprep.subr.bf16.mxu0 %v4730_v37  ;;  %904 = vmatprep.subr.bf16.mxu1 %v4732_v38 }
 0x272   :  { %864 = vmatpush1.bf16.msra.mxu0 %v4736_v39  ;;  %905 = vmatpush1.bf16.msra.mxu1 %v4738_v40 }
 0x273   :  { %865 = vmatprep.subr.bf16.mxu0 %v4740_v41  ;;  %906 = vmatprep.subr.bf16.mxu1 %v4742_v42 }
 0x276   :  { %866 = vmatpush1.bf16.msra.mxu0 %v4748_v43  ;;  %907 = vmatpush1.bf16.msra.mxu1 %v4750_v44 }
 0x277   :  { %958 = vmatprep.subr.bf16.mxu0 %v4641_v8  ;;  %999 = vmatprep.subr.bf16.mxu1 %v4643_v11 }
 0x319   :  { %v778_v0 = vpop.f32.mrf.mxu0  ;;  %v819_v50 = vpop.f32.mrf.mxu1 }
 0x31a   :  { %v779_v1 = vadd.f32 %v778_v0, %v4839_v7  ;;  %v820_v11 = vadd.f32 %v819_v50, %v6201_v46 }
 0x31b   :  { %v780_v6 = vpop.f32.mrf.mxu0  ;;  %v821_v49 = vpop.f32.mrf.mxu1 }
 0x31c   :  { %v3680_v9 = vmul.f32 -1.442695, %v779_v1  ;;  %v781_v59 = vadd.f32 %v780_v6, %v4844_v29  ;;  %v822_v8 = vadd.f32 %v821_v49, %v4847_v36 }
 0x31d   :  { %v782_v5 = vpop.f32.mrf.mxu0  ;;  %v823_v47 = vpop.f32.mrf.mxu1 }
 0x31e   :  { %4057 = vpow2.f32 %v3680_v9  ;;  %v3681_v56 = vmul.f32 -1.442695, %v781_v59  ;;  %v3682_v3 = vmul.f32 -1.442695, %v822_v8 }
 0x31f   :  { %v783_v58 = vpop.f32.mrf.mxu0  ;;  %v824_v62 = vpop.f32.mrf.mxu1 }
 0x320   :  { %4059 = vpow2.f32 %v3681_v56 }
 0x321   :  { %4061 = vtanh.f32 %v820_v11 }
 0x322   :  { %4063 = vpow2.f32 %v3682_v3 }
 0x32b   :  { %v4058_v52 = vpop.eup %4057 }
 0x32c   :  { %v829_v2 = vadd.f32 1.0, %v4058_v52 }
 0x32d   :  { %v4060_v7 = vpop.eup %4059 }
 0x32e   :  { %4065 = vrcp.f32 %v829_v2  ;;  %v835_v51 = vadd.f32 1.0, %v4060_v7  ;;  %v4062_v29 = vpop.eup %4061 }
 0x32f   :  { %v4064_v10 = vpop.eup %4063 }
 0x330   :  { %4067 = vrcp.f32 %v835_v51  ;;  %v842_v57 = vadd.f32 1.0, %v4064_v10  ;;  %v5054_v51 = vld [vmem:[#allocation5 + $0xe0] ss:$16 sps:$4 sm:$0xff]   ;;  %v5060_v10 = vld [vmem:[#allocation5 + $0xc4] ss:$16 sps:$4 sm:$0xff]  }
 0x332   :  { %4069 = vrcp.f32 %v842_v57  ;;  %v5074_v57 = vld [vmem:[#allocation5 + $0xa4] ss:$16 sps:$4 sm:$0xff]  }
 0x33b   :  { %v4066_v20 = vpop.eup %4065 }
 0x33c   :  { %v846_v48 = vmul.f32 %v4066_v20, %v4062_v29  ;;  %v5057_v29 = vld [vmem:[#allocation5 + $0xe8] ss:$16 sps:$4 sm:$0xff]   ;;  %v5063_v20 = vld [vmem:[#allocation5 + $0xcc] ss:$16 sps:$4 sm:$0xff]  }
 0x33d   :  { %v4068_v63 = vpop.eup %4067 }
 0x33e   :  { %v845_v61 = vmul.f32 %v4068_v63, %v4951_v4  ;;  %v5071_v63 = vld [vmem:[#allocation5 + $0xc8] ss:$16 sps:$4 sm:$0xff]  }
 0x33f   :  { %v4070_v0 = vpop.eup %4069 }
 0x340   :  { %v4997_v36 = vadd.f32 %v846_v48, %v845_v61  ;;  %v5068_v48 = vld [vmem:[#allocation5 + $0xc0] ss:$16 sps:$4 sm:$0xff]   ;;  %v5077_v61 = vld [vmem:[#allocation5 + $0xac] ss:$16 sps:$4 sm:$0xff]  }
 0x342   :  { %4071 = vtanh.f32 %v4997_v36 }
 0x34f   :  { %v4072_v50 = vpop.eup %4071 }
 0x350   :  { %v5000_v1 = vmul.f32 %v4072_v50, %v4070_v0  ;;  %v5083_v0 = vld [vmem:[#allocation5 + $0xa8] ss:$16 sps:$4 sm:$0xff]   ;;  %v5086_v50 = vld [vmem:[#allocation5 + $0x84] ss:$16 sps:$4 sm:$0xff]  }
 0x352   :  { %v850_v6 = vpack.c.bf16 %v5000_v1, %v5000_v1 }
 0x354   :  { %884 = vmatmul.mubr.bf16.vlgmr.msra.gmra.mxu0 %v850_v6  ;;  %925 = vmatmul.mubr.bf16.vlgmr.msra.gmra.mxu1 %v850_v6  ;;  %v5089_v6 = vld [vmem:[#allocation5 + $0x8c] ss:$16 sps:$4 sm:$0xff]  }
 0x355   :  { %959 = vmatpush1.bf16.msra.mxu0 %v4645_v12  ;;  %1000 = vmatpush1.bf16.msra.mxu1 %v4647_v13  ;;  %v5036_v12 = vld [vmem:[#allocation5 + $0xe4] ss:$16 sps:$4 sm:$0xff]   ;;  %v5039_v13 = vld [vmem:[#allocation5 + $0xec] ss:$16 sps:$4 sm:$0xff]  }
 0x356   :  { %960 = vmatprep.subr.bf16.mxu0 %v4651_v14  ;;  %1001 = vmatprep.subr.bf16.mxu1 %v4653_v15 }
 0x357   :  { %990 = vmatprep.mubr.bf16.mxu0 %v6200_v60  ;;  %1031 = vmatprep.mubr.bf16.mxu1 %v6200_v60 }
 0x359   :  { %961 = vmatpush1.bf16.msra.mxu0 %v4655_v16  ;;  %1002 = vmatpush1.bf16.msra.mxu1 %v4659_v17  ;;  %v6202_v16 = vld [vmem:[#allocation18_spill] sm:$0xff] }
 0x35a   :  { %962 = vmatprep.subr.bf16.mxu0 %v4663_v18  ;;  %1003 = vmatprep.subr.bf16.mxu1 %v4667_v19 }
 0x35d   :  { %963 = vmatpush1.bf16.msra.mxu0 %v4674_v21  ;;  %1004 = vmatpush1.bf16.msra.mxu1 %v4678_v22  ;;  %v6203_v22 = vld [vmem:[#allocation20_spill] sm:$0xff] }
 0x35e   :  { %964 = vmatprep.subr.bf16.mxu0 %v4680_v23  ;;  %1005 = vmatprep.subr.bf16.mxu1 %v4684_v24 }
 0x361   :  { %965 = vmatpush1.bf16.msra.mxu0 %v4690_v25  ;;  %1006 = vmatpush1.bf16.msra.mxu1 %v4692_v26 }
 0x362   :  { %966 = vmatprep.subr.bf16.mxu0 %v4694_v27  ;;  %1007 = vmatprep.subr.bf16.mxu1 %v4698_v28 }
 0x365   :  { %967 = vmatpush1.bf16.msra.mxu0 %v4705_v30  ;;  %1008 = vmatpush1.bf16.msra.mxu1 %v4707_v31  ;;  %v6204_v30 = vld [vmem:[#allocation21_spill] sm:$0xff] }
 0x366   :  { %968 = vmatprep.subr.bf16.mxu0 %v4711_v32  ;;  %1009 = vmatprep.subr.bf16.mxu1 %v4715_v33  ;;  %v6205_v32 = vld [vmem:[#allocation19_spill] sm:$0xff] }
 0x369   :  { %969 = vmatpush1.bf16.msra.mxu0 %v4719_v34  ;;  %1010 = vmatpush1.bf16.msra.mxu1 %v4723_v35 }
 0x36a   :  { %970 = vmatprep.subr.bf16.mxu0 %v4730_v37  ;;  %1011 = vmatprep.subr.bf16.mxu1 %v4732_v38 }
 0x36d   :  { %971 = vmatpush1.bf16.msra.mxu0 %v4736_v39  ;;  %1012 = vmatpush1.bf16.msra.mxu1 %v4738_v40 }
 0x36e   :  { %972 = vmatprep.subr.bf16.mxu0 %v4740_v41  ;;  %1013 = vmatprep.subr.bf16.mxu1 %v4742_v42 }
 0x371   :  { %973 = vmatpush1.bf16.msra.mxu0 %v4748_v43  ;;  %1014 = vmatpush1.bf16.msra.mxu1 %v4750_v44 }
 0x372   :  { %1065 = vmatprep.subr.bf16.mxu0 %v5036_v12  ;;  %1106 = vmatprep.subr.bf16.mxu1 %v5039_v13 }
 0x414   :  { %v885_v14 = vpop.f32.mrf.mxu0  ;;  %v926_v15 = vpop.f32.mrf.mxu1 }
 0x415   :  { %v886_v17 = vadd.f32 %v885_v14, %v6202_v16  ;;  %v927_v33 = vadd.f32 %v926_v15, %v6205_v32  ;;  %v5092_v14 = vld [vmem:[#allocation5 + $0x80] ss:$16 sps:$4 sm:$0xff]   ;;  %v5095_v15 = vld [vmem:[#allocation5 + $0x88] ss:$16 sps:$4 sm:$0xff]   ;;  %v5098_v16 = vld [vmem:[#allocation5 + $0x64] ss:$16 sps:$4 sm:$0xff]  }
 0x416   :  { %v887_v18 = vpop.f32.mrf.mxu0  ;;  %v928_v19 = vpop.f32.mrf.mxu1  ;;  %v6209_v32 = vld [vmem:[#allocation23_spill] sm:$0xff] }
 0x417   :  { %v3683_v21 = vmul.f32 -1.442695, %v886_v17  ;;  %v888_v23 = vadd.f32 %v887_v18, %v6203_v22  ;;  %v929_v31 = vadd.f32 %v928_v19, %v6204_v30  ;;  %v5101_v17 = vld [vmem:[#allocation5 + $0x6c] ss:$16 sps:$4 sm:$0xff]   ;;  %v5104_v18 = vld [vmem:[#allocation5 + $0x60] ss:$16 sps:$4 sm:$0xff]  }
 0x418   :  { %v889_v24 = vpop.f32.mrf.mxu0  ;;  %v930_v25 = vpop.f32.mrf.mxu1  ;;  %v5107_v19 = vld [vmem:[#allocation5 + $0x68] ss:$16 sps:$4 sm:$0xff]   ;;  %v5113_v22 = vld [vmem:[#allocation5 + $0x4c] ss:$16 sps:$4 sm:$0xff]  }
 0x419   :  { %4073 = vpow2.f32 %v3683_v21  ;;  %v3684_v26 = vmul.f32 -1.442695, %v888_v23  ;;  %v3685_v34 = vmul.f32 -1.442695, %v929_v31  ;;  %v5110_v21 = vld [vmem:[#allocation5 + $0x44] ss:$16 sps:$4 sm:$0xff]  }
 0x41a   :  { %v890_v27 = vpop.f32.mrf.mxu0  ;;  %v931_v28 = vpop.f32.mrf.mxu1  ;;  %v5116_v23 = vld [vmem:[#allocation5 + $0x40] ss:$16 sps:$4 sm:$0xff]  }
 0x41b   :  { %4075 = vpow2.f32 %v3684_v26  ;;  %v6206_v24 = vld [vmem:[#allocation22_spill] sm:$0xff] }
 0x41c   :  { %4077 = vtanh.f32 %v927_v33 }
 0x41d   :  { %4079 = vpow2.f32 %v3685_v34 }
 0x426   :  { %v4074_v4 = vpop.eup %4073 }
 0x427   :  { %v936_v49 = vadd.f32 1.0, %v4074_v4 }
 0x428   :  { %v4076_v9 = vpop.eup %4075 }
 0x429   :  { %4081 = vrcp.f32 %v936_v49  ;;  %v942_v59 = vadd.f32 1.0, %v4076_v9  ;;  %v4078_v5 = vpop.eup %4077 }
 0x42a   :  { %v4080_v47 = vpop.eup %4079 }
 0x42b   :  { %4083 = vrcp.f32 %v942_v59  ;;  %v949_v8 = vadd.f32 1.0, %v4080_v47 }
 0x42d   :  { %4085 = vrcp.f32 %v949_v8 }
 0x436   :  { %v4082_v56 = vpop.eup %4081 }
 0x437   :  { %v953_v58 = vmul.f32 %v4082_v56, %v4078_v5 }
 0x438   :  { %v4084_v62 = vpop.eup %4083 }
 0x439   :  { %v952_v46 = vmul.f32 %v4084_v62, %v4997_v36  ;;  %v5080_v36 = vld [vmem:[#allocation5 + $0xa0] ss:$16 sps:$4 sm:$0xff]  }
 0x43a   :  { %v4086_v3 = vpop.eup %4085 }
 0x43b   :  { %v5047_v11 = vadd.f32 %v953_v58, %v952_v46 }
 0x43d   :  { %4087 = vtanh.f32 %v5047_v11 }
 0x44a   :  { %v4088_v52 = vpop.eup %4087 }
 0x44b   :  { %v5050_v2 = vmul.f32 %v4088_v52, %v4086_v3 }
 0x44d   :  { %v957_v7 = vpack.c.bf16 %v5050_v2, %v5050_v2 }
 0x44f   :  { %991 = vmatmul.mubr.bf16.vlgmr.msra.gmra.mxu0 %v957_v7  ;;  %1032 = vmatmul.mubr.bf16.vlgmr.msra.gmra.mxu1 %v957_v7 }
 0x450   :  { %1066 = vmatpush1.bf16.msra.mxu0 %v5054_v51  ;;  %1107 = vmatpush1.bf16.msra.mxu1 %v5057_v29 }
 0x451   :  { %1067 = vmatprep.subr.bf16.mxu0 %v5060_v10  ;;  %1108 = vmatprep.subr.bf16.mxu1 %v5063_v20 }
 0x452   :  { %1097 = vmatprep.mubr.bf16.mxu0 %v6200_v60  ;;  %1138 = vmatprep.mubr.bf16.mxu1 %v6200_v60 }
 0x454   :  { %1068 = vmatpush1.bf16.msra.mxu0 %v5068_v48  ;;  %1109 = vmatpush1.bf16.msra.mxu1 %v5071_v63 }
 0x455   :  { %1069 = vmatprep.subr.bf16.mxu0 %v5074_v57  ;;  %1110 = vmatprep.subr.bf16.mxu1 %v5077_v61 }
 0x458   :  { %1070 = vmatpush1.bf16.msra.mxu0 %v5080_v36  ;;  %1111 = vmatpush1.bf16.msra.mxu1 %v5083_v0 }
 0x459   :  { %1071 = vmatprep.subr.bf16.mxu0 %v5086_v50  ;;  %1112 = vmatprep.subr.bf16.mxu1 %v5089_v6 }
 0x45c   :  { %1072 = vmatpush1.bf16.msra.mxu0 %v5092_v14  ;;  %1113 = vmatpush1.bf16.msra.mxu1 %v5095_v15 }
 0x45d   :  { %1073 = vmatprep.subr.bf16.mxu0 %v5098_v16  ;;  %1114 = vmatprep.subr.bf16.mxu1 %v5101_v17 }
 0x460   :  { %1074 = vmatpush1.bf16.msra.mxu0 %v5104_v18  ;;  %1115 = vmatpush1.bf16.msra.mxu1 %v5107_v19 }
 0x461   :  { %1075 = vmatprep.subr.bf16.mxu0 %v5110_v21  ;;  %1116 = vmatprep.subr.bf16.mxu1 %v5113_v22 }
 0x464   :  { %1076 = vmatpush1.bf16.msra.mxu0 %v5116_v23  ;;  %1117 = vmatpush1.bf16.msra.mxu1 %v4723_v35 }
 0x465   :  { %1077 = vmatprep.subr.bf16.mxu0 %v4730_v37  ;;  %1118 = vmatprep.subr.bf16.mxu1 %v4732_v38 }
 0x468   :  { %1078 = vmatpush1.bf16.msra.mxu0 %v4736_v39  ;;  %1119 = vmatpush1.bf16.msra.mxu1 %v4738_v40  ;;  %v6207_v40 = vld [vmem:[#allocation24_spill] sm:$0xff] }
 0x469   :  { %1079 = vmatprep.subr.bf16.mxu0 %v4740_v41  ;;  %1120 = vmatprep.subr.bf16.mxu1 %v4742_v42 }
 0x46c   :  { %1080 = vmatpush1.bf16.msra.mxu0 %v4748_v43  ;;  %1121 = vmatpush1.bf16.msra.mxu1 %v4750_v44  ;;  %v6208_v44 = vld [vmem:[#allocation25_spill] sm:$0xff] }
 0x46d   :  { %1172 = vmatprep.subr.bf16.mxu0 %v5036_v12  ;;  %1213 = vmatprep.subr.bf16.mxu1 %v5039_v13 }
 0x50f   :  { %v992_v35 = vpop.f32.mrf.mxu0  ;;  %v1033_v37 = vpop.f32.mrf.mxu1 }
 0x510   :  { %v993_v38 = vadd.f32 %v992_v35, %v6206_v24  ;;  %v1034_v33 = vadd.f32 %v1033_v37, %v6209_v32  ;;  %v5168_v24 = vld [vmem:[#allocation5 + $0x24] ss:$16 sps:$4 sm:$0xff]  }
 0x511   :  { %v994_v25 = vpop.f32.mrf.mxu0  ;;  %v1035_v39 = vpop.f32.mrf.mxu1 }
 0x512   :  { %v3686_v26 = vmul.f32 -1.442695, %v993_v38  ;;  %v995_v27 = vadd.f32 %v994_v25, %v6207_v40  ;;  %v1036_v31 = vadd.f32 %v1035_v39, %v6208_v44  ;;  %v5171_v38 = vld [vmem:[#allocation5 + $0x2c] ss:$16 sps:$4 sm:$0xff]   ;;  %v5174_v25 = vld [vmem:[#allocation5 + $0x20] ss:$16 sps:$4 sm:$0xff]  }
 0x513   :  { %v996_v41 = vpop.f32.mrf.mxu0  ;;  %v1037_v28 = vpop.f32.mrf.mxu1  ;;  %v5177_v39 = vld [vmem:[#allocation5 + $0x28] ss:$16 sps:$4 sm:$0xff]   ;;  %v5183_v40 = vld [vmem:[#allocation5 + $0xc] ss:$16 sps:$4 sm:$0xff]  }
 0x514   :  { %4089 = vpow2.f32 %v3686_v26  ;;  %v3687_v42 = vmul.f32 -1.442695, %v995_v27  ;;  %v3688_v34 = vmul.f32 -1.442695, %v1036_v31  ;;  %v5180_v26 = vld [vmem:[#allocation5 + $0x4] ss:$16 sps:$4 sm:$0xff]  }
 0x515   :  { %v997_v43 = vpop.f32.mrf.mxu0  ;;  %v1038_v30 = vpop.f32.mrf.mxu1  ;;  %v5186_v27 = vld [vmem:[#allocation5] ss:$16 sps:$4 sm:$0xff]   ;;  %v5189_v41 = vld [vmem:[#allocation5 + $0x8] ss:$16 sps:$4 sm:$0xff]  }
 0x516   :  { %4091 = vpow2.f32 %v3687_v42  ;;  %v6210_v43 = vld [vmem:[#allocation26_spill] sm:$0xff] }
 0x517   :  { %4093 = vtanh.f32 %v1034_v33  ;;  %v6211_v33 = vld [vmem:[#allocation28_spill] sm:$0xff] }
 0x518   :  { %4095 = vpow2.f32 %v3688_v34 }
 0x521   :  { %v4090_v4 = vpop.eup %4089 }
 0x522   :  { %v1043_v49 = vadd.f32 1.0, %v4090_v4 }
 0x523   :  { %v4092_v9 = vpop.eup %4091 }
 0x524   :  { %4097 = vrcp.f32 %v1043_v49  ;;  %v1049_v59 = vadd.f32 1.0, %v4092_v9  ;;  %v4094_v5 = vpop.eup %4093 }
 0x525   :  { %v4096_v47 = vpop.eup %4095 }
 0x526   :  { %4099 = vrcp.f32 %v1049_v59  ;;  %v1056_v8 = vadd.f32 1.0, %v4096_v47  ;;  %v6212_v47 = vld [vmem:[#allocation29_spill] sm:$0xff] }
 0x528   :  { %4101 = vrcp.f32 %v1056_v8 }
 0x531   :  { %v4098_v56 = vpop.eup %4097 }
 0x532   :  { %v1060_v58 = vmul.f32 %v4098_v56, %v4094_v5  ;;  %v6213_v56 = vld [vmem:[#allocation27_spill] sm:$0xff] }
 0x533   :  { %v4100_v62 = vpop.eup %4099 }
 0x534   :  { %v1059_v46 = vmul.f32 %v4100_v62, %v5047_v11  ;;  %v5165_v11 = vld [vmem:[#allocation5 + $0x48] ss:$16 sps:$4 sm:$0xff]  }
 0x535   :  { %v4102_v52 = vpop.eup %4101 }
 0x536   :  { %v5135_v3 = vadd.f32 %v1060_v58, %v1059_v46 }
 0x538   :  { %4103 = vtanh.f32 %v5135_v3 }
 0x545   :  { %v4104_v7 = vpop.eup %4103 }
 0x546   :  { %v5138_v35 = vmul.f32 %v4104_v7, %v4102_v52 }
 0x548   :  { %v1064_v37 = vpack.c.bf16 %v5138_v35, %v5138_v35 }
 0x54a   :  { %1098 = vmatmul.mubr.bf16.vlgmr.msra.gmra.mxu0 %v1064_v37  ;;  %1139 = vmatmul.mubr.bf16.vlgmr.msra.gmra.mxu1 %v1064_v37 }
 0x54b   :  { %1173 = vmatpush1.bf16.msra.mxu0 %v5054_v51  ;;  %1214 = vmatpush1.bf16.msra.mxu1 %v5057_v29 }
 0x54c   :  { %1174 = vmatprep.subr.bf16.mxu0 %v5060_v10  ;;  %1215 = vmatprep.subr.bf16.mxu1 %v5063_v20 }
 0x54d   :  { %1204 = vmatprep.mubr.bf16.mxu0 %v6200_v60  ;;  %1245 = vmatprep.mubr.bf16.mxu1 %v6200_v60 }
 0x54f   :  { %1175 = vmatpush1.bf16.msra.mxu0 %v5068_v48  ;;  %1216 = vmatpush1.bf16.msra.mxu1 %v5071_v63 }
 0x550   :  { %1176 = vmatprep.subr.bf16.mxu0 %v5074_v57  ;;  %1217 = vmatprep.subr.bf16.mxu1 %v5077_v61 }
 0x553   :  { %1177 = vmatpush1.bf16.msra.mxu0 %v5080_v36  ;;  %1218 = vmatpush1.bf16.msra.mxu1 %v5083_v0 }
 0x554   :  { %1178 = vmatprep.subr.bf16.mxu0 %v5086_v50  ;;  %1219 = vmatprep.subr.bf16.mxu1 %v5089_v6 }
 0x557   :  { %1179 = vmatpush1.bf16.msra.mxu0 %v5092_v14  ;;  %1220 = vmatpush1.bf16.msra.mxu1 %v5095_v15 }
 0x558   :  { %1180 = vmatprep.subr.bf16.mxu0 %v5098_v16  ;;  %1221 = vmatprep.subr.bf16.mxu1 %v5101_v17 }
 0x55b   :  { %1181 = vmatpush1.bf16.msra.mxu0 %v5104_v18  ;;  %1222 = vmatpush1.bf16.msra.mxu1 %v5107_v19 }
 0x55c   :  { %1182 = vmatprep.subr.bf16.mxu0 %v5110_v21  ;;  %1223 = vmatprep.subr.bf16.mxu1 %v5113_v22 }
 0x55f   :  { %1183 = vmatpush1.bf16.msra.mxu0 %v5116_v23  ;;  %1224 = vmatpush1.bf16.msra.mxu1 %v5165_v11 }
 0x560   :  { %1184 = vmatprep.subr.bf16.mxu0 %v5168_v24  ;;  %1225 = vmatprep.subr.bf16.mxu1 %v5171_v38 }
 0x563   :  { %1185 = vmatpush1.bf16.msra.mxu0 %v5174_v25  ;;  %1226 = vmatpush1.bf16.msra.mxu1 %v5177_v39 }
 0x564   :  { %1186 = vmatprep.subr.bf16.mxu0 %v5180_v26  ;;  %1227 = vmatprep.subr.bf16.mxu1 %v5183_v40 }
 0x567   :  { %1187 = vmatpush1.bf16.msra.mxu0 %v5186_v27  ;;  %1228 = vmatpush1.bf16.msra.mxu1 %v5189_v41 }
 0x568   :  { %1279 = vmatprep.subr.bf16.mxu0 %v5036_v12  ;;  %1320 = vmatprep.subr.bf16.mxu1 %v5039_v13 }
 0x60a   :  { %v1099_v28 = vpop.f32.mrf.mxu0  ;;  %v1140_v42 = vpop.f32.mrf.mxu1 }
 0x60b   :  { %v1100_v30 = vadd.f32 %v1099_v28, %v6210_v43  ;;  %v1141_v13 = vadd.f32 %v1140_v42, %v6213_v56  ;;  %v3926_v56 = vld [vmem:[#allocation7 + $0xe8] ss:$16 sps:$4 sm:$0xff]  }
 0x60c   :  { %v1101_v44 = vpop.f32.mrf.mxu0  ;;  %v1142_v31 = vpop.f32.mrf.mxu1 }
 0x60d   :  { %v3689_v32 = vmul.f32 -1.442695, %v1100_v30  ;;  %v1102_v34 = vadd.f32 %v1101_v44, %v6211_v33  ;;  %v1143_v12 = vadd.f32 %v1142_v31, %v6212_v47 }
 0x60e   :  { %v1103_v4 = vpop.f32.mrf.mxu0  ;;  %v1144_v49 = vpop.f32.mrf.mxu1 }
 0x60f   :  { %4105 = vpow2.f32 %v3689_v32  ;;  %v3690_v9 = vmul.f32 -1.442695, %v1102_v34  ;;  %v3691_v58 = vmul.f32 -1.442695, %v1143_v12  ;;  %v3923_v12 = vld [vmem:[#allocation7 + $0xe0] ss:$16 sps:$4 sm:$0xff]  }
 0x610   :  { %v1104_v59 = vpop.f32.mrf.mxu0  ;;  %v1145_v5 = vpop.f32.mrf.mxu1 }
 0x611   :  { %4107 = vpow2.f32 %v3690_v9 }
 0x612   :  { %4109 = vtanh.f32 %v1141_v13 }
 0x613   :  { %4111 = vpow2.f32 %v3691_v58  ;;  %v3931_v58 = vld [vmem:[#allocation7 + $0xc4] ss:$16 sps:$4 sm:$0xff]  }
 0x61c   :  { %v4106_v62 = vpop.eup %4105 }
 0x61d   :  { %v1150_v8 = vadd.f32 1.0, %v4106_v62  ;;  %v3934_v62 = vld [vmem:[#allocation7 + $0xcc] ss:$16 sps:$4 sm:$0xff]  }
 0x61e   :  { %v4108_v46 = vpop.eup %4107 }
 0x61f   :  { %4113 = vrcp.f32 %v1150_v8  ;;  %v1156_v52 = vadd.f32 1.0, %v4108_v46  ;;  %v4110_v7 = vpop.eup %4109  ;;  %v3929_v8 = vld [vmem:[#allocation7 + $0xc0] ss:$16 sps:$4 sm:$0xff]   ;;  %v3932_v46 = vld [vmem:[#allocation7 + $0xc8] ss:$16 sps:$4 sm:$0xff]  }
 0x620   :  { %v4112_v37 = vpop.eup %4111 }
 0x621   :  { %4115 = vrcp.f32 %v1156_v52  ;;  %v1163_v44 = vadd.f32 1.0, %v4112_v37  ;;  %v3937_v52 = vld [vmem:[#allocation7 + $0xa4] ss:$16 sps:$4 sm:$0xff]   ;;  %v3935_v37 = vld [vmem:[#allocation7 + $0xa0] ss:$16 sps:$4 sm:$0xff]  }
 0x623   :  { %4117 = vrcp.f32 %v1163_v44  ;;  %v3941_v44 = vld [vmem:[#allocation7 + $0x80] ss:$16 sps:$4 sm:$0xff]  }
 0x62c   :  { %v4114_v28 = vpop.eup %4113 }
 0x62d   :  { %v1167_v43 = vmul.f32 %v4114_v28, %v4110_v7  ;;  %v3940_v7 = vld [vmem:[#allocation7 + $0xac] ss:$16 sps:$4 sm:$0xff]   ;;  %v3938_v28 = vld [vmem:[#allocation7 + $0xa8] ss:$16 sps:$4 sm:$0xff]  }
 0x62e   :  { %v4116_v30 = vpop.eup %4115 }
 0x62f   :  { %v1166_v32 = vmul.f32 %v4116_v30, %v5135_v3  ;;  %v3946_v30 = vld [vmem:[#allocation7 + $0x8c] ss:$16 sps:$4 sm:$0xff]  }
 0x630   :  { %v4118_v42 = vpop.eup %4117 }
 0x631   :  { %v5199_v31 = vadd.f32 %v1167_v43, %v1166_v32  ;;  %v3943_v43 = vld [vmem:[#allocation7 + $0x84] ss:$16 sps:$4 sm:$0xff]   ;;  %v3944_v32 = vld [vmem:[#allocation7 + $0x88] ss:$16 sps:$4 sm:$0xff]  }
 0x633   :  { %4119 = vtanh.f32 %v5199_v31 }
 0x640   :  { %v4120_v33 = vpop.eup %4119 }
 0x641   :  { %v5202_v34 = vmul.f32 %v4120_v33, %v4118_v42  ;;  %v3952_v42 = vld [vmem:[#allocation7 + $0x6c] ss:$16 sps:$4 sm:$0xff]   ;;  %v3947_v33 = vld [vmem:[#allocation7 + $0x60] ss:$16 sps:$4 sm:$0xff]  }
 0x643   :  { %v1171_v4 = vpack.c.bf16 %v5202_v34, %v5202_v34 }
 0x645   :  { %1205 = vmatmul.mubr.bf16.vlgmr.msra.gmra.mxu0 %v1171_v4  ;;  %1246 = vmatmul.mubr.bf16.vlgmr.msra.gmra.mxu1 %v1171_v4  ;;  %v3950_v4 = vld [vmem:[#allocation7 + $0x68] ss:$16 sps:$4 sm:$0xff]  }
 0x646   :  { %1280 = vmatpush1.bf16.msra.mxu0 %v5054_v51  ;;  %1321 = vmatpush1.bf16.msra.mxu1 %v5057_v29  ;;  %v3925_v51 = vld [vmem:[#allocation7 + $0xe4] ss:$16 sps:$4 sm:$0xff]   ;;  %v3928_v29 = vld [vmem:[#allocation7 + $0xec] ss:$16 sps:$4 sm:$0xff]  }
 0x647   :  { %1281 = vmatprep.subr.bf16.mxu0 %v5060_v10  ;;  %1322 = vmatprep.subr.bf16.mxu1 %v5063_v20 }
 0x648   :  { %1311 = vmatprep.mubr.bf16.mxu0 %v6200_v60  ;;  %1352 = vmatprep.mubr.bf16.mxu1 %v6200_v60 }
 0x64a   :  { %1282 = vmatpush1.bf16.msra.mxu0 %v5068_v48  ;;  %1323 = vmatpush1.bf16.msra.mxu1 %v5071_v63  ;;  %v6214_v48 = vld [vmem:[#allocation30_spill] sm:$0xff] }
 0x64b   :  { %1283 = vmatprep.subr.bf16.mxu0 %v5074_v57  ;;  %1324 = vmatprep.subr.bf16.mxu1 %v5077_v61 }
 0x64e   :  { %1284 = vmatpush1.bf16.msra.mxu0 %v5080_v36  ;;  %1325 = vmatpush1.bf16.msra.mxu1 %v5083_v0  ;;  %v6215_v0 = vld [vmem:[#allocation32_spill] sm:$0xff] }
 0x64f   :  { %1285 = vmatprep.subr.bf16.mxu0 %v5086_v50  ;;  %1326 = vmatprep.subr.bf16.mxu1 %v5089_v6 }
 0x652   :  { %1286 = vmatpush1.bf16.msra.mxu0 %v5092_v14  ;;  %1327 = vmatpush1.bf16.msra.mxu1 %v5095_v15 }
 0x653   :  { %1287 = vmatprep.subr.bf16.mxu0 %v5098_v16  ;;  %1328 = vmatprep.subr.bf16.mxu1 %v5101_v17 }
 0x656   :  { %1288 = vmatpush1.bf16.msra.mxu0 %v5104_v18  ;;  %1329 = vmatpush1.bf16.msra.mxu1 %v5107_v19  ;;  %v6216_v18 = vld [vmem:[#allocation33_spill] sm:$0xff] }
 0x657   :  { %1289 = vmatprep.subr.bf16.mxu0 %v5110_v21  ;;  %1330 = vmatprep.subr.bf16.mxu1 %v5113_v22  ;;  %v6217_v21 = vld [vmem:[#allocation31_spill] sm:$0xff] }
 0x65a   :  { %1290 = vmatpush1.bf16.msra.mxu0 %v5116_v23  ;;  %1331 = vmatpush1.bf16.msra.mxu1 %v5165_v11 }
 0x65b   :  { %1291 = vmatprep.subr.bf16.mxu0 %v5168_v24  ;;  %1332 = vmatprep.subr.bf16.mxu1 %v5171_v38 }
 0x65e   :  { %1292 = vmatpush1.bf16.msra.mxu0 %v5174_v25  ;;  %1333 = vmatpush1.bf16.msra.mxu1 %v5177_v39 }
 0x65f   :  { %1293 = vmatprep.subr.bf16.mxu0 %v5180_v26  ;;  %1334 = vmatprep.subr.bf16.mxu1 %v5183_v40 }
 0x662   :  { %1294 = vmatpush1.bf16.msra.mxu0 %v5186_v27  ;;  %1335 = vmatpush1.bf16.msra.mxu1 %v5189_v41 }
 0x663   :  { %1635 = vmatprep.subr.bf16.mxu0 %v3925_v51  ;;  %1708 = vmatprep.subr.bf16.mxu1 %v3928_v29  ;;  %v3955_v51 = vld [vmem:[#allocation7 + $0x44] ss:$16 sps:$4 sm:$0xff]   ;;  %v3958_v29 = vld [vmem:[#allocation7 + $0x4c] ss:$16 sps:$4 sm:$0xff]  }
 0x705   :  { %v1206_v10 = vpop.f32.mrf.mxu0  ;;  %v1247_v20 = vpop.f32.mrf.mxu1 }
 0x706   :  { %v1207_v63 = vadd.f32 %v1206_v10, %v6214_v48  ;;  %v1248_v22 = vadd.f32 %v1247_v20, %v6217_v21  ;;  %v3953_v10 = vld [vmem:[#allocation7 + $0x40] ss:$16 sps:$4 sm:$0xff]   ;;  %v3956_v20 = vld [vmem:[#allocation7 + $0x48] ss:$16 sps:$4 sm:$0xff]   ;;  %v3961_v48 = vld [vmem:[#allocation7 + $0x24] ss:$16 sps:$4 sm:$0xff]  }
 0x707   :  { %v1208_v57 = vpop.f32.mrf.mxu0  ;;  %v1249_v61 = vpop.f32.mrf.mxu1  ;;  %v5290_v21 = vld [vmem:[#allocation8 + $0xac] ss:$16 sps:$4 sm:$0xff]  }
 0x708   :  { %v3692_v36 = vmul.f32 -1.442695, %v1207_v63  ;;  %v1209_v50 = vadd.f32 %v1208_v57, %v6215_v0  ;;  %v1250_v19 = vadd.f32 %v1249_v61, %v6216_v18  ;;  %v3964_v63 = vld [vmem:[#allocation7 + $0x2c] ss:$16 sps:$4 sm:$0xff]   ;;  %v3959_v57 = vld [vmem:[#allocation7 + $0x20] ss:$16 sps:$4 sm:$0xff]  }
 0x709   :  { %v1210_v6 = vpop.f32.mrf.mxu0  ;;  %v1251_v14 = vpop.f32.mrf.mxu1  ;;  %v3962_v61 = vld [vmem:[#allocation7 + $0x28] ss:$16 sps:$4 sm:$0xff]   ;;  %v3970_v0 = vld [vmem:[#allocation7 + $0xc] ss:$16 sps:$4 sm:$0xff]  }
 0x70a   :  { %4121 = vpow2.f32 %v3692_v36  ;;  %v3693_v15 = vmul.f32 -1.442695, %v1209_v50  ;;  %v3694_v23 = vmul.f32 -1.442695, %v1250_v19  ;;  %v3967_v36 = vld [vmem:[#allocation7 + $0x4] ss:$16 sps:$4 sm:$0xff]   ;;  %v1385_v14 = vpack.c.bf16 %v4954_v55, %v4908_v53 }
 0x70b   :  { %v1211_v16 = vpop.f32.mrf.mxu0  ;;  %v1252_v17 = vpop.f32.mrf.mxu1  ;;  %v3965_v50 = vld [vmem:[#allocation7] ss:$16 sps:$4 sm:$0xff]   ;;  %v3968_v6 = vld [vmem:[#allocation7 + $0x8] ss:$16 sps:$4 sm:$0xff]   ;;  %v5264_v53 = vld [vmem:[#allocation8 + $0xe4] ss:$16 sps:$4 sm:$0xff]  }
 0x70c   :  { %4123 = vpow2.f32 %v3693_v15  ;;  %v1386_v15 = vpack.c.bf16 %v5050_v2, %v5000_v1  ;;  %v1387_v16 = vpack.c.bf16 %v5202_v34, %v5138_v35  ;;  %v5266_v55 = vld [vmem:[#allocation8 + $0xec] ss:$16 sps:$4 sm:$0xff]   ;;  %v5268_v1 = vld [vmem:[#allocation8 + $0xe0] ss:$16 sps:$4 sm:$0xff]   ;;  %v5270_v2 = vld [vmem:[#allocation8 + $0xe8] ss:$16 sps:$4 sm:$0xff]  }
 0x70d   :  { %4125 = vtanh.f32 %v1248_v22  ;;  %v5276_v35 = vld [vmem:[#allocation8 + $0xc4] ss:$16 sps:$4 sm:$0xff]   ;;  %v5278_v34 = vld [vmem:[#allocation8 + $0xcc] ss:$16 sps:$4 sm:$0xff]   ;;  %v5280_v17 = vld [vmem:[#allocation8 + $0xc0] ss:$16 sps:$4 sm:$0xff]  }
 0x70e   :  { %4127 = vpow2.f32 %v3694_v23  ;;  %v5282_v18 = vld [vmem:[#allocation8 + $0xc8] ss:$16 sps:$4 sm:$0xff]   ;;  %v5288_v19 = vld [vmem:[#allocation8 + $0xa4] ss:$16 sps:$4 sm:$0xff]   ;;  %v5292_v22 = vld [vmem:[#allocation8 + $0xa0] ss:$16 sps:$4 sm:$0xff]  }
 0x70f   :  { %v5294_v23 = vld [vmem:[#allocation8 + $0xa8] ss:$16 sps:$4 sm:$0xff]  }
 0x717   :  { %v4122_v3 = vpop.eup %4121 }
 0x718   :  { %v1257_v11 = vadd.f32 1.0, %v4122_v3  ;;  %v5300_v3 = vld [vmem:[#allocation8 + $0x84] ss:$16 sps:$4 sm:$0xff]  }
 0x719   :  { %v4124_v24 = vpop.eup %4123 }
 0x71a   :  { %4129 = vrcp.f32 %v1257_v11  ;;  %v1263_v38 = vadd.f32 1.0, %v4124_v24  ;;  %v4126_v25 = vpop.eup %4125  ;;  %v5302_v11 = vld [vmem:[#allocation8 + $0x8c] ss:$16 sps:$4 sm:$0xff]   ;;  %v5304_v24 = vld [vmem:[#allocation8 + $0x80] ss:$16 sps:$4 sm:$0xff]  }
 0x71b   :  { %v4128_v39 = vpop.eup %4127 }
 0x71c   :  { %4131 = vrcp.f32 %v1263_v38  ;;  %v1270_v41 = vadd.f32 1.0, %v4128_v39  ;;  %v5306_v38 = vld [vmem:[#allocation8 + $0x88] ss:$16 sps:$4 sm:$0xff]   ;;  %v5314_v39 = vld [vmem:[#allocation8 + $0x6c] ss:$16 sps:$4 sm:$0xff]  }
 0x71e   :  { %4133 = vrcp.f32 %v1270_v41  ;;  %v5326_v41 = vld [vmem:[#allocation8 + $0x4c] ss:$16 sps:$4 sm:$0xff]  }
 0x727   :  { %v4130_v26 = vpop.eup %4129 }
 0x728   :  { %v1274_v40 = vmul.f32 %v4130_v26, %v4126_v25  ;;  %v5312_v25 = vld [vmem:[#allocation8 + $0x64] ss:$16 sps:$4 sm:$0xff]   ;;  %v5316_v26 = vld [vmem:[#allocation8 + $0x60] ss:$16 sps:$4 sm:$0xff]  }
 0x729   :  { %v4132_v27 = vpop.eup %4131 }
 0x72a   :  { %v1273_v49 = vmul.f32 %v4132_v27, %v5199_v31  ;;  %v3949_v31 = vld [vmem:[#allocation7 + $0x64] ss:$16 sps:$4 sm:$0xff]  }
 0x72b   :  { %v4134_v59 = vpop.eup %4133  ;;  %v5324_v27 = vld [vmem:[#allocation8 + $0x44] ss:$16 sps:$4 sm:$0xff]  }
 0x72c   :  { %v5243_v9 = vadd.f32 %v1274_v40, %v1273_v49  ;;  %v5318_v40 = vld [vmem:[#allocation8 + $0x68] ss:$16 sps:$4 sm:$0xff]   ;;  %v5328_v49 = vld [vmem:[#allocation8 + $0x40] ss:$16 sps:$4 sm:$0xff]  }
 0x72e   :  { %4135 = vtanh.f32 %v5243_v9 }
 0x73b   :  { %v4136_v5 = vpop.eup %4135 }
 0x73c   :  { %v5246_v47 = vmul.f32 %v4136_v5, %v4134_v59  ;;  %v5330_v59 = vld [vmem:[#allocation8 + $0x48] ss:$16 sps:$4 sm:$0xff]   ;;  %v5336_v5 = vld [vmem:[#allocation8 + $0x24] ss:$16 sps:$4 sm:$0xff]  }
 0x73e   :  { %v1278_v13 = vpack.c.bf16 %v5246_v47, %v5246_v47 }
 0x740   :  { %1312 = vmatmul.mubr.bf16.vlgmr.msra.gmra.mxu0 %v1278_v13  ;;  %1353 = vmatmul.mubr.bf16.vlgmr.msra.gmra.mxu1 %v1278_v13  ;;  %v5342_v13 = vld [vmem:[#allocation8 + $0x28] ss:$16 sps:$4 sm:$0xff]  }
 0x741   :  { %1636 = vmatpush1.bf16.msra.mxu0 %v3923_v12  ;;  %1709 = vmatpush1.bf16.msra.mxu1 %v3926_v56  ;;  %v5338_v12 = vld [vmem:[#allocation8 + $0x2c] ss:$16 sps:$4 sm:$0xff]   ;;  %v5340_v56 = vld [vmem:[#allocation8 + $0x20] ss:$16 sps:$4 sm:$0xff]  }
 0x742   :  { %1637 = vmatprep.subr.bf16.mxu0 %v3931_v58  ;;  %1710 = vmatprep.subr.bf16.mxu1 %v3934_v62  ;;  %v5344_v58 = vld [vmem:[#allocation8 + $0x4] ss:$16 sps:$4 sm:$0xff]   ;;  %v5348_v62 = vld [vmem:[#allocation8 + $0xc] ss:$16 sps:$4 sm:$0xff]  }
 0x743   :  { %1667 = vmatprep.mubr.bf16.mxu0 %v6200_v60  ;;  %1740 = vmatprep.mubr.bf16.mxu1 %v6200_v60 }
 0x745   :  { %1638 = vmatpush1.bf16.msra.mxu0 %v3929_v8  ;;  %1711 = vmatpush1.bf16.msra.mxu1 %v3932_v46  ;;  %v5352_v8 = vld [vmem:[#allocation8] ss:$16 sps:$4 sm:$0xff]   ;;  %v5354_v46 = vld [vmem:[#allocation8 + $0x8] ss:$16 sps:$4 sm:$0xff]  }
 0x746   :  { %1639 = vmatprep.subr.bf16.mxu0 %v3937_v52  ;;  %1712 = vmatprep.subr.bf16.mxu1 %v3940_v7  ;;  %v3800_v52 = vld [vmem:[#allocation10 + $0x2] ss:$0 sm:$0xff]  ;;  %v3788_v7 = vld [vmem:[#allocation10 + $0x1] ss:$0 sm:$0xff] }
 0x747   :  { %3286 = vrot.lane.b32.xlu1 %v3800_v52, %s4536_s3  ;;  %2970 = vrot.lane.b32.xlu0 %v3788_v7, %s4537_s29  ;;  %s4547_s29 = smov 125  }
 0x749   :  { %1640 = vmatpush1.bf16.msra.mxu0 %v3935_v37  ;;  %1713 = vmatpush1.bf16.msra.mxu1 %v3938_v28 }
 0x74a   :  { %1641 = vmatprep.subr.bf16.mxu0 %v3943_v43  ;;  %1714 = vmatprep.subr.bf16.mxu1 %v3946_v30  ;;  %v6218_v43 = vld [vmem:[#allocation34_spill] sm:$0xff] }
 0x74d   :  { %1642 = vmatpush1.bf16.msra.mxu0 %v3941_v44  ;;  %1715 = vmatpush1.bf16.msra.mxu1 %v3944_v32 }
 0x74e   :  { %1643 = vmatprep.subr.bf16.mxu0 %v3949_v31  ;;  %1716 = vmatprep.subr.bf16.mxu1 %v3952_v42 }
 0x751   :  { %1644 = vmatpush1.bf16.msra.mxu0 %v3947_v33  ;;  %1717 = vmatpush1.bf16.msra.mxu1 %v3950_v4 }
 0x752   :  { %1645 = vmatprep.subr.bf16.mxu0 %v3955_v51  ;;  %1718 = vmatprep.subr.bf16.mxu1 %v3958_v29 }
 0x755   :  { %1646 = vmatpush1.bf16.msra.mxu0 %v3953_v10  ;;  %1719 = vmatpush1.bf16.msra.mxu1 %v3956_v20 }
 0x756   :  { %1647 = vmatprep.subr.bf16.mxu0 %v3961_v48  ;;  %1720 = vmatprep.subr.bf16.mxu1 %v3964_v63  ;;  %v6219_v48 = vld [vmem:[#allocation35_spill] sm:$0xff] }
 0x759   :  { %1648 = vmatpush1.bf16.msra.mxu0 %v3959_v57  ;;  %1721 = vmatpush1.bf16.msra.mxu1 %v3962_v61 }
 0x75a   :  { %1649 = vmatprep.subr.bf16.mxu0 %v3967_v36  ;;  %1722 = vmatprep.subr.bf16.mxu1 %v3970_v0 }
 0x75d   :  { %1650 = vmatpush1.bf16.msra.mxu0 %v3965_v50  ;;  %1723 = vmatpush1.bf16.msra.mxu1 %v3968_v6 }
 0x75e   :  { %1941 = vmatprep.subr.bf16.mxu0 %v5264_v53  ;;  %1982 = vmatprep.subr.bf16.mxu1 %v5266_v55 }
 0x760   :  { %1668 = vmatmul.mubr.bf16.vlgmr.msra.gmra.mxu0 %v1385_v14  ;;  %1741 = vmatmul.mubr.bf16.vlgmr.msra.gmra.mxu1 %v1385_v14 }
 0x761   :  { %1677 = vmatprep.mubr.bf16.mxu0 %v6200_v60  ;;  %1750 = vmatprep.mubr.bf16.mxu1 %v6200_v60 }
 0x762   :  { %1942 = vmatpush1.bf16.msra.mxu0 %v5268_v1  ;;  %1983 = vmatpush1.bf16.msra.mxu1 %v5270_v2 }
 0x763   :  { %1943 = vmatprep.subr.bf16.mxu0 %v5276_v35  ;;  %1984 = vmatprep.subr.bf16.mxu1 %v5278_v34 }
 0x766   :  { %1944 = vmatpush1.bf16.msra.mxu0 %v5280_v17  ;;  %1985 = vmatpush1.bf16.msra.mxu1 %v5282_v18 }
 0x767   :  { %1945 = vmatprep.subr.bf16.mxu0 %v5288_v19  ;;  %1986 = vmatprep.subr.bf16.mxu1 %v5290_v21 }
 0x768   :  { %1678 = vmatmul.mubr.bf16.gmra.mxu0 %v1386_v15  ;;  %1751 = vmatmul.mubr.bf16.gmra.mxu1 %v1386_v15 }
 0x769   :  { %1687 = vmatprep.mubr.bf16.mxu0 %v6200_v60  ;;  %1760 = vmatprep.mubr.bf16.mxu1 %v6200_v60 }
 0x76a   :  { %1946 = vmatpush1.bf16.msra.mxu0 %v5292_v22  ;;  %1987 = vmatpush1.bf16.msra.mxu1 %v5294_v23 }
 0x76b   :  { %1947 = vmatprep.subr.bf16.mxu0 %v5300_v3  ;;  %1988 = vmatprep.subr.bf16.mxu1 %v5302_v11 }
 0x76e   :  { %1948 = vmatpush1.bf16.msra.mxu0 %v5304_v24  ;;  %1989 = vmatpush1.bf16.msra.mxu1 %v5306_v38 }
 0x76f   :  { %1949 = vmatprep.subr.bf16.mxu0 %v5312_v25  ;;  %1990 = vmatprep.subr.bf16.mxu1 %v5314_v39 }
 0x770   :  { %1688 = vmatmul.mubr.bf16.gmra.mxu0 %v1387_v16  ;;  %1761 = vmatmul.mubr.bf16.gmra.mxu1 %v1387_v16 }
 0x771   :  { %1697 = vmatprep.mubr.bf16.mxu0 %v6200_v60  ;;  %1770 = vmatprep.mubr.bf16.mxu1 %v6200_v60 }
 0x772   :  { %1950 = vmatpush1.bf16.msra.mxu0 %v5316_v26  ;;  %1991 = vmatpush1.bf16.msra.mxu1 %v5318_v40 }
 0x773   :  { %1951 = vmatprep.subr.bf16.mxu0 %v5324_v27  ;;  %1992 = vmatprep.subr.bf16.mxu1 %v5326_v41 }
 0x776   :  { %1952 = vmatpush1.bf16.msra.mxu0 %v5328_v49  ;;  %1993 = vmatpush1.bf16.msra.mxu1 %v5330_v59 }
 0x777   :  { %1953 = vmatprep.subr.bf16.mxu0 %v5336_v5  ;;  %1994 = vmatprep.subr.bf16.mxu1 %v5338_v12 }
 0x77a   :  { %1954 = vmatpush1.bf16.msra.mxu0 %v5340_v56  ;;  %1995 = vmatpush1.bf16.msra.mxu1 %v5342_v13 }
 0x77b   :  { %1955 = vmatprep.subr.bf16.mxu0 %v5344_v58  ;;  %1996 = vmatprep.subr.bf16.mxu1 %v5348_v62 }
 0x77e   :  { %1956 = vmatpush1.bf16.msra.mxu0 %v5352_v8  ;;  %1997 = vmatpush1.bf16.msra.mxu1 %v5354_v46 }
 0x77f   :  { %2048 = vmatprep.subr.bf16.mxu0 %v5264_v53  ;;  %2089 = vmatprep.subr.bf16.mxu1 %v5266_v55 }
 0x800   :  { %v1313_v37 = vpop.f32.mrf.mxu0  ;;  %v1354_v28 = vpop.f32.mrf.mxu1 }
 0x801   :  { %v1314_v30 = vadd.f32 %v1313_v37, %v6218_v43  ;;  %v1355_v63 = vadd.f32 %v1354_v28, %v6219_v48 }
 0x802   :  { %v1315_v44 = vpop.f32.mrf.mxu0  ;;  %v1356_v32 = vpop.f32.mrf.mxu1 }
 0x803   :  { %v3695_v31 = vmul.f32 -1.442695, %v1314_v30  ;;  %v1316_v42 = vadd.f32 %v1315_v44, %v4895_v54  ;;  %v1357_v20 = vadd.f32 %v1356_v32, %v4898_v45 }
 0x804   :  { %v1317_v33 = vpop.f32.mrf.mxu0  ;;  %v1358_v4 = vpop.f32.mrf.mxu1 }
 0x805   :  { %4137 = vpow2.f32 %v3695_v31  ;;  %v3696_v51 = vmul.f32 -1.442695, %v1316_v42  ;;  %v3697_v57 = vmul.f32 -1.442695, %v1357_v20 }
 0x806   :  { %v1318_v29 = vpop.f32.mrf.mxu0  ;;  %v1359_v10 = vpop.f32.mrf.mxu1 }
 0x807   :  { %4139 = vpow2.f32 %v3696_v51 }
 0x808   :  { %4141 = vtanh.f32 %v1355_v63 }
 0x809   :  { %4143 = vpow2.f32 %v3697_v57 }
 0x812   :  { %v4138_v61 = vpop.eup %4137 }
 0x813   :  { %v1364_v36 = vadd.f32 1.0, %v4138_v61 }
 0x814   :  { %v4140_v0 = vpop.eup %4139 }
 0x815   :  { %4145 = vrcp.f32 %v1364_v36  ;;  %v1370_v50 = vadd.f32 1.0, %v4140_v0  ;;  %v4142_v54 = vpop.eup %4141 }
 0x816   :  { %v4144_v6 = vpop.eup %4143 }
 0x817   :  { %4147 = vrcp.f32 %v1370_v50  ;;  %v1377_v52 = vadd.f32 1.0, %v4144_v6 }
 0x819   :  { %4149 = vrcp.f32 %v1377_v52  ;;  %v1453_v52 = vld [vmem:[%s6164_s6] sm:$0xf]  ;;  %s4538_s6 = smov 96  }
 0x822   :  { %v4146_v14 = vpop.eup %4145 }
 0x823   :  { %v1381_v15 = vmul.f32 %v4146_v14, %v4142_v54 }
 0x824   :  { %v4148_v16 = vpop.eup %4147 }
 0x825   :  { %v1380_v7 = vmul.f32 %v4148_v16, %v5243_v9  ;;  %v1669_v9 = vpop.f32.mrf.mxu0 }
 0x826   :  { %v4150_v37 = vpop.eup %4149 }
 0x827   :  { %v1382_v45 = vadd.f32 %v1381_v15, %v1380_v7  ;;  %v1671_v44 = vpop.f32.mrf.mxu0 }
 0x829   :  { %4151 = vtanh.f32 %v1382_v45  ;;  %v5407_v31 = vpop.f32.mrf.mxu0 }
 0x82b   :  { %v5411_v33 = vpop.f32.mrf.mxu0 }
 0x82d   :  { %v5415_v51 = vpop.f32.mrf.mxu0 }
 0x82f   :  { %v5419_v10 = vpop.f32.mrf.mxu0 }
 0x831   :  { %v5423_v48 = vpop.f32.mrf.mxu0 }
 0x832   :  { %6222 = vst [vmem:[#allocation20_spill] sm:$0xff] %v5423_v48 }
 0x833   :  { %v5427_v57 = vpop.f32.mrf.mxu0 }
 0x834   :  { %6224 = vst [vmem:[#allocation19_spill] sm:$0xff] %v5427_v57 }
 0x835   :  { %v5431_v36 = vpop.f32.mrf.mxu0 }
 0x836   :  { %v4152_v28 = vpop.eup %4151  ;;  %6226 = vst [vmem:[#allocation24_spill] sm:$0xff] %v5431_v36 }
 0x837   :  { %v1384_v43 = vmul.f32 %v4152_v28, %v4150_v37  ;;  %v5435_v50 = vpop.f32.mrf.mxu0 }
 0x838   :  { %6228 = vst [vmem:[#allocation23_spill] sm:$0xff] %v5435_v50 }
 0x839   :  { %v1388_v30 = vpack.c.bf16 %v1384_v43, %v5246_v47  ;;  %v1742_v47 = vpop.f32.mrf.mxu1  ;;  %v5439_v6 = vpop.f32.mrf.mxu0  ;;  %v6238_v43 = vld [vmem:[#allocation16_spill] sm:$0xff] }
 0x83a   :  { %6230 = vst [vmem:[#allocation28_spill] sm:$0xff] %v5439_v6  ;;  %v6245_v48 = vsub.s32 3, %v6238_v43 }
 0x83b   :  { %1698 = vmatmul.mubr.bf16.gmra.mxu0 %v1388_v30  ;;  %1771 = vmatmul.mubr.bf16.gmra.mxu1 %v1388_v30  ;;  %v1744_v32 = vpop.f32.mrf.mxu1  ;;  %v5443_v15 = vpop.f32.mrf.mxu0  ;;  %v6239_v30 = vsub.s32 0, %v6238_v43 }
 0x83c   :  { %1973 = vmatprep.mubr.bf16.mxu0 %v6200_v60  ;;  %2014 = vmatprep.mubr.bf16.mxu1 %v6200_v60  ;;  %6232 = vst [vmem:[#allocation27_spill] sm:$0xff] %v5443_v15 }
 0x83d   :  { %v5409_v42 = vpop.f32.mrf.mxu1  ;;  %v5460_v6 = vrot.slane %v1453_v52, %v6239_v30 }
 0x83f   :  { %v5413_v4 = vpop.f32.mrf.mxu1 }
 0x841   :  { %v5417_v29 = vpop.f32.mrf.mxu1 }
 0x842   :  { %6220 = vst [vmem:[#allocation17_spill] sm:$0xff] %v5417_v29 }
 0x843   :  { %1974 = vmatmul.mubr.bf16.vlgmr.msra.gmra.mxu0 %v6200_v60  ;;  %2015 = vmatmul.mubr.bf16.vlgmr.msra.gmra.mxu1 %v6200_v60  ;;  %v5421_v20 = vpop.f32.mrf.mxu1 }
 0x844   :  { %2049 = vmatpush1.bf16.msra.mxu0 %v5268_v1  ;;  %2090 = vmatpush1.bf16.msra.mxu1 %v5270_v2  ;;  %6221 = vst [vmem:[#allocation18_spill] sm:$0xff] %v5421_v20 }
 0x845   :  { %2050 = vmatprep.subr.bf16.mxu0 %v5276_v35  ;;  %2091 = vmatprep.subr.bf16.mxu1 %v5278_v34  ;;  %v5425_v63 = vpop.f32.mrf.mxu1 }
 0x846   :  { %2080 = vmatprep.mubr.bf16.mxu0 %v6200_v60  ;;  %2121 = vmatprep.mubr.bf16.mxu1 %v6200_v60  ;;  %6223 = vst [vmem:[#allocation21_spill] sm:$0xff] %v5425_v63 }
 0x847   :  { %v5429_v61 = vpop.f32.mrf.mxu1 }
 0x848   :  { %2051 = vmatpush1.bf16.msra.mxu0 %v5280_v17  ;;  %2092 = vmatpush1.bf16.msra.mxu1 %v5282_v18  ;;  %6225 = vst [vmem:[#allocation22_spill] sm:$0xff] %v5429_v61 }
 0x849   :  { %2052 = vmatprep.subr.bf16.mxu0 %v5288_v19  ;;  %2093 = vmatprep.subr.bf16.mxu1 %v5290_v21  ;;  %v5433_v0 = vpop.f32.mrf.mxu1 }
 0x84a   :  { %6227 = vst [vmem:[#allocation25_spill] sm:$0xff] %v5433_v0 }
 0x84b   :  { %v5437_v54 = vpop.f32.mrf.mxu1 }
 0x84c   :  { %2053 = vmatpush1.bf16.msra.mxu0 %v5292_v22  ;;  %2094 = vmatpush1.bf16.msra.mxu1 %v5294_v23  ;;  %6229 = vst [vmem:[#allocation26_spill] sm:$0xff] %v5437_v54 }
 0x84d   :  { %2054 = vmatprep.subr.bf16.mxu0 %v5300_v3  ;;  %2095 = vmatprep.subr.bf16.mxu1 %v5302_v11  ;;  %v5441_v14 = vpop.f32.mrf.mxu1 }
 0x84e   :  { %6231 = vst [vmem:[#allocation29_spill] sm:$0xff] %v5441_v14 }
 0x84f   :  { %v5445_v16 = vpop.f32.mrf.mxu1 }
 0x850   :  { %2055 = vmatpush1.bf16.msra.mxu0 %v5304_v24  ;;  %2096 = vmatpush1.bf16.msra.mxu1 %v5306_v38  ;;  %6233 = vst [vmem:[#allocation30_spill] sm:$0xff] %v5445_v16  ;;  %v6242_v16 = vsub.s32 1, %v6238_v43 }
 0x851   :  { %2056 = vmatprep.subr.bf16.mxu0 %v5312_v25  ;;  %2097 = vmatprep.subr.bf16.mxu1 %v5314_v39 }
 0x852   :  { %v5468_v0 = vrot.slane %v1453_v52, %v6242_v16 }
 0x854   :  { %2057 = vmatpush1.bf16.msra.mxu0 %v5316_v26  ;;  %2098 = vmatpush1.bf16.msra.mxu1 %v5318_v40  ;;  %v1672_v50 = vadd.f32 %v1671_v44, %v5468_v0  ;;  %v6246_v44 = vsub.s32 2, %v6238_v43 }
 0x855   :  { %2058 = vmatprep.subr.bf16.mxu0 %v5324_v27  ;;  %2099 = vmatprep.subr.bf16.mxu1 %v5326_v41 }
 0x858   :  { %2059 = vmatpush1.bf16.msra.mxu0 %v5328_v49  ;;  %2100 = vmatpush1.bf16.msra.mxu1 %v5330_v59 }
 0x859   :  { %2060 = vmatprep.subr.bf16.mxu0 %v5336_v5  ;;  %2101 = vmatprep.subr.bf16.mxu1 %v5338_v12 }
 0x85c   :  { %2061 = vmatpush1.bf16.msra.mxu0 %v5340_v56  ;;  %2102 = vmatpush1.bf16.msra.mxu1 %v5342_v13 }
 0x85d   :  { %2062 = vmatprep.subr.bf16.mxu0 %v5344_v58  ;;  %2103 = vmatprep.subr.bf16.mxu1 %v5348_v62 }
 0x860   :  { %2063 = vmatpush1.bf16.msra.mxu0 %v5352_v8  ;;  %2104 = vmatpush1.bf16.msra.mxu1 %v5354_v46 }
 0x861   :  { %2155 = vmatprep.subr.bf16.mxu0 %v5264_v53  ;;  %2196 = vmatprep.subr.bf16.mxu1 %v5266_v55 }
 0x8fb   :  { %v5450_v7 = vpop.f32.mrf.mxu0  ;;  %v5452_v45 = vpop.f32.mrf.mxu1 }
 0x8fc   :  { %6234 = vst [vmem:[#allocation32_spill] sm:$0xff] %v5450_v7  ;;  %6235 = vst [vmem:[#allocation33_spill] sm:$0xff] %v5452_v45  ;;  %v1670_v45 = vadd.f32 %v1669_v9, %v5460_v6 }
 0x8fd   :  { %v5454_v37 = vpop.f32.mrf.mxu0  ;;  %v5456_v28 = vpop.f32.mrf.mxu1 }
 0x8fe   :  { %6236 = vst [vmem:[#allocation31_spill] sm:$0xff] %v5454_v37  ;;  %6237 = vst [vmem:[#allocation34_spill] sm:$0xff] %v5456_v28 }
 0x8ff   :  { %v5462_v14 = vpop.f32.mrf.mxu0  ;;  %v5464_v15 = vpop.f32.mrf.mxu1 }
 0x900   :  { %6240 = vst [vmem:[#allocation35_spill] sm:$0xff] %v5462_v14  ;;  %6241 = vst [vmem:[#allocation16_spill] sm:$0xff] %v5464_v15 }
 0x901   :  { %v5470_v54 = vpop.f32.mrf.mxu0  ;;  %v5472_v7 = vpop.f32.mrf.mxu1 }
 0x902   :  { %6243 = vst [vmem:[#allocation36_spill] sm:$0xff] %v5470_v54  ;;  %6244 = vst [vmem:[#allocation37_spill] sm:$0xff] %v5472_v7  ;;  %v5478_v54 = vrot.slane %v1453_v52, %v6245_v48 }
 0x903   :  { %v1975_v37 = vpop.f32.mrf.mxu0  ;;  %v2016_v28 = vpop.f32.mrf.mxu1 }
 0x904   :  { %v1976_v30 = vadd.f32 %v1975_v37, %v1670_v45  ;;  %v1745_v9 = vadd.f32 %v1744_v32, %v5478_v54  ;;  %v5483_v45 = vrot.slane %v1453_v52, %v6246_v44  ;;  %v5491_v44 = vpop.permute.xlu0 %2970 }
 0x905   :  { %v1977_v36 = vpop.f32.mrf.mxu0  ;;  %v2018_v63 = vpop.f32.mrf.mxu1 }
 0x906   :  { %v3762_v14 = vmul.f32 -1.442695, %v1976_v30  ;;  %v1978_v61 = vadd.f32 %v1977_v36, %v1672_v50  ;;  %v2019_v37 = vadd.f32 %v2018_v63, %v1745_v9  ;;  %v1743_v36 = vadd.f32 %v1742_v47, %v5483_v45  ;;  %v5489_v9 = vpop.permute.xlu1 %3286 }
 0x907   :  { %v1979_v15 = vpop.f32.mrf.mxu0  ;;  %v2020_v57 = vpop.f32.mrf.mxu1 }
 0x908   :  { %4153 = vpow2.f32 %v3762_v14  ;;  %v3763_v16 = vmul.f32 -1.442695, %v1978_v61  ;;  %v3764_v50 = vmul.f32 -1.442695, %v2019_v37  ;;  %v2017_v14 = vadd.f32 %v2016_v28, %v1743_v36 }
 0x909   :  { %v1980_v7 = vpop.f32.mrf.mxu0  ;;  %v2021_v29 = vpop.f32.mrf.mxu1 }
 0x90a   :  { %4155 = vpow2.f32 %v3763_v16 }
 0x90b   :  { %4157 = vpow2.f32 %v3764_v50 }
 0x915   :  { %v4154_v57 = vpop.eup %4153 }
 0x916   :  { %v2026_v61 = vadd.f32 1.0, %v4154_v57 }
 0x917   :  { %v4156_v15 = vpop.eup %4155 }
 0x918   :  { %4159 = vrcp.f32 %v2026_v61  ;;  %v2032_v48 = vadd.f32 1.0, %v4156_v15  ;;  %v4158_v29 = vpop.eup %4157 }
 0x919   :  { %4161 = vtanh.f32 %v2017_v14  ;;  %v2039_v43 = vadd.f32 1.0, %v4158_v29  ;;  %v5527_v14 = vld [vmem:[#allocation10] ss:$0 sm:$0xff] }
 0x91a   :  { %4163 = vrcp.f32 %v2032_v48  ;;  %v1674_v48 = vadd.f32 %v5407_v31, %v5460_v6  ;;  %v1749_v31 = vadd.f32 %v5413_v4, %v5478_v54 }
 0x91b   :  { %4165 = vrcp.f32 %v2039_v43 }
 0x925   :  { %v4160_v7 = vpop.eup %4159 }
 0x926   :  { %v4162_v32 = vpop.eup %4161 }
 0x927   :  { %v4164_v30 = vpop.eup %4163  ;;  %v2043_v16 = vmul.f32 %v4162_v32, %v4160_v7  ;;  %v1676_v32 = vadd.f32 %v5411_v33, %v5468_v0 }
 0x928   :  { %v2042_v52 = vmul.f32 0.0, %v4164_v30  ;;  %v4166_v47 = vpop.eup %4165 }
 0x92a   :  { %v5486_v63 = vadd.f32 %v2043_v16, %v2042_v52 }
 0x92c   :  { %4167 = vtanh.f32 %v5486_v63 }
 0x939   :  { %v4168_v28 = vpop.eup %4167 }
 0x93a   :  { %v5493_v37 = vmul.f32 %v4168_v28, %v4166_v47 }
 0x93c   :  { %6247 = vst [vmem:[#allocation38_spill] sm:$0xff] %v5493_v37  ;;  %v3289_v36 = vmul.f32 %v5489_v9, %v5493_v37  ;;  %v2973_v50 = vmul.f32 %v5491_v44, %v5493_v37  ;;  %v2047_v57 = vpack.c.bf16 %v5493_v37, %v5493_v37  ;;  %v2802_v61 = vmul.f32 %v5527_v14, %v5493_v37 }
 0x93d   :  { %v1747_v37 = vadd.f32 %v5409_v42, %v5483_v45 }
 0x93e   :  { %3291 = vrot.lane.b32.xlu0 %v3289_v36, %s4536_s3  ;;  %2975 = vrot.lane.b32.xlu1 %v2973_v50, %s4538_s6  ;;  %v2804_v15 = vsel %vm2803_vm2, %v2802_v61, 0.0 }
 0x93f   :  { %2081 = vmatmul.mubr.bf16.vlgmr.msra.gmra.mxu0 %v2047_v57  ;;  %2122 = vmatmul.mubr.bf16.vlgmr.msra.gmra.mxu1 %v2047_v57 }
 0x940   :  { %2156 = vmatpush1.bf16.msra.mxu0 %v5268_v1  ;;  %2197 = vmatpush1.bf16.msra.mxu1 %v5270_v2 }
 0x941   :  { %2157 = vmatprep.subr.bf16.mxu0 %v5276_v35  ;;  %2198 = vmatprep.subr.bf16.mxu1 %v5278_v34 }
 0x942   :  { %2187 = vmatprep.mubr.bf16.mxu0 %v6200_v60  ;;  %2228 = vmatprep.mubr.bf16.mxu1 %v6200_v60 }
 0x944   :  { %2158 = vmatpush1.bf16.msra.mxu0 %v5280_v17  ;;  %2199 = vmatpush1.bf16.msra.mxu1 %v5282_v18 }
 0x945   :  { %2159 = vmatprep.subr.bf16.mxu0 %v5288_v19  ;;  %2200 = vmatprep.subr.bf16.mxu1 %v5290_v21 }
 0x948   :  { %2160 = vmatpush1.bf16.msra.mxu0 %v5292_v22  ;;  %2201 = vmatpush1.bf16.msra.mxu1 %v5294_v23 }
 0x949   :  { %2161 = vmatprep.subr.bf16.mxu0 %v5300_v3  ;;  %2202 = vmatprep.subr.bf16.mxu1 %v5302_v11 }
 0x94c   :  { %2162 = vmatpush1.bf16.msra.mxu0 %v5304_v24  ;;  %2203 = vmatpush1.bf16.msra.mxu1 %v5306_v38 }
 0x94d   :  { %2163 = vmatprep.subr.bf16.mxu0 %v5312_v25  ;;  %2204 = vmatprep.subr.bf16.mxu1 %v5314_v39 }
 0x950   :  { %2164 = vmatpush1.bf16.msra.mxu0 %v5316_v26  ;;  %2205 = vmatpush1.bf16.msra.mxu1 %v5318_v40 }
 0x951   :  { %2165 = vmatprep.subr.bf16.mxu0 %v5324_v27  ;;  %2206 = vmatprep.subr.bf16.mxu1 %v5326_v41 }
 0x954   :  { %2166 = vmatpush1.bf16.msra.mxu0 %v5328_v49  ;;  %2207 = vmatpush1.bf16.msra.mxu1 %v5330_v59 }
 0x955   :  { %2167 = vmatprep.subr.bf16.mxu0 %v5336_v5  ;;  %2208 = vmatprep.subr.bf16.mxu1 %v5338_v12 }
 0x958   :  { %2168 = vmatpush1.bf16.msra.mxu0 %v5340_v56  ;;  %2209 = vmatpush1.bf16.msra.mxu1 %v5342_v13 }
 0x959   :  { %2169 = vmatprep.subr.bf16.mxu0 %v5344_v58  ;;  %2210 = vmatprep.subr.bf16.mxu1 %v5348_v62 }
 0x95c   :  { %2170 = vmatpush1.bf16.msra.mxu0 %v5352_v8  ;;  %2211 = vmatpush1.bf16.msra.mxu1 %v5354_v46 }
 0x95d   :  { %2805 = vadd.xlane.f32.xlu0 %v2804_v15  ;;  %2262 = vmatprep.subr.bf16.mxu0 %v5264_v53 }
 0x95e   :  { %2303 = vmatprep.subr.bf16.mxu1 %v5266_v55 }
 0x9ff   :  { %v2082_v29 = vpop.f32.mrf.mxu0  ;;  %v2123_v7 = vpop.f32.mrf.mxu1 }
 0xa00   :  { %v2083_v30 = vadd.f32 %v2082_v29, %v1674_v48  ;;  %v2124_v33 = vadd.f32 %v2123_v7, %v1747_v37 }
 0xa01   :  { %v2084_v43 = vpop.f32.mrf.mxu0  ;;  %v2125_v52 = vpop.f32.mrf.mxu1 }
 0xa02   :  { %v3765_v16 = vmul.f32 -1.442695, %v2083_v30  ;;  %v2085_v47 = vadd.f32 %v2084_v43, %v1676_v32  ;;  %v2126_v15 = vadd.f32 %v2125_v52, %v1749_v31 }
 0xa03   :  { %v2086_v28 = vpop.f32.mrf.mxu0  ;;  %v2127_v36 = vpop.f32.mrf.mxu1 }
 0xa04   :  { %4169 = vpow2.f32 %v3765_v16  ;;  %v3766_v50 = vmul.f32 -1.442695, %v2085_v47  ;;  %v3767_v48 = vmul.f32 -1.442695, %v2126_v15  ;;  %v1680_v15 = vadd.f32 %v5415_v51, %v5460_v6 }
 0xa05   :  { %v2087_v57 = vpop.f32.mrf.mxu0  ;;  %v2128_v61 = vpop.f32.mrf.mxu1 }
 0xa06   :  { %4171 = vpow2.f32 %v3766_v50 }
 0xa07   :  { %4173 = vtanh.f32 %v2124_v33 }
 0xa08   :  { %4175 = vpow2.f32 %v3767_v48 }
 0xa11   :  { %v4170_v29 = vpop.eup %4169 }
 0xa12   :  { %v2133_v20 = vadd.f32 1.0, %v4170_v29  ;;  %v1682_v29 = vadd.f32 %v5419_v10, %v5468_v0 }
 0xa13   :  { %v4172_v32 = vpop.eup %4171 }
 0xa14   :  { %4177 = vrcp.f32 %v2133_v20  ;;  %v2139_v30 = vadd.f32 1.0, %v4172_v32  ;;  %v4174_v43 = vpop.eup %4173 }
 0xa15   :  { %v4176_v16 = vpop.eup %4175 }
 0xa16   :  { %4179 = vrcp.f32 %v2139_v30  ;;  %v2146_v4 = vadd.f32 1.0, %v4176_v16 }
 0xa18   :  { %4181 = vrcp.f32 %v2146_v4 }
 0xa21   :  { %v4178_v47 = vpop.eup %4177 }
 0xa22   :  { %v2150_v28 = vmul.f32 %v4178_v47, %v4174_v43 }
 0xa23   :  { %v4180_v36 = vpop.eup %4179 }
 0xa24   :  { %v2149_v52 = vmul.f32 %v4180_v36, %v5486_v63 }
 0xa25   :  { %v4182_v42 = vpop.eup %4181 }
 0xa26   :  { %v5551_v50 = vadd.f32 %v2150_v28, %v2149_v52 }
 0xa28   :  { %4183 = vtanh.f32 %v5551_v50 }
 0xa35   :  { %v4184_v37 = vpop.eup %4183 }
 0xa36   :  { %v5554_v7 = vmul.f32 %v4184_v37, %v4182_v42  ;;  %v6248_v37 = vld [vmem:[#allocation18_spill] sm:$0xff] }
 0xa37   :  { %v1755_v51 = vadd.f32 %v6248_v37, %v5478_v54 }
 0xa38   :  { %v3302_v20 = vmul.f32 %v5489_v9, %v5554_v7  ;;  %v2986_v57 = vmul.f32 %v5491_v44, %v5554_v7  ;;  %v2154_v61 = vpack.c.bf16 %v5554_v7, %v5554_v7  ;;  %v2812_v63 = vmul.f32 %v5527_v14, %v5554_v7 }
 0xa3a   :  { %3304 = vrot.lane.b32.xlu1 %v3302_v20, %s4536_s3  ;;  %2988 = vrot.lane.b32.xlu0 %v2986_v57, %s4538_s6  ;;  %v2813_v31 = vsel %vm2803_vm2, %v2812_v63, 0.0  ;;  %v6249_v57 = vld [vmem:[#allocation17_spill] sm:$0xff] }
 0xa3b   :  { %2188 = vmatmul.mubr.bf16.vlgmr.msra.gmra.mxu0 %v2154_v61  ;;  %2229 = vmatmul.mubr.bf16.vlgmr.msra.gmra.mxu1 %v2154_v61  ;;  %v1753_v61 = vadd.f32 %v6249_v57, %v5483_v45 }
 0xa3c   :  { %2263 = vmatpush1.bf16.msra.mxu0 %v5268_v1  ;;  %2304 = vmatpush1.bf16.msra.mxu1 %v5270_v2 }
 0xa3d   :  { %2264 = vmatprep.subr.bf16.mxu0 %v5276_v35  ;;  %2305 = vmatprep.subr.bf16.mxu1 %v5278_v34 }
 0xa3e   :  { %2294 = vmatprep.mubr.bf16.mxu0 %v6200_v60  ;;  %2335 = vmatprep.mubr.bf16.mxu1 %v6200_v60 }
 0xa40   :  { %2265 = vmatpush1.bf16.msra.mxu0 %v5280_v17  ;;  %2306 = vmatpush1.bf16.msra.mxu1 %v5282_v18 }
 0xa41   :  { %2266 = vmatprep.subr.bf16.mxu0 %v5288_v19  ;;  %2307 = vmatprep.subr.bf16.mxu1 %v5290_v21 }
 0xa44   :  { %2267 = vmatpush1.bf16.msra.mxu0 %v5292_v22  ;;  %2308 = vmatpush1.bf16.msra.mxu1 %v5294_v23 }
 0xa45   :  { %2268 = vmatprep.subr.bf16.mxu0 %v5300_v3  ;;  %2309 = vmatprep.subr.bf16.mxu1 %v5302_v11 }
 0xa48   :  { %2269 = vmatpush1.bf16.msra.mxu0 %v5304_v24  ;;  %2310 = vmatpush1.bf16.msra.mxu1 %v5306_v38 }
 0xa49   :  { %2270 = vmatprep.subr.bf16.mxu0 %v5312_v25  ;;  %2311 = vmatprep.subr.bf16.mxu1 %v5314_v39 }
 0xa4c   :  { %2271 = vmatpush1.bf16.msra.mxu0 %v5316_v26  ;;  %2312 = vmatpush1.bf16.msra.mxu1 %v5318_v40 }
 0xa4d   :  { %2272 = vmatprep.subr.bf16.mxu0 %v5324_v27  ;;  %2313 = vmatprep.subr.bf16.mxu1 %v5326_v41 }
 0xa50   :  { %2273 = vmatpush1.bf16.msra.mxu0 %v5328_v49  ;;  %2314 = vmatpush1.bf16.msra.mxu1 %v5330_v59 }
 0xa51   :  { %2274 = vmatprep.subr.bf16.mxu0 %v5336_v5  ;;  %2315 = vmatprep.subr.bf16.mxu1 %v5338_v12 }
 0xa54   :  { %2275 = vmatpush1.bf16.msra.mxu0 %v5340_v56  ;;  %2316 = vmatpush1.bf16.msra.mxu1 %v5342_v13 }
 0xa55   :  { %2276 = vmatprep.subr.bf16.mxu0 %v5344_v58  ;;  %2317 = vmatprep.subr.bf16.mxu1 %v5348_v62 }
 0xa58   :  { %2277 = vmatpush1.bf16.msra.mxu0 %v5352_v8  ;;  %2318 = vmatpush1.bf16.msra.mxu1 %v5354_v46 }
 0xa59   :  { %2369 = vmatprep.subr.bf16.mxu0 %v5264_v53  ;;  %2410 = vmatprep.subr.bf16.mxu1 %v5266_v55 }
 0xa5e   :  { %2814 = vadd.xlane.f32.xlu1 %v2813_v31 }
 0xafb   :  { %v2189_v33 = vpop.f32.mrf.mxu0  ;;  %v2230_v48 = vpop.f32.mrf.mxu1 }
 0xafc   :  { %v2190_v32 = vadd.f32 %v2189_v33, %v1680_v15  ;;  %v2231_v10 = vadd.f32 %v2230_v48, %v1753_v61  ;;  %v6250_v61 = vld [vmem:[#allocation20_spill] sm:$0xff] }
 0xafd   :  { %v2191_v30 = vpop.f32.mrf.mxu0  ;;  %v2232_v43 = vpop.f32.mrf.mxu1 }
 0xafe   :  { %v3768_v16 = vmul.f32 -1.442695, %v2190_v32  ;;  %v2192_v47 = vadd.f32 %v2191_v30, %v1682_v29  ;;  %v2233_v20 = vadd.f32 %v2232_v43, %v1755_v51 }
 0xaff   :  { %v2193_v28 = vpop.f32.mrf.mxu0  ;;  %v2234_v36 = vpop.f32.mrf.mxu1 }
 0xb00   :  { %4185 = vpow2.f32 %v3768_v16  ;;  %v3769_v4 = vmul.f32 -1.442695, %v2192_v47  ;;  %v3770_v63 = vmul.f32 -1.442695, %v2233_v20 }
 0xb01   :  { %v2194_v52 = vpop.f32.mrf.mxu0  ;;  %v2235_v42 = vpop.f32.mrf.mxu1 }
 0xb02   :  { %4187 = vpow2.f32 %v3769_v4 }
 0xb03   :  { %4189 = vtanh.f32 %v2231_v10  ;;  %v1684_v10 = vadd.f32 %v6250_v61, %v5460_v6 }
 0xb04   :  { %4191 = vpow2.f32 %v3770_v63 }
 0xb0d   :  { %v4186_v31 = vpop.eup %4185 }
 0xb0e   :  { %v2240_v15 = vadd.f32 1.0, %v4186_v31  ;;  %v6251_v31 = vld [vmem:[#allocation19_spill] sm:$0xff] }
 0xb0f   :  { %v4188_v33 = vpop.eup %4187 }
 0xb10   :  { %4193 = vrcp.f32 %v2240_v15  ;;  %v2246_v29 = vadd.f32 1.0, %v4188_v33  ;;  %v4190_v32 = vpop.eup %4189  ;;  %v1686_v15 = vadd.f32 %v6251_v31, %v5468_v0 }
 0xb11   :  { %v4192_v30 = vpop.eup %4191 }
 0xb12   :  { %4195 = vrcp.f32 %v2246_v29  ;;  %v2253_v36 = vadd.f32 1.0, %v4192_v30 }
 0xb14   :  { %4197 = vrcp.f32 %v2253_v36 }
 0xb1d   :  { %v4194_v16 = vpop.eup %4193 }
 0xb1e   :  { %v2257_v47 = vmul.f32 %v4194_v16, %v4190_v32 }
 0xb1f   :  { %v4196_v28 = vpop.eup %4195 }
 0xb20   :  { %v2256_v43 = vmul.f32 %v4196_v28, %v5551_v50 }
 0xb21   :  { %v4198_v48 = vpop.eup %4197 }
 0xb22   :  { %v5610_v4 = vadd.f32 %v2257_v47, %v2256_v43 }
 0xb24   :  { %4199 = vtanh.f32 %v5610_v4 }
 0xb31   :  { %v4200_v52 = vpop.eup %4199 }
 0xb32   :  { %v5613_v42 = vmul.f32 %v4200_v52, %v4198_v48  ;;  %v6252_v48 = vld [vmem:[#allocation22_spill] sm:$0xff] }
 0xb33   :  { %v1759_v52 = vadd.f32 %v6252_v48, %v5478_v54 }
 0xb34   :  { %v2995_v37 = vmul.f32 %v5491_v44, %v5613_v42  ;;  %v2261_v51 = vpack.c.bf16 %v5613_v42, %v5613_v42  ;;  %v2817_v20 = vmul.f32 %v5527_v14, %v5613_v42  ;;  %v3311_v57 = vmul.f32 %v5489_v9, %v5613_v42 }
 0xb36   :  { %2997 = vrot.lane.b32.xlu1 %v2995_v37, %s4538_s6  ;;  %2295 = vmatmul.mubr.bf16.vlgmr.msra.gmra.mxu0 %v2261_v51  ;;  %v2818_v50 = vsel %vm2803_vm2, %v2817_v20, 0.0 }
 0xb37   :  { %2336 = vmatmul.mubr.bf16.vlgmr.msra.gmra.mxu1 %v2261_v51  ;;  %2819 = vadd.xlane.f32.xlu0 %v2818_v50  ;;  %v6253_v51 = vld [vmem:[#allocation21_spill] sm:$0xff] }
 0xb38   :  { %2370 = vmatpush1.bf16.msra.mxu0 %v5268_v1  ;;  %2411 = vmatpush1.bf16.msra.mxu1 %v5270_v2  ;;  %v1757_v20 = vadd.f32 %v6253_v51, %v5483_v45 }
 0xb39   :  { %2371 = vmatprep.subr.bf16.mxu0 %v5276_v35  ;;  %2412 = vmatprep.subr.bf16.mxu1 %v5278_v34 }
 0xb3a   :  { %3313 = vrot.lane.b32.xlu1 %v3311_v57, %s4536_s3  ;;  %2401 = vmatprep.mubr.bf16.mxu0 %v6200_v60 }
 0xb3b   :  { %2442 = vmatprep.mubr.bf16.mxu1 %v6200_v60 }
 0xb3c   :  { %2372 = vmatpush1.bf16.msra.mxu0 %v5280_v17  ;;  %2413 = vmatpush1.bf16.msra.mxu1 %v5282_v18 }
 0xb3d   :  { %2373 = vmatprep.subr.bf16.mxu0 %v5288_v19  ;;  %2414 = vmatprep.subr.bf16.mxu1 %v5290_v21 }
 0xb40   :  { %2374 = vmatpush1.bf16.msra.mxu0 %v5292_v22  ;;  %2415 = vmatpush1.bf16.msra.mxu1 %v5294_v23 }
 0xb41   :  { %2375 = vmatprep.subr.bf16.mxu0 %v5300_v3  ;;  %2416 = vmatprep.subr.bf16.mxu1 %v5302_v11 }
 0xb44   :  { %2376 = vmatpush1.bf16.msra.mxu0 %v5304_v24  ;;  %2417 = vmatpush1.bf16.msra.mxu1 %v5306_v38 }
 0xb45   :  { %2377 = vmatprep.subr.bf16.mxu0 %v5312_v25  ;;  %2418 = vmatprep.subr.bf16.mxu1 %v5314_v39 }
 0xb48   :  { %2378 = vmatpush1.bf16.msra.mxu0 %v5316_v26  ;;  %2419 = vmatpush1.bf16.msra.mxu1 %v5318_v40 }
 0xb49   :  { %2379 = vmatprep.subr.bf16.mxu0 %v5324_v27  ;;  %2420 = vmatprep.subr.bf16.mxu1 %v5326_v41 }
 0xb4c   :  { %2380 = vmatpush1.bf16.msra.mxu0 %v5328_v49  ;;  %2421 = vmatpush1.bf16.msra.mxu1 %v5330_v59 }
 0xb4d   :  { %2381 = vmatprep.subr.bf16.mxu0 %v5336_v5  ;;  %2422 = vmatprep.subr.bf16.mxu1 %v5338_v12 }
 0xb50   :  { %2382 = vmatpush1.bf16.msra.mxu0 %v5340_v56  ;;  %2423 = vmatpush1.bf16.msra.mxu1 %v5342_v13 }
 0xb51   :  { %2383 = vmatprep.subr.bf16.mxu0 %v5344_v58  ;;  %2424 = vmatprep.subr.bf16.mxu1 %v5348_v62 }
 0xb54   :  { %2384 = vmatpush1.bf16.msra.mxu0 %v5352_v8  ;;  %2425 = vmatpush1.bf16.msra.mxu1 %v5354_v46 }
 0xb55   :  { %2476 = vmatprep.subr.bf16.mxu0 %v5264_v53  ;;  %2517 = vmatprep.subr.bf16.mxu1 %v5266_v55 }
 0xbf6   :  { %v2296_v63 = vpop.f32.mrf.mxu0 }
 0xbf7   :  { %v2297_v33 = vadd.f32 %v2296_v63, %v1684_v10  ;;  %v2337_v29 = vpop.f32.mrf.mxu1 }
 0xbf8   :  { %v2298_v32 = vpop.f32.mrf.mxu0  ;;  %v2338_v50 = vadd.f32 %v2337_v29, %v1757_v20 }
 0xbf9   :  { %v3771_v30 = vmul.f32 -1.442695, %v2297_v33  ;;  %v2299_v16 = vadd.f32 %v2298_v32, %v1686_v15  ;;  %v2339_v47 = vpop.f32.mrf.mxu1 }
 0xbfa   :  { %v2300_v28 = vpop.f32.mrf.mxu0  ;;  %v2340_v37 = vadd.f32 %v2339_v47, %v1759_v52 }
 0xbfb   :  { %4201 = vpow2.f32 %v3771_v30  ;;  %v3772_v36 = vmul.f32 -1.442695, %v2299_v16  ;;  %v2341_v43 = vpop.f32.mrf.mxu1 }
 0xbfc   :  { %v2301_v53 = vpop.f32.mrf.mxu0  ;;  %v3773_v57 = vmul.f32 -1.442695, %v2340_v37 }
 0xbfd   :  { %4203 = vpow2.f32 %v3772_v36  ;;  %v2342_v55 = vpop.f32.mrf.mxu1 }
 0xbfe   :  { %4205 = vtanh.f32 %v2338_v50 }
 0xbff   :  { %4207 = vpow2.f32 %v3773_v57 }
 0xc08   :  { %v4202_v61 = vpop.eup %4201 }
 0xc09   :  { %v2347_v10 = vadd.f32 1.0, %v4202_v61 }
 0xc0a   :  { %v4204_v63 = vpop.eup %4203 }
 0xc0b   :  { %4209 = vrcp.f32 %v2347_v10  ;;  %v2353_v31 = vadd.f32 1.0, %v4204_v63  ;;  %v4206_v15 = vpop.eup %4205 }
 0xc0c   :  { %v4208_v33 = vpop.eup %4207 }
 0xc0d   :  { %4211 = vrcp.f32 %v2353_v31  ;;  %v2360_v28 = vadd.f32 1.0, %v4208_v33 }
 0xc0f   :  { %4213 = vrcp.f32 %v2360_v28 }
 0xc18   :  { %v4210_v32 = vpop.eup %4209 }
 0xc19   :  { %v2364_v30 = vmul.f32 %v4210_v32, %v4206_v15 }
 0xc1a   :  { %v4212_v16 = vpop.eup %4211 }
 0xc1b   :  { %v2363_v47 = vmul.f32 %v4212_v16, %v5610_v4 }
 0xc1c   :  { %v4214_v29 = vpop.eup %4213 }
 0xc1d   :  { %v5669_v36 = vadd.f32 %v2364_v30, %v2363_v47  ;;  %v5745_v47 = vld [vmem:[#allocation8 + $0xe0] ss:$16 sps:$4 sm:$0xff]  }
 0xc1f   :  { %4215 = vtanh.f32 %v5669_v36 }
 0xc2c   :  { %v4216_v43 = vpop.eup %4215 }
 0xc2d   :  { %v5672_v53 = vmul.f32 %v4216_v43, %v4214_v29  ;;  %v5751_v29 = vld [vmem:[#allocation8 + $0xc4] ss:$16 sps:$4 sm:$0xff]   ;;  %v5754_v43 = vld [vmem:[#allocation8 + $0xcc] ss:$16 sps:$4 sm:$0xff]  }
 0xc2f   :  { %v3004_v55 = vmul.f32 %v5491_v44, %v5672_v53  ;;  %v2368_v48 = vpack.c.bf16 %v5672_v53, %v5672_v53  ;;  %v2822_v52 = vmul.f32 %v5527_v14, %v5672_v53  ;;  %v3320_v37 = vmul.f32 %v5489_v9, %v5672_v53 }
 0xc31   :  { %3006 = vrot.lane.b32.xlu1 %v3004_v55, %s4538_s6  ;;  %2402 = vmatmul.mubr.bf16.vlgmr.msra.gmra.mxu0 %v2368_v48  ;;  %v2823_v4 = vsel %vm2803_vm2, %v2822_v52, 0.0  ;;  %v5759_v55 = vld [vmem:[#allocation8 + $0xc0] ss:$16 sps:$4 sm:$0xff]   ;;  %v5765_v52 = vld [vmem:[#allocation8 + $0xa4] ss:$16 sps:$4 sm:$0xff]  }
 0xc32   :  { %2443 = vmatmul.mubr.bf16.vlgmr.msra.gmra.mxu1 %v2368_v48  ;;  %2824 = vadd.xlane.f32.xlu0 %v2823_v4  ;;  %v5762_v48 = vld [vmem:[#allocation8 + $0xc8] ss:$16 sps:$4 sm:$0xff]   ;;  %v5768_v4 = vld [vmem:[#allocation8 + $0xac] ss:$16 sps:$4 sm:$0xff]  }
 0xc33   :  { %2477 = vmatpush1.bf16.msra.mxu0 %v5268_v1  ;;  %2518 = vmatpush1.bf16.msra.mxu1 %v5270_v2  ;;  %v5717_v1 = vld [vmem:[#allocation8 + $0xe4] ss:$16 sps:$4 sm:$0xff]   ;;  %v5720_v2 = vld [vmem:[#allocation8 + $0xec] ss:$16 sps:$4 sm:$0xff]  }
 0xc34   :  { %2478 = vmatprep.subr.bf16.mxu0 %v5276_v35  ;;  %2519 = vmatprep.subr.bf16.mxu1 %v5278_v34  ;;  %v6254_v35 = vld [vmem:[#allocation24_spill] sm:$0xff] }
 0xc35   :  { %3322 = vrot.lane.b32.xlu1 %v3320_v37, %s4536_s3  ;;  %2508 = vmatprep.mubr.bf16.mxu0 %v6200_v60  ;;  %v1690_v34 = vadd.f32 %v6254_v35, %v5460_v6  ;;  %v5771_v37 = vld [vmem:[#allocation8 + $0xa0] ss:$16 sps:$4 sm:$0xff]   ;;  %v5774_v35 = vld [vmem:[#allocation8 + $0xa8] ss:$16 sps:$4 sm:$0xff]  }
 0xc36   :  { %2549 = vmatprep.mubr.bf16.mxu1 %v6200_v60 }
 0xc37   :  { %2479 = vmatpush1.bf16.msra.mxu0 %v5280_v17  ;;  %2520 = vmatpush1.bf16.msra.mxu1 %v5282_v18  ;;  %v6255_v18 = vld [vmem:[#allocation23_spill] sm:$0xff] }
 0xc38   :  { %2480 = vmatprep.subr.bf16.mxu0 %v5288_v19  ;;  %2521 = vmatprep.subr.bf16.mxu1 %v5290_v21  ;;  %v1692_v19 = vadd.f32 %v6255_v18, %v5468_v0  ;;  %v5783_v18 = vld [vmem:[#allocation8 + $0x80] ss:$16 sps:$4 sm:$0xff]  }
 0xc3b   :  { %2481 = vmatpush1.bf16.msra.mxu0 %v5292_v22  ;;  %2522 = vmatpush1.bf16.msra.mxu1 %v5294_v23 }
 0xc3c   :  { %2482 = vmatprep.subr.bf16.mxu0 %v5300_v3  ;;  %2523 = vmatprep.subr.bf16.mxu1 %v5302_v11 }
 0xc3f   :  { %2483 = vmatpush1.bf16.msra.mxu0 %v5304_v24  ;;  %2524 = vmatpush1.bf16.msra.mxu1 %v5306_v38 }
 0xc40   :  { %2484 = vmatprep.subr.bf16.mxu0 %v5312_v25  ;;  %2525 = vmatprep.subr.bf16.mxu1 %v5314_v39 }
 0xc43   :  { %2485 = vmatpush1.bf16.msra.mxu0 %v5316_v26  ;;  %2526 = vmatpush1.bf16.msra.mxu1 %v5318_v40 }
 0xc44   :  { %2486 = vmatprep.subr.bf16.mxu0 %v5324_v27  ;;  %2527 = vmatprep.subr.bf16.mxu1 %v5326_v41  ;;  %v6256_v27 = vld [vmem:[#allocation26_spill] sm:$0xff] }
 0xc45   :  { %v1765_v41 = vadd.f32 %v6256_v27, %v5478_v54  ;;  %v5822_v27 = vld [vmem:[#allocation8 + $0x28] ss:$16 sps:$4 sm:$0xff]  }
 0xc47   :  { %2487 = vmatpush1.bf16.msra.mxu0 %v5328_v49  ;;  %2528 = vmatpush1.bf16.msra.mxu1 %v5330_v59  ;;  %v6257_v59 = vld [vmem:[#allocation25_spill] sm:$0xff] }
 0xc48   :  { %2488 = vmatprep.subr.bf16.mxu0 %v5336_v5  ;;  %2529 = vmatprep.subr.bf16.mxu1 %v5338_v12  ;;  %v1763_v5 = vadd.f32 %v6257_v59, %v5483_v45  ;;  %v5831_v59 = vld [vmem:[#allocation8] ss:$16 sps:$4 sm:$0xff]  }
 0xc4b   :  { %2489 = vmatpush1.bf16.msra.mxu0 %v5340_v56  ;;  %2530 = vmatpush1.bf16.msra.mxu1 %v5342_v13 }
 0xc4c   :  { %2490 = vmatprep.subr.bf16.mxu0 %v5344_v58  ;;  %2531 = vmatprep.subr.bf16.mxu1 %v5348_v62 }
 0xc4f   :  { %2491 = vmatpush1.bf16.msra.mxu0 %v5352_v8  ;;  %2532 = vmatpush1.bf16.msra.mxu1 %v5354_v46 }
 0xc50   :  { %2583 = vmatprep.subr.bf16.mxu0 %v5717_v1  ;;  %2624 = vmatprep.subr.bf16.mxu1 %v5720_v2 }
 0xcf1   :  { %v2403_v17 = vpop.f32.mrf.mxu0 }
 0xcf2   :  { %v2404_v21 = vadd.f32 %v2403_v17, %v1690_v34  ;;  %v2444_v22 = vpop.f32.mrf.mxu1  ;;  %v5777_v34 = vld [vmem:[#allocation8 + $0x84] ss:$16 sps:$4 sm:$0xff]   ;;  %v5780_v17 = vld [vmem:[#allocation8 + $0x8c] ss:$16 sps:$4 sm:$0xff]  }
 0xcf3   :  { %v2405_v23 = vpop.f32.mrf.mxu0  ;;  %v2445_v12 = vadd.f32 %v2444_v22, %v1763_v5  ;;  %v5792_v22 = vld [vmem:[#allocation8 + $0x6c] ss:$16 sps:$4 sm:$0xff]   ;;  %v5834_v5 = vld [vmem:[#allocation8 + $0x8] ss:$16 sps:$4 sm:$0xff]  }
 0xcf4   :  { %v3774_v3 = vmul.f32 -1.442695, %v2404_v21  ;;  %v2406_v11 = vadd.f32 %v2405_v23, %v1692_v19  ;;  %v2446_v24 = vpop.f32.mrf.mxu1  ;;  %v5786_v19 = vld [vmem:[#allocation8 + $0x88] ss:$16 sps:$4 sm:$0xff]   ;;  %v5789_v21 = vld [vmem:[#allocation8 + $0x64] ss:$16 sps:$4 sm:$0xff]  }
 0xcf5   :  { %v2407_v38 = vpop.f32.mrf.mxu0  ;;  %v2447_v49 = vadd.f32 %v2446_v24, %v1765_v41  ;;  %v5795_v23 = vld [vmem:[#allocation8 + $0x60] ss:$16 sps:$4 sm:$0xff]   ;;  %v5804_v24 = vld [vmem:[#allocation8 + $0x4c] ss:$16 sps:$4 sm:$0xff]   ;;  %v5825_v41 = vld [vmem:[#allocation8 + $0x4] ss:$16 sps:$4 sm:$0xff]  }
 0xcf6   :  { %4217 = vpow2.f32 %v3774_v3  ;;  %v3775_v25 = vmul.f32 -1.442695, %v2406_v11  ;;  %v2448_v39 = vpop.f32.mrf.mxu1  ;;  %v5798_v3 = vld [vmem:[#allocation8 + $0x68] ss:$16 sps:$4 sm:$0xff]   ;;  %v5801_v11 = vld [vmem:[#allocation8 + $0x44] ss:$16 sps:$4 sm:$0xff]  }
 0xcf7   :  { %v2408_v26 = vpop.f32.mrf.mxu0  ;;  %v3776_v56 = vmul.f32 -1.442695, %v2447_v49  ;;  %v5807_v38 = vld [vmem:[#allocation8 + $0x40] ss:$16 sps:$4 sm:$0xff]   ;;  %v5813_v39 = vld [vmem:[#allocation8 + $0x24] ss:$16 sps:$4 sm:$0xff]  }
 0xcf8   :  { %4219 = vpow2.f32 %v3775_v25  ;;  %v2449_v40 = vpop.f32.mrf.mxu1  ;;  %v5810_v25 = vld [vmem:[#allocation8 + $0x48] ss:$16 sps:$4 sm:$0xff]   ;;  %v5816_v26 = vld [vmem:[#allocation8 + $0x2c] ss:$16 sps:$4 sm:$0xff]  }
 0xcf9   :  { %4221 = vtanh.f32 %v2445_v12  ;;  %v5819_v40 = vld [vmem:[#allocation8 + $0x20] ss:$16 sps:$4 sm:$0xff]   ;;  %v5828_v49 = vld [vmem:[#allocation8 + $0xc] ss:$16 sps:$4 sm:$0xff]  }
 0xcfa   :  { %4223 = vpow2.f32 %v3776_v56  ;;  %v6258_v12 = vld [vmem:[#allocation28_spill] sm:$0xff] }
 0xcfb   :  { %v1694_v56 = vadd.f32 %v6258_v12, %v5460_v6 }
 0xd03   :  { %v4218_v13 = vpop.eup %4217 }
 0xd04   :  { %v2454_v58 = vadd.f32 1.0, %v4218_v13 }
 0xd05   :  { %v4220_v62 = vpop.eup %4219 }
 0xd06   :  { %4225 = vrcp.f32 %v2454_v58  ;;  %v2460_v8 = vadd.f32 1.0, %v4220_v62  ;;  %v4222_v46 = vpop.eup %4221  ;;  %v6259_v58 = vld [vmem:[#allocation27_spill] sm:$0xff] }
 0xd07   :  { %v4224_v51 = vpop.eup %4223  ;;  %v1696_v62 = vadd.f32 %v6259_v58, %v5468_v0 }
 0xd08   :  { %4227 = vrcp.f32 %v2460_v8  ;;  %v2467_v61 = vadd.f32 1.0, %v4224_v51 }
 0xd0a   :  { %4229 = vrcp.f32 %v2467_v61 }
 0xd13   :  { %v4226_v20 = vpop.eup %4225 }
 0xd14   :  { %v2471_v50 = vmul.f32 %v4226_v20, %v4222_v46 }
 0xd15   :  { %v4228_v57 = vpop.eup %4227 }
 0xd16   :  { %v2470_v10 = vmul.f32 %v4228_v57, %v5669_v36  ;;  %v5748_v36 = vld [vmem:[#allocation8 + $0xe8] ss:$16 sps:$4 sm:$0xff]  }
 0xd17   :  { %v4230_v31 = vpop.eup %4229 }
 0xd18   :  { %v5732_v63 = vadd.f32 %v2471_v50, %v2470_v10 }
 0xd1a   :  { %4231 = vtanh.f32 %v5732_v63 }
 0xd27   :  { %v4232_v15 = vpop.eup %4231 }
 0xd28   :  { %v5735_v33 = vmul.f32 %v4232_v15, %v4230_v31  ;;  %v6260_v15 = vld [vmem:[#allocation30_spill] sm:$0xff] }
 0xd2a   :  { %v3013_v32 = vmul.f32 %v5491_v44, %v5735_v33  ;;  %v2475_v30 = vpack.c.bf16 %v5735_v33, %v5735_v33  ;;  %v2827_v16 = vmul.f32 %v5527_v14, %v5735_v33 }
 0xd2c   :  { %3015 = vrot.lane.b32.xlu0 %v3013_v32, %s4538_s6  ;;  %2509 = vmatmul.mubr.bf16.vlgmr.msra.gmra.mxu0 %v2475_v30  ;;  %v2828_v28 = vsel %vm2803_vm2, %v2827_v16, 0.0  ;;  %v1769_v32 = vadd.f32 %v6260_v15, %v5478_v54  ;;  %v6261_v16 = vld [vmem:[#allocation29_spill] sm:$0xff] }
 0xd2d   :  { %2550 = vmatmul.mubr.bf16.vlgmr.msra.gmra.mxu1 %v2475_v30  ;;  %2829 = vadd.xlane.f32.xlu1 %v2828_v28  ;;  %v1767_v28 = vadd.f32 %v6261_v16, %v5483_v45 }
 0xd2e   :  { %2584 = vmatpush1.bf16.msra.mxu0 %v5745_v47  ;;  %2625 = vmatpush1.bf16.msra.mxu1 %v5748_v36 }
 0xd2f   :  { %2585 = vmatprep.subr.bf16.mxu0 %v5751_v29  ;;  %2626 = vmatprep.subr.bf16.mxu1 %v5754_v43 }
 0xd30   :  { %2615 = vmatprep.mubr.bf16.mxu0 %v6200_v60  ;;  %2656 = vmatprep.mubr.bf16.mxu1 %v6200_v60 }
 0xd32   :  { %2586 = vmatpush1.bf16.msra.mxu0 %v5759_v55  ;;  %2627 = vmatpush1.bf16.msra.mxu1 %v5762_v48 }
 0xd33   :  { %2587 = vmatprep.subr.bf16.mxu0 %v5765_v52  ;;  %2628 = vmatprep.subr.bf16.mxu1 %v5768_v4 }
 0xd36   :  { %2588 = vmatpush1.bf16.msra.mxu0 %v5771_v37  ;;  %2629 = vmatpush1.bf16.msra.mxu1 %v5774_v35 }
 0xd37   :  { %2589 = vmatprep.subr.bf16.mxu0 %v5777_v34  ;;  %2630 = vmatprep.subr.bf16.mxu1 %v5780_v17 }
 0xd3a   :  { %2590 = vmatpush1.bf16.msra.mxu0 %v5783_v18  ;;  %2631 = vmatpush1.bf16.msra.mxu1 %v5786_v19 }
 0xd3b   :  { %2591 = vmatprep.subr.bf16.mxu0 %v5789_v21  ;;  %2632 = vmatprep.subr.bf16.mxu1 %v5792_v22 }
 0xd3e   :  { %2592 = vmatpush1.bf16.msra.mxu0 %v5795_v23  ;;  %2633 = vmatpush1.bf16.msra.mxu1 %v5798_v3 }
 0xd3f   :  { %2593 = vmatprep.subr.bf16.mxu0 %v5801_v11  ;;  %2634 = vmatprep.subr.bf16.mxu1 %v5804_v24 }
 0xd42   :  { %2594 = vmatpush1.bf16.msra.mxu0 %v5807_v38  ;;  %2635 = vmatpush1.bf16.msra.mxu1 %v5810_v25 }
 0xd43   :  { %2595 = vmatprep.subr.bf16.mxu0 %v5813_v39  ;;  %2636 = vmatprep.subr.bf16.mxu1 %v5816_v26 }
 0xd46   :  { %2596 = vmatpush1.bf16.msra.mxu0 %v5819_v40  ;;  %2637 = vmatpush1.bf16.msra.mxu1 %v5822_v27 }
 0xd47   :  { %2597 = vmatprep.subr.bf16.mxu0 %v5825_v41  ;;  %2638 = vmatprep.subr.bf16.mxu1 %v5828_v49 }
 0xd4a   :  { %2598 = vmatpush1.bf16.msra.mxu0 %v5831_v59  ;;  %2639 = vmatpush1.bf16.msra.mxu1 %v5834_v5 }
 0xd4b   :  { %2690 = vmatprep.subr.bf16.mxu0 %v5717_v1  ;;  %2731 = vmatprep.subr.bf16.mxu1 %v5720_v2 }
 0xdec   :  { %v2510_v13 = vpop.f32.mrf.mxu0 }
 0xded   :  { %v2511_v8 = vadd.f32 %v2510_v13, %v1694_v56  ;;  %v2551_v46 = vpop.f32.mrf.mxu1 }
 0xdee   :  { %v2512_v51 = vpop.f32.mrf.mxu0  ;;  %v2552_v12 = vadd.f32 %v2551_v46, %v1767_v28 }
 0xdef   :  { %v3777_v20 = vmul.f32 -1.442695, %v2511_v8  ;;  %v2513_v50 = vadd.f32 %v2512_v51, %v1696_v62  ;;  %v2553_v57 = vpop.f32.mrf.mxu1 }
 0xdf0   :  { %v2514_v61 = vpop.f32.mrf.mxu0  ;;  %v2554_v30 = vadd.f32 %v2553_v57, %v1769_v32 }
 0xdf1   :  { %4233 = vpow2.f32 %v3777_v20  ;;  %v3778_v10 = vmul.f32 -1.442695, %v2513_v50  ;;  %v2555_v31 = vpop.f32.mrf.mxu1 }
 0xdf2   :  { %v2515_v1 = vpop.f32.mrf.mxu0  ;;  %v3779_v56 = vmul.f32 -1.442695, %v2554_v30 }
 0xdf3   :  { %4235 = vpow2.f32 %v3778_v10  ;;  %v2556_v2 = vpop.f32.mrf.mxu1 }
 0xdf4   :  { %4237 = vtanh.f32 %v2552_v12 }
 0xdf5   :  { %4239 = vpow2.f32 %v3779_v56 }
 0xdfe   :  { %v4234_v13 = vpop.eup %4233 }
 0xdff   :  { %v2561_v58 = vadd.f32 1.0, %v4234_v13 }
 0xe00   :  { %v4236_v62 = vpop.eup %4235 }
 0xe01   :  { %4241 = vrcp.f32 %v2561_v58  ;;  %v2567_v8 = vadd.f32 1.0, %v4236_v62  ;;  %v4238_v51 = vpop.eup %4237 }
 0xe02   :  { %v4240_v20 = vpop.eup %4239 }
 0xe03   :  { %4243 = vrcp.f32 %v2567_v8  ;;  %v2574_v31 = vadd.f32 1.0, %v4240_v20 }
 0xe05   :  { %4245 = vrcp.f32 %v2574_v31  ;;  %v6266_v31 = vld [vmem:[#allocation35_spill] sm:$0xff] }
 0xe0e   :  { %v4242_v50 = vpop.eup %4241 }
 0xe0f   :  { %v2578_v61 = vmul.f32 %v4242_v50, %v4238_v51 }
 0xe10   :  { %v4244_v10 = vpop.eup %4243 }
 0xe11   :  { %v2577_v57 = vmul.f32 %v4244_v10, %v5732_v63 }
 0xe12   :  { %v4246_v46 = vpop.eup %4245 }
 0xe13   :  { %v5848_v1 = vadd.f32 %v2578_v61, %v2577_v57  ;;  %v1704_v57 = vadd.f32 %v6266_v31, %v5460_v6 }
 0xe15   :  { %4247 = vtanh.f32 %v5848_v1 }
 0xe22   :  { %v4248_v2 = vpop.eup %4247 }
 0xe23   :  { %v5851_v15 = vmul.f32 %v4248_v2, %v4246_v46  ;;  %v6267_v46 = vld [vmem:[#allocation36_spill] sm:$0xff] }
 0xe24   :  { %v1706_v2 = vadd.f32 %v6267_v46, %v5468_v0 }
 0xe25   :  { %v3022_v32 = vmul.f32 %v5491_v44, %v5851_v15  ;;  %v2582_v30 = vpack.c.bf16 %v5851_v15, %v5851_v15  ;;  %v2832_v16 = vmul.f32 %v5527_v14, %v5851_v15  ;;  %v3338_v10 = vmul.f32 %v5489_v9, %v5851_v15 }
 0xe27   :  { %3024 = vrot.lane.b32.xlu1 %v3022_v32, %s4538_s6  ;;  %2616 = vmatmul.mubr.bf16.vlgmr.msra.gmra.mxu0 %v2582_v30  ;;  %v2833_v63 = vsel %vm2803_vm2, %v2832_v16, 0.0 }
 0xe28   :  { %2657 = vmatmul.mubr.bf16.vlgmr.msra.gmra.mxu1 %v2582_v30  ;;  %2834 = vadd.xlane.f32.xlu0 %v2833_v63 }
 0xe29   :  { %2691 = vmatpush1.bf16.msra.mxu0 %v5745_v47  ;;  %2732 = vmatpush1.bf16.msra.mxu1 %v5748_v36 }
 0xe2a   :  { %2692 = vmatprep.subr.bf16.mxu0 %v5751_v29  ;;  %2733 = vmatprep.subr.bf16.mxu1 %v5754_v43  ;;  %v6263_v29 = vld [vmem:[#allocation31_spill] sm:$0xff] }
 0xe2b   :  { %2722 = vmatprep.mubr.bf16.mxu0 %v6200_v60  ;;  %2763 = vmatprep.mubr.bf16.mxu1 %v6200_v60  ;;  %v6262_v60 = vld [vmem:[#allocation32_spill] sm:$0xff]  ;;  %v1702_v43 = vadd.f32 %v6263_v29, %v5468_v0 }
 0xe2c   :  { %v1700_v47 = vadd.f32 %v6262_v60, %v5460_v6 }
 0xe2d   :  { %2693 = vmatpush1.bf16.msra.mxu0 %v5759_v55  ;;  %2734 = vmatpush1.bf16.msra.mxu1 %v5762_v48 }
 0xe2e   :  { %2694 = vmatprep.subr.bf16.mxu0 %v5765_v52  ;;  %2735 = vmatprep.subr.bf16.mxu1 %v5768_v4 }
 0xe31   :  { %2695 = vmatpush1.bf16.msra.mxu0 %v5771_v37  ;;  %2736 = vmatpush1.bf16.msra.mxu1 %v5774_v35 }
 0xe32   :  { %2696 = vmatprep.subr.bf16.mxu0 %v5777_v34  ;;  %2737 = vmatprep.subr.bf16.mxu1 %v5780_v17 }
 0xe35   :  { %2697 = vmatpush1.bf16.msra.mxu0 %v5783_v18  ;;  %2738 = vmatpush1.bf16.msra.mxu1 %v5786_v19 }
 0xe36   :  { %2698 = vmatprep.subr.bf16.mxu0 %v5789_v21  ;;  %2739 = vmatprep.subr.bf16.mxu1 %v5792_v22  ;;  %v6264_v22 = vld [vmem:[#allocation34_spill] sm:$0xff] }
 0xe39   :  { %2699 = vmatpush1.bf16.msra.mxu0 %v5795_v23  ;;  %2740 = vmatpush1.bf16.msra.mxu1 %v5798_v3  ;;  %v1775_v23 = vadd.f32 %v6264_v22, %v5478_v54 }
 0xe3a   :  { %2700 = vmatprep.subr.bf16.mxu0 %v5801_v11  ;;  %2741 = vmatprep.subr.bf16.mxu1 %v5804_v24  ;;  %v6265_v11 = vld [vmem:[#allocation33_spill] sm:$0xff] }
 0xe3b   :  { %v1773_v24 = vadd.f32 %v6265_v11, %v5483_v45 }
 0xe3d   :  { %2701 = vmatpush1.bf16.msra.mxu0 %v5807_v38  ;;  %2742 = vmatpush1.bf16.msra.mxu1 %v5810_v25 }
 0xe3e   :  { %2702 = vmatprep.subr.bf16.mxu0 %v5813_v39  ;;  %2743 = vmatprep.subr.bf16.mxu1 %v5816_v26 }
 0xe41   :  { %2703 = vmatpush1.bf16.msra.mxu0 %v5819_v40  ;;  %2744 = vmatpush1.bf16.msra.mxu1 %v5822_v27 }
 0xe42   :  { %2704 = vmatprep.subr.bf16.mxu0 %v5825_v41  ;;  %2745 = vmatprep.subr.bf16.mxu1 %v5828_v49 }
 0xe45   :  { %2705 = vmatpush1.bf16.msra.mxu0 %v5831_v59  ;;  %2746 = vmatpush1.bf16.msra.mxu1 %v5834_v5 }
 0xee7   :  { %v2617_v36 = vpop.f32.mrf.mxu0 }
 0xee8   :  { %v2618_v55 = vadd.f32 %v2617_v36, %v1700_v47  ;;  %v2658_v48 = vpop.f32.mrf.mxu1 }
 0xee9   :  { %v2619_v52 = vpop.f32.mrf.mxu0  ;;  %v2659_v38 = vadd.f32 %v2658_v48, %v1773_v24  ;;  %v6268_v48 = vld [vmem:[#allocation37_spill] sm:$0xff] }
 0xeea   :  { %v3780_v4 = vmul.f32 -1.442695, %v2618_v55  ;;  %v2620_v37 = vadd.f32 %v2619_v52, %v1702_v43  ;;  %v2660_v35 = vpop.f32.mrf.mxu1  ;;  %v1779_v6 = vadd.f32 %v6268_v48, %v5478_v54 }
 0xeeb   :  { %v2621_v34 = vpop.f32.mrf.mxu0  ;;  %v2661_v3 = vadd.f32 %v2660_v35, %v1775_v23 }
 0xeec   :  { %4249 = vpow2.f32 %v3780_v4  ;;  %v3781_v17 = vmul.f32 -1.442695, %v2620_v37  ;;  %v2662_v18 = vpop.f32.mrf.mxu1  ;;  %v6269_v4 = vld [vmem:[#allocation16_spill] sm:$0xff] }
 0xeed   :  { %v2622_v19 = vpop.f32.mrf.mxu0  ;;  %v3782_v25 = vmul.f32 -1.442695, %v2661_v3  ;;  %v1777_v0 = vadd.f32 %v6269_v4, %v5483_v45 }
 0xeee   :  { %4251 = vpow2.f32 %v3781_v17  ;;  %v2663_v21 = vpop.f32.mrf.mxu1 }
 0xeef   :  { %4253 = vtanh.f32 %v2659_v38 }
 0xef0   :  { %4255 = vpow2.f32 %v3782_v25 }
 0xef9   :  { %v4250_v39 = vpop.eup %4249 }
 0xefa   :  { %v2668_v26 = vadd.f32 1.0, %v4250_v39 }
 0xefb   :  { %v4252_v40 = vpop.eup %4251 }
 0xefc   :  { %4257 = vrcp.f32 %v2668_v26  ;;  %v2674_v27 = vadd.f32 1.0, %v4252_v40  ;;  %v4254_v41 = vpop.eup %4253 }
 0xefd   :  { %v4256_v49 = vpop.eup %4255 }
 0xefe   :  { %4259 = vrcp.f32 %v2674_v27  ;;  %v2681_v12 = vadd.f32 1.0, %v4256_v49  ;;  %v3329_v27 = vmul.f32 %v5489_v9, %v5735_v33  ;;  %v2976_v49 = vpop.permute.xlu1 %2975 }
 0xf00   :  { %4261 = vrcp.f32 %v2681_v12 }
 0xf09   :  { %v4258_v59 = vpop.eup %4257 }
 0xf0a   :  { %v2685_v5 = vmul.f32 %v4258_v59, %v4254_v41  ;;  %v3305_v59 = vpop.permute.xlu1 %3304 }
 0xf0b   :  { %v4260_v28 = vpop.eup %4259 }
 0xf0c   :  { %v2684_v56 = vmul.f32 %v4260_v28, %v5848_v1 }
 0xf0d   :  { %v4262_v58 = vpop.eup %4261 }
 0xf0e   :  { %v2686_v13 = vadd.f32 %v2685_v5, %v2684_v56  ;;  %v3292_v5 = vpop.permute.xlu0 %3291  ;;  %v2815_v28 = vpop.xlane.xlu1 %2814 }
 0xf0f   :  { %v3294_v46 = vsel %vm2803_vm2, %v3292_v5, 0.0 }
 0xf10   :  { %4263 = vtanh.f32 %v2686_v13 }
 0xf12   :  { %v2806_v12 = vpop.xlane.xlu0 %2805 }
 0xf16   :  { %v2989_v56 = vpop.permute.xlu0 %2988 }
 0xf1d   :  { %v4264_v62 = vpop.eup %4263 }
 0xf1e   :  { %v5902_v8 = vmul.f32 %v4264_v62, %v4262_v58 }
 0xf20   :  { %v3031_v51 = vmul.f32 %v5491_v44, %v5902_v8  ;;  %v2689_v20 = vpack.c.bf16 %v5902_v8, %v5902_v8  ;;  %v2837_v50 = vmul.f32 %v5527_v14, %v5902_v8  ;;  %v3347_v41 = vmul.f32 %v5489_v9, %v5902_v8 }
 0xf22   :  { %3033 = vrot.lane.b32.xlu0 %v3031_v51, %s4538_s6  ;;  %2723 = vmatmul.mubr.bf16.vlgmr.msra.gmra.mxu0 %v2689_v20  ;;  %v2838_v61 = vsel %vm2803_vm2, %v2837_v50, 0.0 }
 0xf23   :  { %2764 = vmatmul.mubr.bf16.vlgmr.msra.gmra.mxu1 %v2689_v20  ;;  %2839 = vadd.xlane.f32.xlu1 %v2838_v61  ;;  %v2991_v20 = vsel %vm2803_vm2, %v2989_v56, 0.0  ;;  %v2978_v61 = vsel %vm2803_vm2, %v2976_v49, 0.0 }
 0xf34   :  { %3340 = vrot.lane.b32.xlu1 %v3338_v10, %s4536_s3 }
 0xfe2   :  { %v2724_v1 = vpop.f32.mrf.mxu0 }
 0xfe3   :  { %v2725_v14 = vadd.f32 %v2724_v1, %v1704_v57  ;;  %v2765_v32 = vpop.f32.mrf.mxu1 }
 0xfe4   :  { %v2726_v30 = vpop.f32.mrf.mxu0  ;;  %v2766_v37 = vadd.f32 %v2765_v32, %v1777_v0 }
 0xfe5   :  { %v3783_v16 = vmul.f32 -1.442695, %v2725_v14  ;;  %v2727_v63 = vadd.f32 %v2726_v30, %v1706_v2  ;;  %v2767_v60 = vpop.f32.mrf.mxu1 }
 0xfe6   :  { %v2728_v47 = vpop.f32.mrf.mxu0  ;;  %v2768_v52 = vadd.f32 %v2767_v60, %v1779_v6 }
 0xfe7   :  { %4265 = vpow2.f32 %v3783_v16  ;;  %v3784_v36 = vmul.f32 -1.442695, %v2727_v63  ;;  %v2769_v29 = vpop.f32.mrf.mxu1  ;;  %v3307_v63 = vsel %vm2803_vm2, %v3305_v59, 0.0 }
 0xfe8   :  { %v2729_v43 = vpop.f32.mrf.mxu0  ;;  %v3785_v35 = vmul.f32 -1.442695, %v2768_v52  ;;  %v4399_v29 = vld [vmem:[#allocation10] ss:$0 sm:$0xff] }
 0xfe9   :  { %4267 = vpow2.f32 %v3784_v36  ;;  %v2770_v55 = vpop.f32.mrf.mxu1 }
 0xfea   :  { %4269 = vtanh.f32 %v2766_v37 }
 0xfeb   :  { %4271 = vpow2.f32 %v3785_v35 }
 0xff4   :  { %v4266_v34 = vpop.eup %4265 }
 0xff5   :  { %v2775_v17 = vadd.f32 1.0, %v4266_v34 }
 0xff6   :  { %v4268_v18 = vpop.eup %4267 }
 0xff7   :  { %4273 = vrcp.f32 %v2775_v17  ;;  %v2781_v19 = vadd.f32 1.0, %v4268_v18  ;;  %v4270_v21 = vpop.eup %4269 }
 0xff8   :  { %v4272_v22 = vpop.eup %4271 }
 0xff9   :  { %4275 = vrcp.f32 %v2781_v19  ;;  %v2788_v54 = vadd.f32 1.0, %v4272_v22 }
 0xffb   :  { %4277 = vrcp.f32 %v2788_v54 }
0x1004   :  { %v4274_v23 = vpop.eup %4273 }
0x1005   :  { %v2792_v3 = vmul.f32 %v4274_v23, %v4270_v21 }
0x1006   :  { %v4276_v11 = vpop.eup %4275 }
0x1007   :  { %v2791_v24 = vmul.f32 %v4276_v11, %v2686_v13  ;;  %v2820_v13 = vpop.xlane.xlu0 %2819 }
0x1008   :  { %v4278_v45 = vpop.eup %4277 }
0x1009   :  { %v2793_v38 = vadd.f32 %v2792_v3, %v2791_v24  ;;  %v3787_v3 = vld [vmem:[%s6166_s8] ss:$0 sm:$0xff] }
0x100a   :  { %v2816_v11 = vadd.f32 %v3787_v3, %v2815_v28  ;;  %v2811_v24 = vadd.f32 %v3787_v3, %v2806_v12 }
0x100b   :  { %4279 = vtanh.f32 %v2793_v38  ;;  %v2825_v62 = vpop.xlane.xlu0 %2824  ;;  %v2821_v38 = vadd.f32 %v3787_v3, %v2820_v13 }
0x100f   :  { %v3016_v50 = vpop.permute.xlu0 %3015 }
0x1010   :  { %v3018_v10 = vsel %vm2803_vm2, %v3016_v50, 0.0 }
0x1013   :  { %v2835_v31 = vpop.xlane.xlu0 %2834 }
0x1014   :  { %v2836_v49 = vadd.f32 %v3787_v3, %v2835_v31 }
0x1017   :  { %v3034_v2 = vpop.permute.xlu0 %3033 }
0x1018   :  { %v4280_v25 = vpop.eup %4279  ;;  %v3036_v30 = vsel %vm2803_vm2, %v3034_v2, 0.0 }
0x1019   :  { %v5923_v39 = vmul.f32 %v4280_v25, %v4278_v45  ;;  %v2847_v45 = vmax.f32 %v2811_v24, %v2816_v11  ;;  %v2826_v25 = vadd.f32 %v3787_v3, %v2825_v62 }
0x101b   :  { %v3356_v26 = vmul.f32 %v5489_v9, %v5923_v39  ;;  %v3040_v40 = vmul.f32 %v5491_v44, %v5923_v39  ;;  %v2998_v44 = vpop.permute.xlu1 %2997  ;;  %v2842_v43 = vmul.f32 %v4399_v29, %v5923_v39 }
0x101c   :  { %v3000_v57 = vsel %vm2803_vm2, %v2998_v44, 0.0 }
0x101d   :  { %3358 = vrot.lane.b32.xlu1 %v3356_v26, %s4536_s3  ;;  %3042 = vrot.lane.b32.xlu0 %v3040_v40, %s4538_s6  ;;  %v2843_v55 = vsel %vm2803_vm2, %v2842_v43, 0.0  ;;  %v2848_v40 = vmax.f32 %v2847_v45, %v2821_v38 }
0x101f   :  { %v3314_v58 = vpop.permute.xlu1 %3313 }
0x1020   :  { %v3316_v60 = vsel %vm2803_vm2, %v3314_v58, 0.0 }
0x1021   :  { %3331 = vrot.lane.b32.xlu0 %v3329_v27, %s4536_s3 }
0x1023   :  { %v3007_v51 = vpop.permute.xlu1 %3006 }
0x1024   :  { %v3009_v14 = vsel %vm2803_vm2, %v3007_v51, 0.0 }
0x1025   :  { %3349 = vrot.lane.b32.xlu0 %v3347_v41, %s4536_s3  ;;  %v2849_v41 = vmax.f32 %v2848_v40, %v2826_v25 }
0x1027   :  { %v3323_v9 = vpop.permute.xlu1 %3322 }
0x1028   :  { %v3325_v36 = vsel %vm2803_vm2, %v3323_v9, 0.0 }
0x102b   :  { %v2830_v1 = vpop.xlane.xlu1 %2829 }
0x102c   :  { %v2831_v27 = vadd.f32 %v3787_v3, %v2830_v1 }
0x102e   :  { %v2850_v5 = vmax.f32 %v2849_v41, %v2831_v27 }
0x102f   :  { %v3025_v32 = vpop.permute.xlu1 %3024 }
0x1030   :  { %v3027_v16 = vsel %vm2803_vm2, %v3025_v32, 0.0  ;;  %v2851_v56 = vmax.f32 %v2850_v5, %v2836_v49 }
0x1033   :  { %v2840_v47 = vpop.xlane.xlu1 %2839 }
0x1034   :  { %v2841_v44 = vadd.f32 %v3787_v3, %v2840_v47 }
0x1036   :  { %v2852_v51 = vmax.f32 %v2851_v56, %v2841_v44 }
0x1037   :  { %v3341_v48 = vpop.permute.xlu1 %3340 }
0x1038   :  { %v3343_v6 = vsel %vm2803_vm2, %v3341_v48, 0.0 }
0x1041   :  { %2992 = vadd.xlane.f32.xlu1 %v2991_v20 }
0x1044   :  { %2979 = vadd.xlane.f32.xlu0 %v2978_v61 }
0x1045   :  { %3019 = vadd.xlane.f32.xlu1 %v3018_v10 }
0x1048   :  { %3001 = vadd.xlane.f32.xlu0 %v3000_v57 }
0x1049   :  { %3295 = vadd.xlane.f32.xlu1 %v3294_v46 }
0x104c   :  { %3010 = vadd.xlane.f32.xlu0 %v3009_v14 }
0x104d   :  { %3037 = vadd.xlane.f32.xlu1 %v3036_v30 }
0x1050   :  { %3028 = vadd.xlane.f32.xlu0 %v3027_v16 }
0x1054   :  { %3308 = vadd.xlane.f32.xlu0 %v3307_v63 }
0x1058   :  { %3317 = vadd.xlane.f32.xlu0 %v3316_v60 }
0x105c   :  { %3326 = vadd.xlane.f32.xlu0 %v3325_v36 }
0x1060   :  { %2844 = vadd.xlane.f32.xlu0 %v2843_v55 }
0x1064   :  { %3344 = vadd.xlane.f32.xlu0 %v3343_v6 }
0x108f   :  { %v3359_v52 = vpop.permute.xlu1 %3358  ;;  %v3043_v4 = vpop.permute.xlu0 %3042 }
0x1090   :  { %v3045_v0 = vsel %vm2803_vm2, %v3043_v4, 0.0  ;;  %v3361_v37 = vsel %vm2803_vm2, %v3359_v52, 0.0  ;;  %v3789_v52 = vld [vmem:[%s6166_s8 + $0x1] ss:$0 sm:$0xff] }
0x1091   :  { %3046 = vadd.xlane.f32.xlu1 %v3045_v0  ;;  %3362 = vadd.xlane.f32.xlu0 %v3361_v37 }
0x1093   :  { %v3332_v35 = vpop.permute.xlu0 %3331 }
0x1094   :  { %v3334_v34 = vsel %vm2803_vm2, %v3332_v35, 0.0 }
0x1095   :  { %3335 = vadd.xlane.f32.xlu1 %v3334_v34 }
0x1097   :  { %v3350_v17 = vpop.permute.xlu0 %3349 }
0x1098   :  { %v3352_v18 = vsel %vm2803_vm2, %v3350_v17, 0.0 }
0x1099   :  { %3353 = vadd.xlane.f32.xlu1 %v3352_v18 }
0x10ca   :  { %v2993_v55 = vpop.xlane.xlu1 %2992 }
0x10cb   :  { %v2994_v35 = vadd.f32 %v3789_v52, %v2993_v55 }
0x10cd   :  { %v2980_v19 = vpop.xlane.xlu0 %2979 }
0x10ce   :  { %v2985_v4 = vadd.f32 %v3789_v52, %v2980_v19 }
0x10d1   :  { %v3002_v21 = vpop.xlane.xlu0 %3001 }
0x10d2   :  { %v3003_v34 = vadd.f32 %v3789_v52, %v3002_v21 }
0x10d5   :  { %v5955_v22 = vpop.xlane.xlu0 %3010 }
0x10d9   :  { %v5957_v23 = vpop.xlane.xlu0 %3028 }
0x10dd   :  { %v5962_v54 = vpop.xlane.xlu0 %3308 }
0x10e1   :  { %v5964_v26 = vpop.xlane.xlu0 %3317 }
0x10e5   :  { %v5966_v59 = vpop.xlane.xlu0 %3326 }
0x10e9   :  { %v2845_v58 = vpop.xlane.xlu0 %2844 }
0x10ea   :  { %v2846_v28 = vadd.f32 %v3787_v3, %v2845_v58  ;;  %v3020_v3 = vpop.xlane.xlu1 %3019 }
0x10eb   :  { %v3021_v41 = vadd.f32 %v3789_v52, %v3020_v3 }
0x10ec   :  { %v2853_v20 = vmax.f32 %v2852_v51, %v2846_v28 }
0x10ee   :  { %v2854_v50 = vsub.f32 %v2811_v24, %v2853_v20  ;;  %v2857_v12 = vsub.f32 %v2816_v11, %v2853_v20  ;;  %v2860_v13 = vsub.f32 %v2821_v38, %v2853_v20  ;;  %v2863_v61 = vsub.f32 %v2826_v25, %v2853_v20 }
0x10ef   :  { %v2866_v57 = vsub.f32 %v2831_v27, %v2853_v20  ;;  %v2869_v1 = vsub.f32 %v2836_v49, %v2853_v20  ;;  %v2872_v2 = vsub.f32 %v2841_v44, %v2853_v20  ;;  %v2875_v32 = vsub.f32 %v2846_v28, %v2853_v20  ;;  %v3296_v27 = vpop.xlane.xlu1 %3295  ;;  %v3801_v44 = vld [vmem:[%s6166_s8 + $0x2] ss:$0 sm:$0xff] }
0x10f0   :  { %v2855_v62 = vmul.f32 1.442695, %v2854_v50  ;;  %v2858_v9 = vmul.f32 1.442695, %v2857_v12  ;;  %v2861_v10 = vmul.f32 1.442695, %v2860_v13  ;;  %v3049_v11 = vmax.f32 %v2985_v4, %v2994_v35 }
0x10f1   :  { %v2864_v31 = vmul.f32 1.442695, %v2863_v61  ;;  %v2867_v46 = vmul.f32 1.442695, %v2866_v57  ;;  %v2870_v14 = vmul.f32 1.442695, %v2869_v1  ;;  %v3012_v24 = vadd.f32 %v3789_v52, %v5955_v22 }
0x10f2   :  { %4281 = vpow2.f32 %v2855_v62  ;;  %v2873_v30 = vmul.f32 1.442695, %v2872_v2  ;;  %v2876_v16 = vmul.f32 1.442695, %v2875_v32  ;;  %v3050_v25 = vmax.f32 %v3049_v11, %v3003_v34  ;;  %v3345_v2 = vpop.xlane.xlu0 %3344 }
0x10f3   :  { %4283 = vpow2.f32 %v2858_v9  ;;  %v3030_v49 = vadd.f32 %v3789_v52, %v5957_v23  ;;  %v3038_v5 = vpop.xlane.xlu1 %3037  ;;  %v5989_v56 = vadd.f32 %v3801_v44, %v5962_v54  ;;  %v5991_v51 = vadd.f32 %v3801_v44, %v3296_v27 }
0x10f4   :  { %4285 = vpow2.f32 %v2861_v10  ;;  %v3051_v40 = vmax.f32 %v3050_v25, %v3012_v24  ;;  %v3039_v58 = vadd.f32 %v3789_v52, %v3038_v5  ;;  %v5994_v28 = vadd.f32 %v3801_v44, %v5964_v26 }
0x10f5   :  { %4287 = vpow2.f32 %v2864_v31  ;;  %v3365_v23 = vmax.f32 %v5991_v51, %v5989_v56  ;;  %v6001_v61 = vadd.f32 %v3801_v44, %v5966_v59  ;;  %v6021_v55 = vadd.f32 %v3801_v44, %v3345_v2 }
0x10f6   :  { %4289 = vpow2.f32 %v2867_v46  ;;  %v3052_v21 = vmax.f32 %v3051_v40, %v3021_v41 }
0x10f7   :  { %4291 = vpow2.f32 %v2870_v14  ;;  %v3366_v26 = vmax.f32 %v3365_v23, %v5994_v28 }
0x10f8   :  { %4293 = vpow2.f32 %v2873_v30  ;;  %v3053_v22 = vmax.f32 %v3052_v21, %v3030_v49 }
0x10f9   :  { %4295 = vpow2.f32 %v2876_v16  ;;  %v3367_v46 = vmax.f32 %v3366_v26, %v6001_v61 }
0x10fa   :  { %v3054_v12 = vmax.f32 %v3053_v22, %v3039_v58 }
0x10ff   :  { %v4282_v63 = vpop.eup %4281 }
0x1100   :  { %v4284_v60 = vpop.eup %4283 }
0x1101   :  { %v2878_v47 = vadd.f32 %v4284_v60, %v4282_v63  ;;  %v4286_v36 = vpop.eup %4285 }
0x1102   :  { %v4288_v43 = vpop.eup %4287 }
0x1103   :  { %v2879_v29 = vadd.f32 %v4286_v36, %v2878_v47  ;;  %v5968_v6 = vpop.eup %4289 }
0x1104   :  { %v5974_v37 = vpop.eup %4291 }
0x1105   :  { %v2880_v48 = vadd.f32 %v4288_v43, %v2879_v29  ;;  %v5977_v18 = vpop.eup %4293 }
0x1106   :  { %v5981_v45 = vpop.eup %4295 }
0x1107   :  { %v2881_v0 = vadd.f32 %v5968_v6, %v2880_v48 }
0x1109   :  { %v2882_v17 = vadd.f32 %v5974_v37, %v2881_v0 }
0x110b   :  { %v2883_v38 = vadd.f32 %v5977_v18, %v2882_v17 }
0x110d   :  { %v2884_v19 = vadd.f32 %v5981_v45, %v2883_v38 }
0x110f   :  { %4297 = vrcp.f32 %v2884_v19 }
0x111a   :  { %v3047_v20 = vpop.xlane.xlu1 %3046  ;;  %v3363_v0 = vpop.xlane.xlu0 %3362 }
0x111b   :  { %v3048_v50 = vadd.f32 %v3789_v52, %v3047_v20 }
0x111c   :  { %v5996_v13 = vpop.eup %4297 }
0x111d   :  { %v3055_v62 = vmax.f32 %v3054_v12, %v3048_v50  ;;  %v6004_v54 = vmul.f32 %v5996_v13, %v4284_v60  ;;  %v6007_v9 = vmul.f32 %v5996_v13, %v4282_v63  ;;  %v6016_v16 = vmul.f32 %v5996_v13, %v4286_v36 }
0x111e   :  { %v3336_v10 = vpop.xlane.xlu1 %3335  ;;  %v6019_v29 = vmul.f32 %v5996_v13, %v4288_v43  ;;  %v6031_v43 = vmul.f32 %v5996_v13, %v5968_v6  ;;  %v6035_v11 = vmul.f32 %v5996_v13, %v5977_v18  ;;  %v6042_v6 = vmul.f32 %v5996_v13, %v5974_v37  ;;  %v4019_v18 = vld [vmem:[%s6167_s9 + $0x8] sm:$0xff]  }
0x111f   :  { %v3056_v57 = vsub.f32 %v2985_v4, %v3055_v62  ;;  %v3059_v31 = vsub.f32 %v2994_v35, %v3055_v62  ;;  %v3062_v1 = vsub.f32 %v3003_v34, %v3055_v62  ;;  %2899 = vperm.xlu1 %3866, %v6004_v54   ;;  %v3065_v59 = vsub.f32 %v3012_v24, %v3055_v62 }
0x1120   :  { %2890 = vperm.xlu0 %3865, %v6007_v9   ;;  %v6013_v30 = vadd.f32 %v3801_v44, %v3336_v10  ;;  %v3068_v60 = vsub.f32 %v3021_v41, %v3055_v62  ;;  %v3071_v4 = vsub.f32 %v3030_v49, %v3055_v62  ;;  %v3074_v36 = vsub.f32 %v3039_v58, %v3055_v62 }
0x1121   :  { %v3057_v14 = vmul.f32 1.442695, %v3056_v57  ;;  %v3060_v32 = vmul.f32 1.442695, %v3059_v31  ;;  %v3063_v63 = vmul.f32 1.442695, %v3062_v1  ;;  %v3077_v3 = vsub.f32 %v3048_v50, %v3055_v62 }
0x1122   :  { %v3354_v47 = vpop.xlane.xlu1 %3353  ;;  %v3368_v48 = vmax.f32 %v3367_v46, %v6013_v30  ;;  %v3066_v52 = vmul.f32 1.442695, %v3065_v59  ;;  %v3069_v17 = vmul.f32 1.442695, %v3068_v60  ;;  %v3364_v24 = vadd.f32 %v3801_v44, %v3363_v0 }
0x1123   :  { %4299 = vpow2.f32 %v3057_v14  ;;  %2908 = vperm.xlu1 %3866, %v6016_v16   ;;  %v6025_v35 = vadd.f32 %v3801_v44, %v3354_v47  ;;  %v3072_v25 = vmul.f32 1.442695, %v3071_v4  ;;  %v3075_v19 = vmul.f32 1.442695, %v3074_v36 }
0x1124   :  { %4301 = vpow2.f32 %v3060_v32  ;;  %2917 = vperm.xlu0 %3865, %v6019_v29   ;;  %v3369_v34 = vmax.f32 %v3368_v48, %v6021_v55  ;;  %v3078_v27 = vmul.f32 1.442695, %v3077_v3  ;;  %v4539_v41 = vmov 0.0  }
0x1125   :  { %4303 = vpow2.f32 %v3063_v63  ;;  %3827 = vmatprep.subr.bf16.mxu1 %v4539_v41  ;;  %3819 = vmatprep.subr.bf16.mxu0 %v4539_v41  ;;  %v6056_v58 = vmul.f32 %v5996_v13, %v5981_v45 }
0x1126   :  { %v3370_v38 = vmax.f32 %v3369_v34, %v6025_v35  ;;  %4305 = vpow2.f32 %v3066_v52  ;;  %3828 = vmatpush3.bf16.msra.mxu1 %v4019_v18  ;;  %3831 = vmatprep.mubr.msk.bf16.mxu1 %vm4540_vm3, %v4539_v41 }
0x1127   :  { %2926 = vperm.xlu1 %3866, %v6031_v43   ;;  %4307 = vpow2.f32 %v3069_v17  ;;  %3829 = vmatprep.subr.bf16.mxu1 %v4539_v41 }
0x1128   :  { %2944 = vperm.xlu0 %3865, %v6035_v11   ;;  %v3371_v40 = vmax.f32 %v3370_v38, %v3364_v24  ;;  %4309 = vpow2.f32 %v3072_v25  ;;  %3823 = vmatprep.mubr.msk.bf16.mxu0 %vm4540_vm3, %v4539_v41 }
0x1129   :  { %4311 = vpow2.f32 %v3075_v19 }
0x112a   :  { %v3372_v21 = vsub.f32 %v5991_v51, %v3371_v40  ;;  %v3375_v49 = vsub.f32 %v5989_v56, %v3371_v40  ;;  %v3378_v5 = vsub.f32 %v5994_v28, %v3371_v40  ;;  %v3381_v37 = vsub.f32 %v6001_v61, %v3371_v40  ;;  %v4020_v28 = vld [vmem:[%s6167_s9] sm:$0xff]  }
0x112b   :  { %2935 = vperm.xlu1 %3866, %v6042_v6   ;;  %4313 = vpow2.f32 %v3078_v27  ;;  %v3384_v56 = vsub.f32 %v6013_v30, %v3371_v40  ;;  %v3387_v12 = vsub.f32 %v6021_v55, %v3371_v40  ;;  %3830 = vmatpush3.bf16.msra.mxu1 %v4020_v28  ;;  %v3390_v61 = vsub.f32 %v6025_v35, %v3371_v40 }
0x112c   :  { %v3373_v44 = vmul.f32 1.442695, %v3372_v21  ;;  %v3376_v22 = vmul.f32 1.442695, %v3375_v49  ;;  %v3379_v51 = vmul.f32 1.442695, %v3378_v5  ;;  %v3393_v57 = vsub.f32 %v3364_v24, %v3371_v40 }
0x112d   :  { %v3382_v50 = vmul.f32 1.442695, %v3381_v37  ;;  %v3385_v23 = vmul.f32 1.442695, %v3384_v56  ;;  %v3388_v10 = vmul.f32 1.442695, %v3387_v12 }
0x112e   :  { %4315 = vpow2.f32 %v3373_v44  ;;  %v3391_v46 = vmul.f32 1.442695, %v3390_v61  ;;  %v3394_v14 = vmul.f32 1.442695, %v3393_v57 }
0x112f   :  { %2953 = vperm.xlu1 %3866, %v6056_v58   ;;  %4317 = vpow2.f32 %v3376_v22 }
0x1130   :  { %v4300_v20 = vpop.eup %4299  ;;  %4319 = vpow2.f32 %v3379_v51 }
0x1131   :  { %v4302_v45 = vpop.eup %4301  ;;  %4321 = vpow2.f32 %v3382_v50 }
0x1132   :  { %v3080_v13 = vadd.f32 %v4302_v45, %v4300_v20  ;;  %v4304_v62 = vpop.eup %4303  ;;  %4323 = vpow2.f32 %v3385_v23 }
0x1133   :  { %v4306_v31 = vpop.eup %4305  ;;  %4325 = vpow2.f32 %v3388_v10 }
0x1134   :  { %v3081_v26 = vadd.f32 %v4304_v62, %v3080_v13  ;;  %v4308_v2 = vpop.eup %4307  ;;  %4327 = vpow2.f32 %v3391_v46 }
0x1135   :  { %v4310_v32 = vpop.eup %4309  ;;  %4329 = vpow2.f32 %v3394_v14  ;;  %v4022_v14 = vld [vmem:[%s6167_s9 + $0x10] sm:$0xff]  }
0x1136   :  { %v3082_v1 = vadd.f32 %v4306_v31, %v3081_v26  ;;  %v4312_v30 = vpop.eup %4311 }
0x1138   :  { %v3083_v59 = vadd.f32 %v4308_v2, %v3082_v1  ;;  %v4314_v60 = vpop.eup %4313 }
0x113a   :  { %v3084_v63 = vadd.f32 %v4310_v32, %v3083_v59  ;;  %v4021_v59 = vld [vmem:[%s6167_s9 + $0x18] sm:$0xff]  }
0x113b   :  { %v4316_v47 = vpop.eup %4315  ;;  %3820 = vmatpush3.bf16.msra.mxu0 %v4021_v59 }
0x113c   :  { %v3085_v55 = vadd.f32 %v4312_v30, %v3084_v63  ;;  %v4318_v48 = vpop.eup %4317  ;;  %3821 = vmatprep.subr.bf16.mxu0 %v4539_v41 }
0x113d   :  { %v3396_v4 = vadd.f32 %v4318_v48, %v4316_v47  ;;  %v4320_v0 = vpop.eup %4319 }
0x113e   :  { %v3086_v52 = vadd.f32 %v4314_v60, %v3085_v55  ;;  %v4322_v36 = vpop.eup %4321 }
0x113f   :  { %v3397_v35 = vadd.f32 %v4320_v0, %v3396_v4  ;;  %v4324_v17 = vpop.eup %4323  ;;  %3822 = vmatpush3.bf16.msra.mxu0 %v4022_v14 }
0x1140   :  { %4331 = vrcp.f32 %v3086_v52  ;;  %v4326_v24 = vpop.eup %4325  ;;  %3835 = vmatprep.subr.bf16.mxu0 %v4539_v41 }
0x1141   :  { %v3398_v34 = vadd.f32 %v4322_v36, %v3397_v35  ;;  %v4328_v25 = vpop.eup %4327 }
0x1142   :  { %v4330_v40 = vpop.eup %4329 }
0x1143   :  { %v3399_v3 = vadd.f32 %v4324_v17, %v3398_v34 }
0x1145   :  { %v3400_v38 = vadd.f32 %v4326_v24, %v3399_v3 }
0x1147   :  { %v3401_v19 = vadd.f32 %v4328_v25, %v3400_v38 }
0x1149   :  { %v3402_v18 = vadd.f32 %v4330_v40, %v3401_v19 }
0x114b   :  { %4333 = vrcp.f32 %v3402_v18 }
0x114d   :  { %v4332_v27 = vpop.eup %4331 }
0x114e   :  { %v3088_v21 = vmul.f32 %v4332_v27, %v4300_v20  ;;  %v3097_v49 = vmul.f32 %v4332_v27, %v4302_v45  ;;  %v3106_v5 = vmul.f32 %v4332_v27, %v4304_v62  ;;  %v3115_v37 = vmul.f32 %v4332_v27, %v4306_v31 }
0x114f   :  { %v3124_v44 = vmul.f32 %v4332_v27, %v4308_v2  ;;  %v3133_v22 = vmul.f32 %v4332_v27, %v4310_v32  ;;  %v3142_v51 = vmul.f32 %v4332_v27, %v4312_v30  ;;  %v3151_v56 = vmul.f32 %v4332_v27, %v4314_v60  ;;  %v6270_v60 = vld [vmem:[#allocation38_spill] sm:$0xff] }
0x1150   :  { %3092 = vperm.xlu1 %3866, %v3088_v21   ;;  %v3089_v28 = vadd.f32 %v3088_v21, %v6007_v9  ;;  %v3098_v50 = vadd.f32 %v3097_v49, %v6004_v54  ;;  %3101 = vperm.xlu0 %3865, %v3097_v49   ;;  %v3107_v12 = vadd.f32 %v3106_v5, %v6016_v16 }
0x1151   :  { %v3116_v13 = vadd.f32 %v3115_v37, %v6019_v29  ;;  %v3125_v23 = vadd.f32 %v3124_v44, %v6031_v43  ;;  %v3134_v20 = vadd.f32 %v3133_v22, %v6042_v6  ;;  %v3143_v45 = vadd.f32 %v3142_v51, %v6035_v11 }
0x1152   :  { %v6078_v61 = vadd.f32 %v3151_v56, %v6056_v58 }
0x1154   :  { %3110 = vperm.xlu1 %3866, %v3106_v5   ;;  %3119 = vperm.xlu0 %3865, %v3115_v37  }
0x1158   :  { %3128 = vperm.xlu1 %3866, %v3124_v44   ;;  %3137 = vperm.xlu0 %3865, %v3133_v22   ;;  %v4334_v9 = vpop.eup %4333 }
0x1159   :  { %v3413_v54 = vmul.f32 %v4334_v9, %v4318_v48  ;;  %v3404_v62 = vmul.f32 %v4334_v9, %v4316_v47  ;;  %v3431_v26 = vmul.f32 %v4334_v9, %v4322_v36  ;;  %v3422_v16 = vmul.f32 %v4334_v9, %v4320_v0 }
0x115a   :  { %v3449_v10 = vmul.f32 %v4334_v9, %v4326_v24  ;;  %v3440_v29 = vmul.f32 %v4334_v9, %v4324_v17  ;;  %v3458_v57 = vmul.f32 %v4334_v9, %v4328_v25  ;;  %v6080_v43 = vmul.f32 %v4334_v9, %v4330_v40 }
0x115b   :  { %v6082_v11 = vadd.f32 %v3404_v62, %v3089_v28  ;;  %v6084_v6 = vadd.f32 %v3422_v16, %v3107_v12  ;;  %v6086_v58 = vadd.f32 %v3413_v54, %v3098_v50  ;;  %v6092_v46 = vadd.f32 %v3431_v26, %v3116_v13 }
0x115c   :  { %3146 = vperm.xlu1 %3866, %v3142_v51   ;;  %3155 = vperm.xlu0 %3865, %v3151_v56   ;;  %v6088_v31 = vadd.f32 %v3440_v29, %v3125_v23  ;;  %v6090_v1 = vadd.f32 %v3458_v57, %v3143_v45  ;;  %v6094_v2 = vadd.f32 %v3449_v10, %v3134_v20 }
0x1160   :  { %3417 = vperm.xlu1 %3866, %v3413_v54   ;;  %3408 = vperm.xlu0 %3865, %v3404_v62  }
0x1164   :  { %3435 = vperm.xlu1 %3866, %v3431_v26   ;;  %3426 = vperm.xlu0 %3865, %v3422_v16  }
0x1168   :  { %3453 = vperm.xlu1 %3866, %v3449_v10   ;;  %3444 = vperm.xlu0 %3865, %v3440_v29  }
0x116c   :  { %3462 = vperm.xlu0 %3865, %v3458_v57  }
0x119a   :  { %v2900_v32 = vpop.permute.xlu1 %2899 }
0x119b   :  { %v2902_v30 = vmul.f32 %v2900_v32, %v5554_v7  ;;  %v2891_v63 = vpop.permute.xlu0 %2890 }
0x119c   :  { %v2893_v47 = vmul.f32 %v2891_v63, %v6270_v60  ;;  %v3551_v63 = vmul.f32 0.33333334, %v6082_v11 }
0x119e   :  { %v2909_v55 = vpop.permute.xlu1 %2908  ;;  %v2903_v48 = vadd.f32 %v2902_v30, %v2893_v47  ;;  %v3565_v47 = vmul.f32 0.33333334, %v6084_v6 }
0x119f   :  { %v2911_v52 = vmul.f32 %v2909_v55, %v5613_v42  ;;  %v2918_v4 = vpop.permute.xlu0 %2917  ;;  %v3579_v55 = vmul.f32 0.33333334, %v6088_v31  ;;  %v4023_v31 = vld [vmem:[%s6167_s9 + $0x28] sm:$0xff]  }
0x11a0   :  { %v2920_v35 = vmul.f32 %v2918_v4, %v5672_v53 }
0x11a1   :  { %v2912_v0 = vadd.f32 %v2911_v52, %v2903_v48  ;;  %v3593_v48 = vmul.f32 0.33333334, %v6090_v1 }
0x11a2   :  { %v2927_v36 = vpop.permute.xlu1 %2926 }
0x11a3   :  { %v2921_v34 = vadd.f32 %v2920_v35, %v2912_v0  ;;  %v2929_v17 = vmul.f32 %v2927_v36, %v5735_v33  ;;  %v2945_v3 = vpop.permute.xlu0 %2944 }
0x11a4   :  { %v2947_v19 = vmul.f32 %v2945_v3, %v5902_v8 }
0x11a5   :  { %v2930_v38 = vadd.f32 %v2929_v17, %v2921_v34 }
0x11a6   :  { %v2936_v24 = vpop.permute.xlu1 %2935 }
0x11a7   :  { %v2938_v25 = vmul.f32 %v2936_v24, %v5851_v15 }
0x11a9   :  { %v2939_v40 = vadd.f32 %v2938_v25, %v2930_v38 }
0x11aa   :  { %v2954_v18 = vpop.permute.xlu1 %2953 }
0x11ab   :  { %v2948_v27 = vadd.f32 %v2947_v19, %v2939_v40  ;;  %v2956_v21 = vmul.f32 %v2954_v18, %v5923_v39 }
0x11ad   :  { %v2957_v49 = vadd.f32 %v2956_v21, %v2948_v27 }
0x11af   :  { %v2958_v5 = vpack.c.bf16 %v2957_v49, %v2957_v49 }
0x11b1   :  { %3832 = vmatmul.mubr.msk.bf16.vlgmr.msra.gmra.mxu1 %vm2803_vm2, %v2958_v5 }
0x11cb   :  { %v3093_v37 = vpop.permute.xlu1 %3092  ;;  %v3102_v44 = vpop.permute.xlu0 %3101 }
0x11cc   :  { %v3095_v22 = vmul.f32 %v3093_v37, %v6270_v60  ;;  %v3104_v51 = vmul.f32 %v3102_v44, %v5554_v7  ;;  %v3558_v37 = vmul.f32 0.33333334, %v6086_v58 }
0x11ce   :  { %v3105_v50 = vadd.f32 %v3104_v51, %v3095_v22 }
0x11cf   :  { %v3111_v56 = vpop.permute.xlu1 %3110  ;;  %v3120_v28 = vpop.permute.xlu0 %3119 }
0x11d0   :  { %v3113_v12 = vmul.f32 %v3111_v56, %v5613_v42  ;;  %v3122_v23 = vmul.f32 %v3120_v28, %v5672_v53 }
0x11d2   :  { %v3114_v13 = vadd.f32 %v3113_v12, %v3105_v50 }
0x11d3   :  { %v3129_v20 = vpop.permute.xlu1 %3128  ;;  %v3138_v45 = vpop.permute.xlu0 %3137 }
0x11d4   :  { %v3123_v9 = vadd.f32 %v3122_v23, %v3114_v13  ;;  %v3131_v54 = vmul.f32 %v3129_v20, %v5735_v33  ;;  %v3140_v26 = vmul.f32 %v3138_v45, %v5851_v15 }
0x11d6   :  { %v3132_v62 = vadd.f32 %v3131_v54, %v3123_v9 }
0x11d7   :  { %v3147_v16 = vpop.permute.xlu1 %3146  ;;  %v3156_v10 = vpop.permute.xlu0 %3155 }
0x11d8   :  { %v3141_v29 = vadd.f32 %v3140_v26, %v3132_v62  ;;  %v3149_v57 = vmul.f32 %v3147_v16, %v5902_v8  ;;  %v3158_v14 = vmul.f32 %v3156_v10, %v5923_v39 }
0x11da   :  { %v3150_v59 = vadd.f32 %v3149_v57, %v3141_v29 }
0x11db   :  { %v3418_v52 = vpop.permute.xlu1 %3417  ;;  %v3409_v4 = vpop.permute.xlu0 %3408 }
0x11dc   :  { %v3159_v32 = vadd.f32 %v3158_v14, %v3150_v59  ;;  %v3420_v11 = vmul.f32 %v3418_v52, %v5554_v7  ;;  %v3411_v36 = vmul.f32 %v3409_v4, %v6270_v60 }
0x11de   :  { %v3160_v30 = vpack.c.bf16 %v3159_v32, %v3159_v32  ;;  %v3421_v34 = vadd.f32 %v3420_v11, %v3411_v36 }
0x11df   :  { %v3436_v0 = vpop.permute.xlu1 %3435  ;;  %v3427_v35 = vpop.permute.xlu0 %3426 }
0x11e0   :  { %3167 = vrot.lane.b32.xlu1 %v3160_v30, %s4538_s6  ;;  %v3429_v6 = vmul.f32 %v3427_v35, %v5613_v42  ;;  %v3438_v24 = vmul.f32 %v3436_v0, %v5672_v53  ;;  %v4024_v42 = vld [vmem:[%s6167_s9 + $0x20] sm:$0xff]   ;;  %s4545_s9 = smov 121  }
0x11e2   :  { %v3430_v3 = vadd.f32 %v3429_v6, %v3421_v34 }
0x11e3   :  { %v3454_v17 = vpop.permute.xlu1 %3453  ;;  %v3445_v1 = vpop.permute.xlu0 %3444 }
0x11e4   :  { %3471 = vperm.xlu1 %3866, %v6080_v43   ;;  %v3439_v25 = vadd.f32 %v3438_v24, %v3430_v3  ;;  %v3447_v7 = vmul.f32 %v3445_v1, %v5735_v33  ;;  %v3456_v53 = vmul.f32 %v3454_v17, %v5851_v15  ;;  %v3586_v15 = vmul.f32 0.33333334, %v6094_v2 }
0x11e6   :  { %v3448_v60 = vadd.f32 %v3447_v7, %v3439_v25 }
0x11e7   :  { %v3463_v19 = vpop.permute.xlu0 %3462 }
0x11e8   :  { %3553 = vrot.lane.b32.xlu1 %v3551_v63, %s4541_s7  ;;  %v3457_v40 = vadd.f32 %v3456_v53, %v3448_v60  ;;  %v3465_v18 = vmul.f32 %v3463_v19, %v5902_v8  ;;  %v3468_v8 = vadd.f32 %v6080_v43, %v6078_v61  ;;  %v3809_v43 = vld [vmem:[%s6168_s10] ss:$0 sm:$0xff]  ;;  %s4549_s10 = smov [#allocation11]  }
0x11e9   :  { %s3613_s6 = sshll.u32 %s4549_s10, 4  ;;  %s3614_s6 = int_to_ptr.vmem [resolvable:$true] %s3613_s6 }
0x11ea   :  { %v3466_v33 = vadd.f32 %v3465_v18, %v3457_v40  ;;  %v3600_v22 = vmul.f32 0.33333334, %v3468_v8  ;;  %s4500_s12 = scalar_lea.vmem %s3614_s6, 128  ;;  %p4505_p12 = scmp.lt.s32.totalorder %s3614_s6, %s3614_s6 }
0x11eb   :  { %p4501_p11 = scmp.ne.s32.totalorder %s3614_s6, %s4500_s12  ;;  %p4506_p13 = scmp.lt.s32.totalorder %s4500_s12, %s4500_s12 }
0x11ec   :  { %3567 = vrot.lane.b32.xlu1 %v3565_v47, %s4542_s20 }
0x11ed   :  { %p4507_p0 = por %p4506_p13, %p4505_p12 }
0x11ef   :  { %p4508_p1 = pnand %p4507_p0, %p4501_p11 }
0x11f0   :  { %3581 = vrot.lane.b32.xlu1 %v3579_v55, %s4543_s21 }
0x11f4   :  { %3595 = vrot.lane.b32.xlu1 %v3593_v48, %s4544_s24 }
0x1252   :  { %v3168_v38 = vpop.permute.xlu1 %3167 }
0x1253   :  { %3824 = vmatmul.mubr.msk.bf16.vlgmr.msra.gmra.mxu0 %vm2803_vm2, %v3168_v38 }
0x1254   :  { %3836 = vmatpush3.bf16.msra.mxu0 %v4023_v31  ;;  %3839 = vmatprep.mubr.msk.bf16.mxu0 %vm4540_vm3, %v4539_v41 }
0x1255   :  { %3837 = vmatprep.subr.bf16.mxu0 %v4539_v41  ;;  %v3572_v41 = vmul.f32 0.33333334, %v6092_v46 }
0x1258   :  { %3838 = vmatpush3.bf16.msra.mxu0 %v4024_v42 }
0x125f   :  { %v3472_v27 = vpop.permute.xlu1 %3471 }
0x1260   :  { %v3474_v21 = vmul.f32 %v3472_v27, %v5923_v39 }
0x1262   :  { %v3475_v49 = vadd.f32 %v3474_v21, %v3466_v33 }
0x1263   :  { %v3554_v2 = vpop.permute.xlu1 %3553 }
0x1264   :  { %v3476_v5 = vpack.c.bf16 %v3475_v49, %v3475_v49 }
0x1266   :  { %3483 = vrot.lane.b32.xlu0 %v3476_v5, %s4536_s3  ;;  %s4548_s3 = smov 127  }
0x1267   :  { %v3568_v20 = vpop.permute.xlu1 %3567 }
0x126a   :  { %3560 = vrot.lane.b32.xlu0 %v3558_v37, %s4545_s9 }
0x126b   :  { %v3582_v29 = vpop.permute.xlu1 %3581 }
0x126e   :  { %3574 = vrot.lane.b32.xlu0 %v3572_v41, %s4546_s28 }
0x126f   :  { %v3596_v59 = vpop.permute.xlu1 %3595 }
0x1271   :  { %v3273_v44 = vpop.f32.mrf.mxu1 }
0x1272   :  { %3588 = vrot.lane.b32.xlu0 %v3586_v15, %s4547_s29 }
0x1273   :  { %v3833_v39 = vpop.f32.mrf.mxu1 }
0x1275   :  { %v3276_v51 = vpop.f32.mrf.mxu1 }
0x1276   :  { %3602 = vrot.lane.b32.xlu0 %v3600_v22, %s4548_s3 }
0x1277   :  { %v3834_v58 = vpop.f32.mrf.mxu1 }
0x12d8   :  { %v3484_v56 = vpop.permute.xlu0 %3483 }
0x12d9   :  { %3840 = vmatmul.mubr.msk.bf16.vlgmr.msra.gmra.mxu0 %vm2803_vm2, %v3484_v56 }
0x12dc   :  { %v3561_v13 = vpop.permute.xlu0 %3560 }
0x12e0   :  { %v3575_v9 = vpop.permute.xlu0 %3574 }
0x12e4   :  { %v3589_v57 = vpop.permute.xlu0 %3588 }
0x12e8   :  { %v3603_v14 = vpop.permute.xlu0 %3602 }
0x1313   :  { %v3218_v46 = vpop.f32.mrf.mxu0 }
0x1314   :  { %v3274_v23 = vadd.f32 %v3273_v44, %v3218_v46 }
0x1315   :  { %v3825_v28 = vpop.f32.mrf.mxu0 }
0x1317   :  { %v3221_v50 = vpop.f32.mrf.mxu0 }
0x1319   :  { %v3826_v12 = vpop.f32.mrf.mxu0 }
0x1399   :  { %v3534_v61 = vpop.f32.mrf.mxu0 }
0x139a   :  { %v3540_v45 = vadd.f32 %v3534_v61, %v3274_v23 }
0x139b   :  { %v3841_v54 = vpop.f32.mrf.mxu0 }
0x139c   :  { %v3548_v62 = vadd.f32 %v3809_v43, %v3540_v45 }
0x139d   :  { %v3537_v26 = vpop.f32.mrf.mxu0 }
0x139e   :  { %v3549_v16 = vmul.f32 0.33333334, %v3548_v62 }
0x139f   :  { %v3842_v10 = vpop.f32.mrf.mxu0 }
0x13a0   :  { %3550 = vst [vmem:[#allocation11] sm:$0xff] %v3549_v16 }
0x13a1   :  { %3557 = vst.msk [vmem:[#allocation11] sm:$0xff] %vm3556_vm4, %v3554_v2 }
0x13a2   :  { %3564 = vst.msk [vmem:[#allocation11] sm:$0xff] %vm3563_vm5, %v3561_v13 }
0x13a3   :  { %3571 = vst.msk [vmem:[#allocation11] sm:$0xff] %vm3570_vm6, %v3568_v20 }
0x13a4   :  { %3578 = vst.msk [vmem:[#allocation11] sm:$0xff] %vm3577_vm7, %v3575_v9 }
0x13a5   :  { %3585 = vst.msk [vmem:[#allocation11] sm:$0xff] %vm3584_vm8, %v3582_v29 }
0x13a6   :  { %3592 = vst.msk [vmem:[#allocation11] sm:$0xff] %vm3591_vm9, %v3589_v57 }
0x13a7   :  { %3599 = vst.msk [vmem:[#allocation11] sm:$0xff] %vm3598_vm10, %v3596_v59 }
0x13a8   :  { %3606 = vst.msk [vmem:[#allocation11] sm:$0xff] %vm3605_vm11, %v3603_v14 }
0x13a9   :  { %4511 = shalt.err (!%p4508_p1)
}
0x13aa   :  { %3616 = dma.vmem_to_hbm [thread:$0]  %s3614_s6, 128, %s6169_s11, [#allocation4]  }
0x13ab   :  { %4526 = dma.done.wait [#allocation4], 128  }
0x13ac   :  { %4527 = vsyncadd [#allocation4], 4294967168 }
0x13ad   :  { %3620 = vsyncpa [#allocation3], 1 }
0x13ae   :  { %3621 = vsyncpa [#allocation6], 1 }
0x13af   :  { %3622 = vsyncpa [#allocation9], 1 }
0x13b0   :  { %3623 = vsyncpa [#allocation4], 1 }

</bundles_post_ra>
